<compile_context>
chip_gen: v7x
topology: tpu7x:2x2x1
jax: 0.10.0
libtpu: 0.0.40
codegen_flags: <defaults>
</compile_context>

<pallas_src>
import functools

import numpy as np
import jax
import jax.numpy as jnp
from jax import lax
from jax.experimental import pallas as pl
from jax.experimental.pallas import tpu as pltpu

BASEWIDTH = 64
CARDINALITY = 32
DEPTH = 4
BN_EPS = 1e-5
LANE = 128

# Flipped to False (once) if this jax build rejects BlockSpec(pipeline_mode=...).
_SINGLE_BUFFER_WEIGHTS_OK = True


def _round_up(n, m=LANE):
    return ((n + m - 1) // m) * m


def _subsample(a, axis, start, step, count):
    """a[..., start : start + step*count : step, ...] along `axis`, implemented
    with plain slices + reshape (no strided memory ops)."""
    if step == 1:
        if start == 0 and count == a.shape[axis]:
            return a
        return lax.slice_in_dim(a, start, start + count, axis=axis)
    a = lax.slice_in_dim(a, start, start + step * count, axis=axis)
    shape = a.shape[:axis] + (count, step) + a.shape[axis + 1:]
    return lax.index_in_dim(a.reshape(shape), 0, axis=axis + 1, keepdims=False)


# -----------------------------------------------------------------------------
# Pallas kernel: one (batch element, H-tile) per grid step.
# -----------------------------------------------------------------------------
def _block_kernel(x_ref, w1_ref, b1_ref, w2_ref, b2_ref, w3_ref, b3_ref,
                  *rest, stride, th_in, has_shortcut):
    if has_shortcut:
        ws_ref, bs_ref, o_ref = rest
    else:
        (o_ref,) = rest

    # x_ref block: (1, H+2, W+2, Cin) bf16 -- spatially zero-padded, lane-padded,
    #              resident across the H-tile axis (constant block index).
    W = x_ref.shape[2] - 2
    Cin = x_ref.shape[3]
    CD = w1_ref.shape[1]
    THo, Wo = o_ref.shape[1], o_ref.shape[2]       # output rows/cols this tile
    C4 = o_ref.shape[3]
    t = pl.program_id(1)
    n_t = pl.num_programs(1)

    # Input window for this tile: th_in interior rows + 1-row halo each side.
    r0 = pl.multiple_of(t * th_in, th_in)
    xw = x_ref[0, pl.ds(r0, th_in + 2), :, :]       # (th_in+2, W+2, Cin) bf16

    # ---- stage 1: grouped 1x1 conv (block-diag dense, BN1 folded) + ReLU ----
    Mw = (th_in + 2) * (W + 2)
    h1 = jnp.dot(xw.reshape(Mw, Cin), w1_ref[...],
                 preferred_element_type=jnp.float32) + b1_ref[...]
    h1 = jnp.maximum(h1, 0.0).reshape(th_in + 2, W + 2, CD).astype(jnp.bfloat16)

    # The wrapper zero-pads x spatially, but conv+BN of a zero pixel is
    # relu(b1) != 0: zero exactly the rows/cols that are the true image border.
    col = lax.broadcasted_iota(jnp.int32, (1, W + 2, 1), 1)
    row = lax.broadcasted_iota(jnp.int32, (th_in + 2, 1, 1), 0)
    keep = (col >= 1) & (col <= W)
    keep = keep & ((row >= 1) | (t > 0))            # top halo is border iff t==0
    keep = keep & ((row <= th_in) | (t < n_t - 1))  # bottom halo iff last tile
    h1 = jnp.where(keep, h1, 0)

    # ---- stage 2: grouped 3x3 conv, stride applied BEFORE the matmuls -------
    # Column stride is applied while building the kx taps (width Wo, not W);
    # the ky loop only row-strides.  K = 3*CD -> 3 matmuls per tile.
    taps = [_subsample(h1, 1, kx, stride, Wo) for kx in range(3)]
    hx = jnp.concatenate(taps, axis=-1)             # (th_in+2, Wo, 3*CD) bf16

    Mo = THo * Wo
    acc = None
    for ky in range(3):
        band = _subsample(hx, 0, ky, stride, THo)   # (THo, Wo, 3*CD)
        d = jnp.dot(band.reshape(Mo, 3 * CD), w2_ref[ky],
                    preferred_element_type=jnp.float32)
        acc = d if acc is None else acc + d
    h2 = jnp.maximum(acc + b2_ref[...], 0.0).astype(jnp.bfloat16)

    # ---- stage 3: dense 1x1 conv + BN3 (folded) -----------------------------
    y = jnp.dot(h2, w3_ref[...], preferred_element_type=jnp.float32) + b3_ref[...]

    # ---- shortcut ------------------------------------------------------------
    xs = _subsample(xw, 0, 1, stride, THo)
    xs = _subsample(xs, 1, 1, stride, Wo)
    xs = xs.reshape(Mo, Cin)
    if has_shortcut:
        sc = jnp.dot(xs, ws_ref[...], preferred_element_type=jnp.float32) + bs_ref[...]
    else:
        # Identity shortcut (stride==1, Cin==C4): no matmul, padded chans are 0.
        sc = xs.astype(jnp.float32)

    o_ref[0] = jnp.maximum(y + sc, 0.0).reshape(THo, Wo, C4)


# -----------------------------------------------------------------------------
# pallas_call builder.
# -----------------------------------------------------------------------------
def _pallas_forward(x_pad, kparams, *, stride, th_o, th_in, n_t, Ho, Wo,
                    single_buffer_weights):
    Nb, Hp2, Wp2, Cinp = x_pad.shape
    CDp = kparams['w1'].shape[1]
    C4p = kparams['w3'].shape[1]
    has_sc = kparams['has_shortcut']

    weight_names = ['w1', 'b1', 'w2', 'b2', 'w3', 'b3']
    if has_sc:
        weight_names += ['ws', 'bs']
    weights = [kparams[k] for k in weight_names]

    def const_spec(arr):
        nd = arr.ndim
        idx = lambda b, t: (0,) * nd
        if single_buffer_weights:
            # Grid-constant weights: single buffer (no pointless double-buffer).
            return pl.BlockSpec(arr.shape, idx, pipeline_mode=pl.Buffered(1))
        return pl.BlockSpec(arr.shape, idx)

    in_specs = [
        # Full padded image per batch element, constant along the H-tile axis ->
        # DMA'd once per batch element, stays resident.
        pl.BlockSpec((1, Hp2, Wp2, Cinp), lambda b, t: (b, 0, 0, 0)),
    ] + [const_spec(w) for w in weights]

    # Scoped-VMEM budget derived from the actual block sizes (+ headroom).
    w_bytes = sum(int(np.prod(w.shape)) * w.dtype.itemsize for w in weights)
    img_bytes = Hp2 * Wp2 * Cinp * 2                       # bf16
    out_bytes = th_o * Wo * C4p * 4
    h1_b = (th_in + 2) * Wp2 * CDp * 2
    hx_b = (th_in + 2) * Wo * 3 * CDp * 2
    acc_b = th_o * Wo * max(CDp, C4p) * 4
    vmem_limit = int(2 * img_bytes
                     + (1 if single_buffer_weights else 2) * w_bytes
                     + 2 * out_bytes
                     + 2 * (2 * h1_b + hx_b + 4 * acc_b)
                     + (8 << 20))
    vmem_limit = min(max(vmem_limit, 32 << 20), 100 << 20)

    kernel = functools.partial(_block_kernel, stride=stride, th_in=th_in,
                               has_shortcut=has_sc)
    return pl.pallas_call(
        kernel,
        out_shape=jax.ShapeDtypeStruct((Nb, Ho, Wo, C4p), jnp.float32),
        grid_spec=pltpu.PrefetchScalarGridSpec(
            num_scalar_prefetch=0,
            grid=(Nb, n_t),
            in_specs=in_specs,
            out_specs=pl.BlockSpec((1, th_o, Wo, C4p), lambda b, t: (b, t, 0, 0)),
        ),
        compiler_params=pltpu.CompilerParams(
            # Megacore split on batch (the image block is constant along t, so a
            # split along t would DMA the same image twice on 2-TC chips).
            dimension_semantics=("parallel", "arbitrary"),
            vmem_limit_bytes=vmem_limit),
    )(x_pad, *weights)


def _pick_row_tile(Ho, Wo, target_m=256):
    """Smallest divisor of Ho with th_o*Wo >= target_m (fills the MXU)."""
    for d in range(1, Ho + 1):
        if Ho % d == 0 and d * Wo >= target_m:
            return d
    return Ho


# -----------------------------------------------------------------------------
# Wrapper: NCHW in / NCHW out.
# -----------------------------------------------------------------------------
def resnext_bottleneck_c(x_nchw, kparams, stride, row_tile=None):
    global _SINGLE_BUFFER_WEIGHTS_OK
    N, Cin, H, W = x_nchw.shape
    Cinp = kparams['w1'].shape[0]
    C4 = kparams['c4']
    if stride > 1:
        # TODO(synk): stride>1 path assumes H, W divisible by stride (true for
        # standard ResNeXt stages).
        assert H % stride == 0 and W % stride == 0
    Ho = (H - 1) // stride + 1
    Wo = (W - 1) // stride + 1

    # NCHW -> NHWC in bf16 (halves the image DMA / resident footprint),
    # zero-pad the 3x3 spatial halo and pad channels to a lane-dense multiple
    # of 128 (padded channels are exactly zero end-to-end).
    x = jnp.transpose(x_nchw, (0, 2, 3, 1)).astype(jnp.bfloat16)
    x = jnp.pad(x, ((0, 0), (1, 1), (1, 1), (0, Cinp - Cin)))

    # Spatial H-tiling (also for stride>1) for pipeline / megacore depth.
    if row_tile is None:
        row_tile = _pick_row_tile(Ho, Wo)
    if Ho % row_tile == 0 and Ho // row_tile > 1:
        th_o = row_tile
    else:
        th_o = Ho
    n_t = Ho // th_o
    th_in = th_o * stride if n_t > 1 else H

    attempts = (True, False) if _SINGLE_BUFFER_WEIGHTS_OK else (False,)
    out = None
    for sb in attempts:
        try:
            out = _pallas_forward(x, kparams, stride=stride, th_o=th_o,
                                  th_in=th_in, n_t=n_t, Ho=Ho, Wo=Wo,
                                  single_buffer_weights=sb)
            out.block_until_ready()
            break
        except Exception:
            if not sb:
                raise
            # This jax build rejects BlockSpec(pipeline_mode=...): fall back to
            # default (double-buffered) weight specs from now on.
            _SINGLE_BUFFER_WEIGHTS_OK = False

    out = out[:, :, :, :C4]                         # drop lane padding
    return jnp.transpose(out, (0, 3, 1, 2))         # back to NCHW


# -----------------------------------------------------------------------------
# Parameter construction (deterministic), BN folding, grouped->dense glue,
# kx-tap fusion and lane padding.
# -----------------------------------------------------------------------------
def _grouped_1x1_to_dense(w, groups):
    w = np.asarray(w)
    Cout, cin_g = w.shape[0], w.shape[1]
    cout_g = Cout // groups
    dense = np.zeros((cin_g * groups, Cout), np.float32)
    for g in range(groups):
        dense[g * cin_g:(g + 1) * cin_g, g * cout_g:(g + 1) * cout_g] = \
            w[g * cout_g:(g + 1) * cout_g, :, 0, 0].T
    return dense


def _grouped_3x3_to_dense(w, groups):
    w = np.asarray(w)
    Cout, cin_g = w.shape[0], w.shape[1]
    cout_g = Cout // groups
    dense = np.zeros((9, cin_g * groups, Cout), np.float32)
    for ky in range(3):
        for kx in range(3):
            for g in range(groups):
                dense[ky * 3 + kx,
                      g * cin_g:(g + 1) * cin_g,
                      g * cout_g:(g + 1) * cout_g] = \
                    w[g * cout_g:(g + 1) * cout_g, :, ky, kx].T
    return dense


def _fold_bn(dense, bn):
    gamma, beta, mean, var = [np.asarray(t) for t in bn]
    scale = gamma / np.sqrt(var + BN_EPS)
    shift = beta - mean * scale
    return (dense * scale).astype(np.float32), shift.astype(np.float32)[None, :]


def _pad_to(a, shape):
    out = np.zeros(shape, np.float32)
    out[tuple(slice(0, s) for s in a.shape)] = a
    return out


def make_params(key, in_channels, out_channels, stride):
    C = CARDINALITY
    D = int(DEPTH * out_channels / BASEWIDTH)
    CD = C * D
    C4 = out_channels * 4
    ks = jax.random.split(key, 8)

    def nrm(k, shape, s=0.1):
        return s * jax.random.normal(k, shape, jnp.float32)

    def bn_init(k, ch):
        k1, k2, k3, k4 = jax.random.split(k, 4)
        gamma = 1.0 + 0.1 * jax.random.normal(k1, (ch,), jnp.float32)
        beta = 0.05 * jax.random.normal(k2, (ch,), jnp.float32)
        mean = 0.1 * jax.random.normal(k3, (ch,), jnp.float32)
        var = 0.5 + 0.5 * jax.random.uniform(k4, (ch,), jnp.float32)
        return gamma, beta, mean, var

    raw = {
        'conv1_w': nrm(ks[0], (CD, in_channels // C, 1, 1)),
        'conv2_w': nrm(ks[1], (CD, D, 3, 3)),
        'conv3_w': nrm(ks[2], (C4, CD, 1, 1)),
        'bn1': bn_init(ks[3], CD),
        'bn2': bn_init(ks[4], CD),
        'bn3': bn_init(ks[5], C4),
    }
    has_shortcut = (stride != 1) or (in_channels != C4)
    if has_shortcut:
        raw['shortcut_w'] = nrm(ks[6], (C4, in_channels, 1, 1))
        raw['bn_s'] = bn_init(ks[7], C4)
    else:
        raw['shortcut_w'] = None
        raw['bn_s'] = None

    # Dense / BN-folded weights.
    w1, b1 = _fold_bn(_grouped_1x1_to_dense(raw['conv1_w'], C), raw['bn1'])
    w2, b2 = _fold_bn(_grouped_3x3_to_dense(raw['conv2_w'], C), raw['bn2'])
    w3, b3 = _fold_bn(np.asarray(raw['conv3_w'])[:, :, 0, 0].T, raw['bn3'])

    # Lane padding to multiples of 128 + kx-tap fusion for the 3x3 conv.
    Cinp, CDp, C4p = _round_up(in_channels), _round_up(CD), _round_up(C4)
    w1p = _pad_to(w1, (Cinp, CDp))
    b1p = _pad_to(b1, (1, CDp))
    w2p = _pad_to(w2, (9, CDp, CDp))
    # w2f[ky] stacks the kx=0,1,2 tap matrices along K, matching the in-kernel
    # lane-concatenation order of hx.
    w2f = np.stack([np.concatenate([w2p[ky * 3 + kx] for kx in range(3)], axis=0)
                    for ky in range(3)])                    # (3, 3*CDp, CDp)
    b2p = _pad_to(b2, (1, CDp))
    w3p = _pad_to(w3, (CDp, C4p))
    b3p = _pad_to(b3, (1, C4p))

    kparams = {
        'w1': jnp.asarray(w1p, jnp.bfloat16), 'b1': jnp.asarray(b1p),
        'w2': jnp.asarray(w2f, jnp.bfloat16), 'b2': jnp.asarray(b2p),
        'w3': jnp.asarray(w3p, jnp.bfloat16), 'b3': jnp.asarray(b3p),
        'c4': C4, 'has_shortcut': has_shortcut,
    }
    if has_shortcut:
        ws, bs = _fold_bn(np.asarray(raw['shortcut_w'])[:, :, 0, 0].T, raw['bn_s'])
        kparams['ws'] = jnp.asarray(_pad_to(ws, (Cinp, C4p)), jnp.bfloat16)
        kparams['bs'] = jnp.asarray(_pad_to(bs, (1, C4p)))
    return raw, kparams


# -----------------------------------------------------------------------------
# Pure-JAX reference (exact PyTorch eval-mode semantics) for verification.
# -----------------------------------------------------------------------------
def _bn_ref(x, bn):
    gamma, beta, mean, var = bn
    inv = (gamma / jnp.sqrt(var + BN_EPS))[None, :, None, None]
    return (x - mean[None, :, None, None]) * inv + beta[None, :, None, None]


def reference_forward(x, raw, stride):
    dn = ('NCHW', 'OIHW', 'NCHW')
    y = lax.conv_general_dilated(x, raw['conv1_w'], (1, 1), 'VALID',
                                 feature_group_count=CARDINALITY,
                                 dimension_numbers=dn)
    y = jax.nn.relu(_bn_ref(y, raw['bn1']))
    y = lax.conv_general_dilated(y, raw['conv2_w'], (stride, stride),
                                 ((1, 1), (1, 1)),
                                 feature_group_count=CARDINALITY,
                                 dimension_numbers=dn)
    y = jax.nn.relu(_bn_ref(y, raw['bn2']))
    y = lax.conv_general_dilated(y, raw['conv3_w'], (1, 1), 'VALID',
                                 dimension_numbers=dn)
    y = _bn_ref(y, raw['bn3'])
    if raw['shortcut_w'] is not None:
        s = lax.conv_general_dilated(x, raw['shortcut_w'], (stride, stride),
                                     'VALID', dimension_numbers=dn)
        s = _bn_ref(s, raw['bn_s'])
    else:
        s = x
    return jax.nn.relu(y + s)


if __name__ == "__main__":
    key = jax.random.PRNGKey(0)
    N = 2

    # (in_channels, out_channels, stride, H, W, row_tile)
    #  - conv-shortcut, stride 1, 2 H-tiles
    #  - identity shortcut (no shortcut matmul), 4 H-tiles
    #  - conv-shortcut, stride 2, 2 H-tiles (exercises strided H-tiling)
    configs = [
        (32, 16, 1, 8, 8, 4),
        (64, 16, 1, 8, 8, 2),
        (64, 32, 2, 16, 16, 4),
    ]

    for i, (cin, cout, stride, H, W, row_tile) in enumerate(configs):
        kx, kp = jax.random.split(jax.random.fold_in(key, i))
        x = jax.random.normal(kx, (N, cin, H, W), jnp.float32)
        raw, kparams = make_params(kp, cin, cout, stride)

        out = resnext_bottleneck_c(x, kparams, stride, row_tile=row_tile)
        out = jax.block_until_ready(out)

        ref = reference_forward(x, raw, stride)
        assert out.shape == ref.shape, (out.shape, ref.shape)
        # bf16 matmul inputs (f32 accumulation) -> compare with a loose tolerance.
        np.testing.assert_allclose(np.asarray(out), np.asarray(ref),
                                   rtol=2e-2, atol=2e-2)
    print("KERNEL_OK")
</pallas_src>

<mosaic_0001>
module attributes {stable_mosaic.version = 11 : i64} {
  func.func @_block_kernel(%arg0: i32, %arg1: i32, %arg2: memref<1x10x10x128xbf16, #tpu.memory_space<vmem>>, %arg3: memref<128x128xbf16, #tpu.memory_space<vmem>>, %arg4: memref<1x128xf32, #tpu.memory_space<vmem>>, %arg5: memref<3x384x128xbf16, #tpu.memory_space<vmem>>, %arg6: memref<1x128xf32, #tpu.memory_space<vmem>>, %arg7: memref<128x128xbf16, #tpu.memory_space<vmem>>, %arg8: memref<1x128xf32, #tpu.memory_space<vmem>>, %arg9: memref<128x128xbf16, #tpu.memory_space<vmem>>, %arg10: memref<1x128xf32, #tpu.memory_space<vmem>>, %arg11: memref<1x4x8x128xf32, #tpu.memory_space<vmem>>) attributes {dimension_semantics = [#tpu.dimension_semantics<parallel>, #tpu.dimension_semantics<arbitrary>], iteration_bounds = array<i64: 2, 2>, scalar_prefetch = 0 : i64, scratch_operands = 0 : i64, tpu.core_type = #tpu.core_type<tc>, window_params = [{transform_indices = @transform_0, window_bounds = array<i64: 1, 10, 10, 128>}, {pipeline_mode = #tpu.pipeline_mode<synchronous>, transform_indices = @transform_1, window_bounds = array<i64: 128, 128>}, {pipeline_mode = #tpu.pipeline_mode<synchronous>, transform_indices = @transform_2, window_bounds = array<i64: 1, 128>}, {pipeline_mode = #tpu.pipeline_mode<synchronous>, transform_indices = @transform_3, window_bounds = array<i64: 3, 384, 128>}, {pipeline_mode = #tpu.pipeline_mode<synchronous>, transform_indices = @transform_4, window_bounds = array<i64: 1, 128>}, {pipeline_mode = #tpu.pipeline_mode<synchronous>, transform_indices = @transform_5, window_bounds = array<i64: 128, 128>}, {pipeline_mode = #tpu.pipeline_mode<synchronous>, transform_indices = @transform_6, window_bounds = array<i64: 1, 128>}, {pipeline_mode = #tpu.pipeline_mode<synchronous>, transform_indices = @transform_7, window_bounds = array<i64: 128, 128>}, {pipeline_mode = #tpu.pipeline_mode<synchronous>, transform_indices = @transform_8, window_bounds = array<i64: 1, 128>}, {transform_indices = @transform_9, window_bounds = array<i64: 1, 4, 8, 128>}]} {
    %c4_i32 = arith.constant 4 : i32
    %0 = arith.muli %arg1, %c4_i32 : i32
    %1 = tpu.assume_multiple %0, 4 : i32
    %c0 = arith.constant 0 : index
    %2 = arith.index_cast %1 : i32 to index
    %c0_0 = arith.constant 0 : index
    %c0_1 = arith.constant 0 : index
    %3 = vector.load %arg2[%c0, %2, %c0_0, %c0_1] : memref<1x10x10x128xbf16, #tpu.memory_space<vmem>>, vector<1x6x10x128xbf16>
    %4 = vector.shape_cast %3 : vector<1x6x10x128xbf16> to vector<6x10x128xbf16>
    %5 = vector.shape_cast %4 : vector<6x10x128xbf16> to vector<60x128xbf16>
    %c0_2 = arith.constant 0 : index
    %c0_3 = arith.constant 0 : index
    %6 = vector.load %arg3[%c0_2, %c0_3] : memref<128x128xbf16, #tpu.memory_space<vmem>>, vector<128x128xbf16>
    %cst = arith.constant dense<0.000000e+00> : vector<60x128xf32>
    %7 = tpu.matmul %5, %6, %cst {dimension_numbers = #tpu.dot_dimension_numbers<[1], [0], [0], [1], [0, 0, 1, 1], [], []>} : vector<60x128xbf16>, vector<128x128xbf16>, vector<60x128xf32> -> vector<60x128xf32>
    %c0_4 = arith.constant 0 : index
    %c0_5 = arith.constant 0 : index
    %8 = vector.load %arg4[%c0_4, %c0_5] : memref<1x128xf32, #tpu.memory_space<vmem>>, vector<1x128xf32>
    %9 = vector.broadcast %8 : vector<1x128xf32> to vector<60x128xf32>
    %10 = arith.addf %7, %9 : vector<60x128xf32>
    %cst_6 = arith.constant 0.000000e+00 : f32
    %11 = vector.broadcast %cst_6 : f32 to vector<60x128xf32>
    %12 = arith.maximumf %10, %11 : vector<60x128xf32>
    %13 = vector.shape_cast %12 : vector<60x128xf32> to vector<6x10x128xf32>
    %14 = arith.truncf %13 : vector<6x10x128xf32> to vector<6x10x128xbf16>
    %15 = tpu.iota {dimensions = array<i32: 1>} : vector<1x10x1xi32>
    %16 = tpu.iota {dimensions = array<i32: 0>} : vector<6x1x1xi32>
    %c1_i32 = arith.constant 1 : i32
    %17 = vector.broadcast %c1_i32 : i32 to vector<1x10x1xi32>
    %18 = arith.cmpi sge, %15, %17 : vector<1x10x1xi32>
    %c8_i32 = arith.constant 8 : i32
    %19 = vector.broadcast %c8_i32 : i32 to vector<1x10x1xi32>
    %20 = arith.cmpi sle, %15, %19 : vector<1x10x1xi32>
    %21 = arith.andi %18, %20 : vector<1x10x1xi1>
    %c1_i32_7 = arith.constant 1 : i32
    %22 = vector.broadcast %c1_i32_7 : i32 to vector<6x1x1xi32>
    %23 = arith.cmpi sge, %16, %22 : vector<6x1x1xi32>
    %c0_i32 = arith.constant 0 : i32
    %24 = arith.cmpi sgt, %arg1, %c0_i32 : i32
    %25 = vector.broadcast %24 : i1 to vector<6x1x1xi1>
    %26 = arith.ori %23, %25 : vector<6x1x1xi1>
    %27 = vector.broadcast %21 : vector<1x10x1xi1> to vector<6x10x1xi1>
    %28 = vector.broadcast %26 : vector<6x1x1xi1> to vector<6x10x1xi1>
    %29 = arith.andi %27, %28 : vector<6x10x1xi1>
    %c4_i32_8 = arith.constant 4 : i32
    %30 = vector.broadcast %c4_i32_8 : i32 to vector<6x1x1xi32>
    %31 = arith.cmpi sle, %16, %30 : vector<6x1x1xi32>
    %c1_i32_9 = arith.constant 1 : i32
    %32 = arith.cmpi slt, %arg1, %c1_i32_9 : i32
    %33 = vector.broadcast %32 : i1 to vector<6x1x1xi1>
    %34 = arith.ori %31, %33 : vector<6x1x1xi1>
    %35 = vector.broadcast %34 : vector<6x1x1xi1> to vector<6x10x1xi1>
    %36 = arith.andi %29, %35 : vector<6x10x1xi1>
    %c0_i32_10 = arith.constant 0 : i32
    %37 = arith.sitofp %c0_i32_10 : i32 to bf16
    %38 = vector.shape_cast %36 : vector<6x10x1xi1> to vector<6x10x1xi1>
    %39 = vector.broadcast %38 : vector<6x10x1xi1> to vector<6x10x128xi1>
    %40 = vector.broadcast %37 : bf16 to vector<6x10x128xbf16>
    %41 = arith.select %39, %14, %40 : vector<6x10x128xi1>, vector<6x10x128xbf16>
    %42 = vector.extract_strided_slice %41 {offsets = [0, 0, 0], sizes = [6, 8, 128], strides = [1, 1, 1]} : vector<6x10x128xbf16> to vector<6x8x128xbf16>
    %43 = vector.extract_strided_slice %41 {offsets = [0, 1, 0], sizes = [6, 8, 128], strides = [1, 1, 1]} : vector<6x10x128xbf16> to vector<6x8x128xbf16>
    %44 = vector.extract_strided_slice %41 {offsets = [0, 2, 0], sizes = [6, 8, 128], strides = [1, 1, 1]} : vector<6x10x128xbf16> to vector<6x8x128xbf16>
    %45 = tpu.concatenate %42, %43, %44 in 2 : vector<6x8x128xbf16>, vector<6x8x128xbf16>, vector<6x8x128xbf16> -> vector<6x8x384xbf16>
    %46 = vector.extract_strided_slice %45 {offsets = [0, 0, 0], sizes = [4, 8, 384], strides = [1, 1, 1]} : vector<6x8x384xbf16> to vector<4x8x384xbf16>
    %47 = vector.shape_cast %46 : vector<4x8x384xbf16> to vector<32x384xbf16>
    %c0_11 = arith.constant 0 : index
    %c0_12 = arith.constant 0 : index
    %c0_13 = arith.constant 0 : index
    %48 = vector.load %arg5[%c0_11, %c0_12, %c0_13] : memref<3x384x128xbf16, #tpu.memory_space<vmem>>, vector<1x384x128xbf16>
    %49 = vector.shape_cast %48 : vector<1x384x128xbf16> to vector<384x128xbf16>
    %cst_14 = arith.constant dense<0.000000e+00> : vector<32x128xf32>
    %50 = tpu.matmul %47, %49, %cst_14 {dimension_numbers = #tpu.dot_dimension_numbers<[1], [0], [0], [1], [0, 0, 1, 1], [], []>} : vector<32x384xbf16>, vector<384x128xbf16>, vector<32x128xf32> -> vector<32x128xf32>
    %51 = vector.extract_strided_slice %45 {offsets = [1, 0, 0], sizes = [4, 8, 384], strides = [1, 1, 1]} : vector<6x8x384xbf16> to vector<4x8x384xbf16>
    %52 = vector.shape_cast %51 : vector<4x8x384xbf16> to vector<32x384xbf16>
    %c1 = arith.constant 1 : index
    %c0_15 = arith.constant 0 : index
    %c0_16 = arith.constant 0 : index
    %53 = vector.load %arg5[%c1, %c0_15, %c0_16] : memref<3x384x128xbf16, #tpu.memory_space<vmem>>, vector<1x384x128xbf16>
    %54 = vector.shape_cast %53 : vector<1x384x128xbf16> to vector<384x128xbf16>
    %cst_17 = arith.constant dense<0.000000e+00> : vector<32x128xf32>
    %55 = tpu.matmul %52, %54, %cst_17 {dimension_numbers = #tpu.dot_dimension_numbers<[1], [0], [0], [1], [0, 0, 1, 1], [], []>} : vector<32x384xbf16>, vector<384x128xbf16>, vector<32x128xf32> -> vector<32x128xf32>
    %56 = arith.addf %50, %55 : vector<32x128xf32>
    %57 = vector.extract_strided_slice %45 {offsets = [2, 0, 0], sizes = [4, 8, 384], strides = [1, 1, 1]} : vector<6x8x384xbf16> to vector<4x8x384xbf16>
    %58 = vector.shape_cast %57 : vector<4x8x384xbf16> to vector<32x384xbf16>
    %c2 = arith.constant 2 : index
    %c0_18 = arith.constant 0 : index
    %c0_19 = arith.constant 0 : index
    %59 = vector.load %arg5[%c2, %c0_18, %c0_19] : memref<3x384x128xbf16, #tpu.memory_space<vmem>>, vector<1x384x128xbf16>
    %60 = vector.shape_cast %59 : vector<1x384x128xbf16> to vector<384x128xbf16>
    %cst_20 = arith.constant dense<0.000000e+00> : vector<32x128xf32>
    %61 = tpu.matmul %58, %60, %cst_20 {dimension_numbers = #tpu.dot_dimension_numbers<[1], [0], [0], [1], [0, 0, 1, 1], [], []>} : vector<32x384xbf16>, vector<384x128xbf16>, vector<32x128xf32> -> vector<32x128xf32>
    %62 = arith.addf %56, %61 : vector<32x128xf32>
    %c0_21 = arith.constant 0 : index
    %c0_22 = arith.constant 0 : index
    %63 = vector.load %arg6[%c0_21, %c0_22] : memref<1x128xf32, #tpu.memory_space<vmem>>, vector<1x128xf32>
    %64 = vector.broadcast %63 : vector<1x128xf32> to vector<32x128xf32>
    %65 = arith.addf %62, %64 : vector<32x128xf32>
    %cst_23 = arith.constant 0.000000e+00 : f32
    %66 = vector.broadcast %cst_23 : f32 to vector<32x128xf32>
    %67 = arith.maximumf %65, %66 : vector<32x128xf32>
    %68 = arith.truncf %67 : vector<32x128xf32> to vector<32x128xbf16>
    %c0_24 = arith.constant 0 : index
    %c0_25 = arith.constant 0 : index
    %69 = vector.load %arg7[%c0_24, %c0_25] : memref<128x128xbf16, #tpu.memory_space<vmem>>, vector<128x128xbf16>
    %cst_26 = arith.constant dense<0.000000e+00> : vector<32x128xf32>
    %70 = tpu.matmul %68, %69, %cst_26 {dimension_numbers = #tpu.dot_dimension_numbers<[1], [0], [0], [1], [0, 0, 1, 1], [], []>} : vector<32x128xbf16>, vector<128x128xbf16>, vector<32x128xf32> -> vector<32x128xf32>
    %c0_27 = arith.constant 0 : index
    %c0_28 = arith.constant 0 : index
    %71 = vector.load %arg8[%c0_27, %c0_28] : memref<1x128xf32, #tpu.memory_space<vmem>>, vector<1x128xf32>
    %72 = vector.broadcast %71 : vector<1x128xf32> to vector<32x128xf32>
    %73 = arith.addf %70, %72 : vector<32x128xf32>
    %74 = vector.extract_strided_slice %4 {offsets = [1, 0, 0], sizes = [4, 10, 128], strides = [1, 1, 1]} : vector<6x10x128xbf16> to vector<4x10x128xbf16>
    %75 = vector.extract_strided_slice %74 {offsets = [0, 1, 0], sizes = [4, 8, 128], strides = [1, 1, 1]} : vector<4x10x128xbf16> to vector<4x8x128xbf16>
    %76 = vector.shape_cast %75 : vector<4x8x128xbf16> to vector<32x128xbf16>
    %c0_29 = arith.constant 0 : index
    %c0_30 = arith.constant 0 : index
    %77 = vector.load %arg9[%c0_29, %c0_30] : memref<128x128xbf16, #tpu.memory_space<vmem>>, vector<128x128xbf16>
    %cst_31 = arith.constant dense<0.000000e+00> : vector<32x128xf32>
    %78 = tpu.matmul %76, %77, %cst_31 {dimension_numbers = #tpu.dot_dimension_numbers<[1], [0], [0], [1], [0, 0, 1, 1], [], []>} : vector<32x128xbf16>, vector<128x128xbf16>, vector<32x128xf32> -> vector<32x128xf32>
    %c0_32 = arith.constant 0 : index
    %c0_33 = arith.constant 0 : index
    %79 = vector.load %arg10[%c0_32, %c0_33] : memref<1x128xf32, #tpu.memory_space<vmem>>, vector<1x128xf32>
    %80 = vector.broadcast %79 : vector<1x128xf32> to vector<32x128xf32>
    %81 = arith.addf %78, %80 : vector<32x128xf32>
    %82 = arith.addf %73, %81 : vector<32x128xf32>
    %cst_34 = arith.constant 0.000000e+00 : f32
    %83 = vector.broadcast %cst_34 : f32 to vector<32x128xf32>
    %84 = arith.maximumf %82, %83 : vector<32x128xf32>
    %85 = vector.shape_cast %84 : vector<32x128xf32> to vector<4x8x128xf32>
    %c0_35 = arith.constant 0 : index
    %c0_36 = arith.constant 0 : index
    %c0_37 = arith.constant 0 : index
    %c0_38 = arith.constant 0 : index
    %86 = vector.load %arg11[%c0_35, %c0_36, %c0_37, %c0_38] : memref<1x4x8x128xf32, #tpu.memory_space<vmem>>, vector<1x4x8x128xf32>
    %87 = vector.shape_cast %86 : vector<1x4x8x128xf32> to vector<4x8x128xf32>
    %88 = vector.shape_cast %85 : vector<4x8x128xf32> to vector<1x4x8x128xf32>
    tpu.vector_store %arg11[%c0_35, %c0_36, %c0_37, %c0_38], %88 {strides = array<i32>} : memref<1x4x8x128xf32, #tpu.memory_space<vmem>>, vector<1x4x8x128xf32>,
    return
  }
  func.func @transform_0(%arg0: i32, %arg1: i32) -> (i32, i32, i32, i32) {
    %c0_i32 = arith.constant 0 : i32
    %c0_i32_0 = arith.constant 0 : i32
    %c0_i32_1 = arith.constant 0 : i32
    %c0_i32_2 = arith.constant 0 : i32
    return %arg0, %c0_i32, %c0_i32_0, %c0_i32_1 : i32, i32, i32, i32
  }
  func.func @transform_1(%arg0: i32, %arg1: i32) -> (i32, i32) {
    %c0_i32 = arith.constant 0 : i32
    %c0_i32_0 = arith.constant 0 : i32
    %c0_i32_1 = arith.constant 0 : i32
    return %c0_i32, %c0_i32_0 : i32, i32
  }
  func.func @transform_2(%arg0: i32, %arg1: i32) -> (i32, i32) {
    %c0_i32 = arith.constant 0 : i32
    %c0_i32_0 = arith.constant 0 : i32
    %c0_i32_1 = arith.constant 0 : i32
    return %c0_i32, %c0_i32_0 : i32, i32
  }
  func.func @transform_3(%arg0: i32, %arg1: i32) -> (i32, i32, i32) {
    %c0_i32 = arith.constant 0 : i32
    %c0_i32_0 = arith.constant 0 : i32
    %c0_i32_1 = arith.constant 0 : i32
    %c0_i32_2 = arith.constant 0 : i32
    return %c0_i32, %c0_i32_0, %c0_i32_1 : i32, i32, i32
  }
  func.func @transform_4(%arg0: i32, %arg1: i32) -> (i32, i32) {
    %c0_i32 = arith.constant 0 : i32
    %c0_i32_0 = arith.constant 0 : i32
    %c0_i32_1 = arith.constant 0 : i32
    return %c0_i32, %c0_i32_0 : i32, i32
  }
  func.func @transform_5(%arg0: i32, %arg1: i32) -> (i32, i32) {
    %c0_i32 = arith.constant 0 : i32
    %c0_i32_0 = arith.constant 0 : i32
    %c0_i32_1 = arith.constant 0 : i32
    return %c0_i32, %c0_i32_0 : i32, i32
  }
  func.func @transform_6(%arg0: i32, %arg1: i32) -> (i32, i32) {
    %c0_i32 = arith.constant 0 : i32
    %c0_i32_0 = arith.constant 0 : i32
    %c0_i32_1 = arith.constant 0 : i32
    return %c0_i32, %c0_i32_0 : i32, i32
  }
  func.func @transform_7(%arg0: i32, %arg1: i32) -> (i32, i32) {
    %c0_i32 = arith.constant 0 : i32
    %c0_i32_0 = arith.constant 0 : i32
    %c0_i32_1 = arith.constant 0 : i32
    return %c0_i32, %c0_i32_0 : i32, i32
  }
  func.func @transform_8(%arg0: i32, %arg1: i32) -> (i32, i32) {
    %c0_i32 = arith.constant 0 : i32
    %c0_i32_0 = arith.constant 0 : i32
    %c0_i32_1 = arith.constant 0 : i32
    return %c0_i32, %c0_i32_0 : i32, i32
  }
  func.func @transform_9(%arg0: i32, %arg1: i32) -> (i32, i32, i32, i32) {
    %c0_i32 = arith.constant 0 : i32
    %c0_i32_0 = arith.constant 0 : i32
    %c0_i32_1 = arith.constant 0 : i32
    return %arg0, %arg1, %c0_i32, %c0_i32_0 : i32, i32, i32, i32
  }
}

module attributes {stable_mosaic.version = 11 : i64} {
  func.func @_block_kernel(%arg0: i32, %arg1: i32, %arg2: memref<1x10x10x128xbf16, #tpu.memory_space<vmem>>, %arg3: memref<128x128xbf16, #tpu.memory_space<vmem>>, %arg4: memref<1x128xf32, #tpu.memory_space<vmem>>, %arg5: memref<3x384x128xbf16, #tpu.memory_space<vmem>>, %arg6: memref<1x128xf32, #tpu.memory_space<vmem>>, %arg7: memref<128x128xbf16, #tpu.memory_space<vmem>>, %arg8: memref<1x128xf32, #tpu.memory_space<vmem>>, %arg9: memref<128x128xbf16, #tpu.memory_space<vmem>>, %arg10: memref<1x128xf32, #tpu.memory_space<vmem>>, %arg11: memref<1x4x8x128xf32, #tpu.memory_space<vmem>>) attributes {dimension_semantics = [#tpu.dimension_semantics<parallel>, #tpu.dimension_semantics<arbitrary>], iteration_bounds = array<i64: 2, 2>, scalar_prefetch = 0 : i64, scratch_operands = 0 : i64, tpu.core_type = #tpu.core_type<tc>, window_params = [{transform_indices = @transform_0, window_bounds = array<i64: 1, 10, 10, 128>}, {pipeline_mode = #tpu.pipeline_mode<synchronous>, transform_indices = @transform_1, window_bounds = array<i64: 128, 128>}, {pipeline_mode = #tpu.pipeline_mode<synchronous>, transform_indices = @transform_2, window_bounds = array<i64: 1, 128>}, {pipeline_mode = #tpu.pipeline_mode<synchronous>, transform_indices = @transform_3, window_bounds = array<i64: 3, 384, 128>}, {pipeline_mode = #tpu.pipeline_mode<synchronous>, transform_indices = @transform_4, window_bounds = array<i64: 1, 128>}, {pipeline_mode = #tpu.pipeline_mode<synchronous>, transform_indices = @transform_5, window_bounds = array<i64: 128, 128>}, {pipeline_mode = #tpu.pipeline_mode<synchronous>, transform_indices = @transform_6, window_bounds = array<i64: 1, 128>}, {pipeline_mode = #tpu.pipeline_mode<synchronous>, transform_indices = @transform_7, window_bounds = array<i64: 128, 128>}, {pipeline_mode = #tpu.pipeline_mode<synchronous>, transform_indices = @transform_8, window_bounds = array<i64: 1, 128>}, {transform_indices = @transform_9, window_bounds = array<i64: 1, 4, 8, 128>}]} {
    %c4_i32 = arith.constant 4 : i32
    %0 = arith.muli %arg1, %c4_i32 : i32
    %1 = tpu.assume_multiple %0, 4 : i32
    %c0 = arith.constant 0 : index
    %2 = arith.index_cast %1 : i32 to index
    %c0_0 = arith.constant 0 : index
    %c0_1 = arith.constant 0 : index
    %3 = vector.load %arg2[%c0, %2, %c0_0, %c0_1] : memref<1x10x10x128xbf16, #tpu.memory_space<vmem>>, vector<1x6x10x128xbf16>
    %4 = vector.shape_cast %3 : vector<1x6x10x128xbf16> to vector<6x10x128xbf16>
    %5 = vector.shape_cast %4 : vector<6x10x128xbf16> to vector<60x128xbf16>
    %c0_2 = arith.constant 0 : index
    %c0_3 = arith.constant 0 : index
    %6 = vector.load %arg3[%c0_2, %c0_3] : memref<128x128xbf16, #tpu.memory_space<vmem>>, vector<128x128xbf16>
    %cst = arith.constant dense<0.000000e+00> : vector<60x128xf32>
    %7 = tpu.matmul %5, %6, %cst {dimension_numbers = #tpu.dot_dimension_numbers<[1], [0], [0], [1], [0, 0, 1, 1], [], []>} : vector<60x128xbf16>, vector<128x128xbf16>, vector<60x128xf32> -> vector<60x128xf32>
    %c0_4 = arith.constant 0 : index
    %c0_5 = arith.constant 0 : index
    %8 = vector.load %arg4[%c0_4, %c0_5] : memref<1x128xf32, #tpu.memory_space<vmem>>, vector<1x128xf32>
    %9 = vector.broadcast %8 : vector<1x128xf32> to vector<60x128xf32>
    %10 = arith.addf %7, %9 : vector<60x128xf32>
    %cst_6 = arith.constant 0.000000e+00 : f32
    %11 = vector.broadcast %cst_6 : f32 to vector<60x128xf32>
    %12 = arith.maximumf %10, %11 : vector<60x128xf32>
    %13 = vector.shape_cast %12 : vector<60x128xf32> to vector<6x10x128xf32>
    %14 = arith.truncf %13 : vector<6x10x128xf32> to vector<6x10x128xbf16>
    %15 = tpu.iota {dimensions = array<i32: 1>} : vector<1x10x1xi32>
    %16 = tpu.iota {dimensions = array<i32: 0>} : vector<6x1x1xi32>
    %c1_i32 = arith.constant 1 : i32
    %17 = vector.broadcast %c1_i32 : i32 to vector<1x10x1xi32>
    %18 = arith.cmpi sge, %15, %17 : vector<1x10x1xi32>
    %c8_i32 = arith.constant 8 : i32
    %19 = vector.broadcast %c8_i32 : i32 to vector<1x10x1xi32>
    %20 = arith.cmpi sle, %15, %19 : vector<1x10x1xi32>
    %21 = arith.andi %18, %20 : vector<1x10x1xi1>
    %c1_i32_7 = arith.constant 1 : i32
    %22 = vector.broadcast %c1_i32_7 : i32 to vector<6x1x1xi32>
    %23 = arith.cmpi sge, %16, %22 : vector<6x1x1xi32>
    %c0_i32 = arith.constant 0 : i32
    %24 = arith.cmpi sgt, %arg1, %c0_i32 : i32
    %25 = vector.broadcast %24 : i1 to vector<6x1x1xi1>
    %26 = arith.ori %23, %25 : vector<6x1x1xi1>
    %27 = vector.broadcast %21 : vector<1x10x1xi1> to vector<6x10x1xi1>
    %28 = vector.broadcast %26 : vector<6x1x1xi1> to vector<6x10x1xi1>
    %29 = arith.andi %27, %28 : vector<6x10x1xi1>
    %c4_i32_8 = arith.constant 4 : i32
    %30 = vector.broadcast %c4_i32_8 : i32 to vector<6x1x1xi32>
    %31 = arith.cmpi sle, %16, %30 : vector<6x1x1xi32>
    %c1_i32_9 = arith.constant 1 : i32
    %32 = arith.cmpi slt, %arg1, %c1_i32_9 : i32
    %33 = vector.broadcast %32 : i1 to vector<6x1x1xi1>
    %34 = arith.ori %31, %33 : vector<6x1x1xi1>
    %35 = vector.broadcast %34 : vector<6x1x1xi1> to vector<6x10x1xi1>
    %36 = arith.andi %29, %35 : vector<6x10x1xi1>
    %c0_i32_10 = arith.constant 0 : i32
    %37 = arith.sitofp %c0_i32_10 : i32 to bf16
    %38 = vector.shape_cast %36 : vector<6x10x1xi1> to vector<6x10x1xi1>
    %39 = vector.broadcast %38 : vector<6x10x1xi1> to vector<6x10x128xi1>
    %40 = vector.broadcast %37 : bf16 to vector<6x10x128xbf16>
    %41 = arith.select %39, %14, %40 : vector<6x10x128xi1>, vector<6x10x128xbf16>
    %42 = vector.extract_strided_slice %41 {offsets = [0, 0, 0], sizes = [6, 8, 128], strides = [1, 1, 1]} : vector<6x10x128xbf16> to vector<6x8x128xbf16>
    %43 = vector.extract_strided_slice %41 {offsets = [0, 1, 0], sizes = [6, 8, 128], strides = [1, 1, 1]} : vector<6x10x128xbf16> to vector<6x8x128xbf16>
    %44 = vector.extract_strided_slice %41 {offsets = [0, 2, 0], sizes = [6, 8, 128], strides = [1, 1, 1]} : vector<6x10x128xbf16> to vector<6x8x128xbf16>
    %45 = tpu.concatenate %42, %43, %44 in 2 : vector<6x8x128xbf16>, vector<6x8x128xbf16>, vector<6x8x128xbf16> -> vector<6x8x384xbf16>
    %46 = vector.extract_strided_slice %45 {offsets = [0, 0, 0], sizes = [4, 8, 384], strides = [1, 1, 1]} : vector<6x8x384xbf16> to vector<4x8x384xbf16>
    %47 = vector.shape_cast %46 : vector<4x8x384xbf16> to vector<32x384xbf16>
    %c0_11 = arith.constant 0 : index
    %c0_12 = arith.constant 0 : index
    %c0_13 = arith.constant 0 : index
    %48 = vector.load %arg5[%c0_11, %c0_12, %c0_13] : memref<3x384x128xbf16, #tpu.memory_space<vmem>>, vector<1x384x128xbf16>
    %49 = vector.shape_cast %48 : vector<1x384x128xbf16> to vector<384x128xbf16>
    %cst_14 = arith.constant dense<0.000000e+00> : vector<32x128xf32>
    %50 = tpu.matmul %47, %49, %cst_14 {dimension_numbers = #tpu.dot_dimension_numbers<[1], [0], [0], [1], [0, 0, 1, 1], [], []>} : vector<32x384xbf16>, vector<384x128xbf16>, vector<32x128xf32> -> vector<32x128xf32>
    %51 = vector.extract_strided_slice %45 {offsets = [1, 0, 0], sizes = [4, 8, 384], strides = [1, 1, 1]} : vector<6x8x384xbf16> to vector<4x8x384xbf16>
    %52 = vector.shape_cast %51 : vector<4x8x384xbf16> to vector<32x384xbf16>
    %c1 = arith.constant 1 : index
    %c0_15 = arith.constant 0 : index
    %c0_16 = arith.constant 0 : index
    %53 = vector.load %arg5[%c1, %c0_15, %c0_16] : memref<3x384x128xbf16, #tpu.memory_space<vmem>>, vector<1x384x128xbf16>
    %54 = vector.shape_cast %53 : vector<1x384x128xbf16> to vector<384x128xbf16>
    %cst_17 = arith.constant dense<0.000000e+00> : vector<32x128xf32>
    %55 = tpu.matmul %52, %54, %cst_17 {dimension_numbers = #tpu.dot_dimension_numbers<[1], [0], [0], [1], [0, 0, 1, 1], [], []>} : vector<32x384xbf16>, vector<384x128xbf16>, vector<32x128xf32> -> vector<32x128xf32>
    %56 = arith.addf %50, %55 : vector<32x128xf32>
    %57 = vector.extract_strided_slice %45 {offsets = [2, 0, 0], sizes = [4, 8, 384], strides = [1, 1, 1]} : vector<6x8x384xbf16> to vector<4x8x384xbf16>
    %58 = vector.shape_cast %57 : vector<4x8x384xbf16> to vector<32x384xbf16>
    %c2 = arith.constant 2 : index
    %c0_18 = arith.constant 0 : index
    %c0_19 = arith.constant 0 : index
    %59 = vector.load %arg5[%c2, %c0_18, %c0_19] : memref<3x384x128xbf16, #tpu.memory_space<vmem>>, vector<1x384x128xbf16>
    %60 = vector.shape_cast %59 : vector<1x384x128xbf16> to vector<384x128xbf16>
    %cst_20 = arith.constant dense<0.000000e+00> : vector<32x128xf32>
    %61 = tpu.matmul %58, %60, %cst_20 {dimension_numbers = #tpu.dot_dimension_numbers<[1], [0], [0], [1], [0, 0, 1, 1], [], []>} : vector<32x384xbf16>, vector<384x128xbf16>, vector<32x128xf32> -> vector<32x128xf32>
    %62 = arith.addf %56, %61 : vector<32x128xf32>
    %c0_21 = arith.constant 0 : index
    %c0_22 = arith.constant 0 : index
    %63 = vector.load %arg6[%c0_21, %c0_22] : memref<1x128xf32, #tpu.memory_space<vmem>>, vector<1x128xf32>
    %64 = vector.broadcast %63 : vector<1x128xf32> to vector<32x128xf32>
    %65 = arith.addf %62, %64 : vector<32x128xf32>
    %cst_23 = arith.constant 0.000000e+00 : f32
    %66 = vector.broadcast %cst_23 : f32 to vector<32x128xf32>
    %67 = arith.maximumf %65, %66 : vector<32x128xf32>
    %68 = arith.truncf %67 : vector<32x128xf32> to vector<32x128xbf16>
    %c0_24 = arith.constant 0 : index
    %c0_25 = arith.constant 0 : index
    %69 = vector.load %arg7[%c0_24, %c0_25] : memref<128x128xbf16, #tpu.memory_space<vmem>>, vector<128x128xbf16>
    %cst_26 = arith.constant dense<0.000000e+00> : vector<32x128xf32>
    %70 = tpu.matmul %68, %69, %cst_26 {dimension_numbers = #tpu.dot_dimension_numbers<[1], [0], [0], [1], [0, 0, 1, 1], [], []>} : vector<32x128xbf16>, vector<128x128xbf16>, vector<32x128xf32> -> vector<32x128xf32>
    %c0_27 = arith.constant 0 : index
    %c0_28 = arith.constant 0 : index
    %71 = vector.load %arg8[%c0_27, %c0_28] : memref<1x128xf32, #tpu.memory_space<vmem>>, vector<1x128xf32>
    %72 = vector.broadcast %71 : vector<1x128xf32> to vector<32x128xf32>
    %73 = arith.addf %70, %72 : vector<32x128xf32>
    %74 = vector.extract_strided_slice %4 {offsets = [1, 0, 0], sizes = [4, 10, 128], strides = [1, 1, 1]} : vector<6x10x128xbf16> to vector<4x10x128xbf16>
    %75 = vector.extract_strided_slice %74 {offsets = [0, 1, 0], sizes = [4, 8, 128], strides = [1, 1, 1]} : vector<4x10x128xbf16> to vector<4x8x128xbf16>
    %76 = vector.shape_cast %75 : vector<4x8x128xbf16> to vector<32x128xbf16>
    %c0_29 = arith.constant 0 : index
    %c0_30 = arith.constant 0 : index
    %77 = vector.load %arg9[%c0_29, %c0_30] : memref<128x128xbf16, #tpu.memory_space<vmem>>, vector<128x128xbf16>
    %cst_31 = arith.constant dense<0.000000e+00> : vector<32x128xf32>
    %78 = tpu.matmul %76, %77, %cst_31 {dimension_numbers = #tpu.dot_dimension_numbers<[1], [0], [0], [1], [0, 0, 1, 1], [], []>} : vector<32x128xbf16>, vector<128x128xbf16>, vector<32x128xf32> -> vector<32x128xf32>
    %c0_32 = arith.constant 0 : index
    %c0_33 = arith.constant 0 : index
    %79 = vector.load %arg10[%c0_32, %c0_33] : memref<1x128xf32, #tpu.memory_space<vmem>>, vector<1x128xf32>
    %80 = vector.broadcast %79 : vector<1x128xf32> to vector<32x128xf32>
    %81 = arith.addf %78, %80 : vector<32x128xf32>
    %82 = arith.addf %73, %81 : vector<32x128xf32>
    %cst_34 = arith.constant 0.000000e+00 : f32
    %83 = vector.broadcast %cst_34 : f32 to vector<32x128xf32>
    %84 = arith.maximumf %82, %83 : vector<32x128xf32>
    %85 = vector.shape_cast %84 : vector<32x128xf32> to vector<4x8x128xf32>
    %c0_35 = arith.constant 0 : index
    %c0_36 = arith.constant 0 : index
    %c0_37 = arith.constant 0 : index
    %c0_38 = arith.constant 0 : index
    %86 = vector.load %arg11[%c0_35, %c0_36, %c0_37, %c0_38] : memref<1x4x8x128xf32, #tpu.memory_space<vmem>>, vector<1x4x8x128xf32>
    %87 = vector.shape_cast %86 : vector<1x4x8x128xf32> to vector<4x8x128xf32>
    %88 = vector.shape_cast %85 : vector<4x8x128xf32> to vector<1x4x8x128xf32>
    tpu.vector_store %arg11[%c0_35, %c0_36, %c0_37, %c0_38], %88 {strides = array<i32>} : memref<1x4x8x128xf32, #tpu.memory_space<vmem>>, vector<1x4x8x128xf32>,
    return
  }
  func.func @transform_0(%arg0: i32, %arg1: i32) -> (i32, i32, i32, i32) {
    %c0_i32 = arith.constant 0 : i32
    %c0_i32_0 = arith.constant 0 : i32
    %c0_i32_1 = arith.constant 0 : i32
    %c0_i32_2 = arith.constant 0 : i32
    return %arg0, %c0_i32, %c0_i32_0, %c0_i32_1 : i32, i32, i32, i32
  }
  func.func @transform_1(%arg0: i32, %arg1: i32) -> (i32, i32) {
    %c0_i32 = arith.constant 0 : i32
    %c0_i32_0 = arith.constant 0 : i32
    %c0_i32_1 = arith.constant 0 : i32
    return %c0_i32, %c0_i32_0 : i32, i32
  }
  func.func @transform_2(%arg0: i32, %arg1: i32) -> (i32, i32) {
    %c0_i32 = arith.constant 0 : i32
    %c0_i32_0 = arith.constant 0 : i32
    %c0_i32_1 = arith.constant 0 : i32
    return %c0_i32, %c0_i32_0 : i32, i32
  }
  func.func @transform_3(%arg0: i32, %arg1: i32) -> (i32, i32, i32) {
    %c0_i32 = arith.constant 0 : i32
    %c0_i32_0 = arith.constant 0 : i32
    %c0_i32_1 = arith.constant 0 : i32
    %c0_i32_2 = arith.constant 0 : i32
    return %c0_i32, %c0_i32_0, %c0_i32_1 : i32, i32, i32
  }
  func.func @transform_4(%arg0: i32, %arg1: i32) -> (i32, i32) {
    %c0_i32 = arith.constant 0 : i32
    %c0_i32_0 = arith.constant 0 : i32
    %c0_i32_1 = arith.constant 0 : i32
    return %c0_i32, %c0_i32_0 : i32, i32
  }
  func.func @transform_5(%arg0: i32, %arg1: i32) -> (i32, i32) {
    %c0_i32 = arith.constant 0 : i32
    %c0_i32_0 = arith.constant 0 : i32
    %c0_i32_1 = arith.constant 0 : i32
    return %c0_i32, %c0_i32_0 : i32, i32
  }
  func.func @transform_6(%arg0: i32, %arg1: i32) -> (i32, i32) {
    %c0_i32 = arith.constant 0 : i32
    %c0_i32_0 = arith.constant 0 : i32
    %c0_i32_1 = arith.constant 0 : i32
    return %c0_i32, %c0_i32_0 : i32, i32
  }
  func.func @transform_7(%arg0: i32, %arg1: i32) -> (i32, i32) {
    %c0_i32 = arith.constant 0 : i32
    %c0_i32_0 = arith.constant 0 : i32
    %c0_i32_1 = arith.constant 0 : i32
    return %c0_i32, %c0_i32_0 : i32, i32
  }
  func.func @transform_8(%arg0: i32, %arg1: i32) -> (i32, i32) {
    %c0_i32 = arith.constant 0 : i32
    %c0_i32_0 = arith.constant 0 : i32
    %c0_i32_1 = arith.constant 0 : i32
    return %c0_i32, %c0_i32_0 : i32, i32
  }
  func.func @transform_9(%arg0: i32, %arg1: i32) -> (i32, i32, i32, i32) {
    %c0_i32 = arith.constant 0 : i32
    %c0_i32_0 = arith.constant 0 : i32
    %c0_i32_1 = arith.constant 0 : i32
    return %arg0, %arg1, %c0_i32, %c0_i32_0 : i32, i32, i32, i32
  }
}

</mosaic_0001>

<bundles_post_ra>
// kernel: tpu_custom_call.1
= control target key start
LH: loop header
LB: loop body
LE: loop exit
PB: predicated region body
PF: predicated region fallthrough
CT: control target
= control target key end

     0   :  { %14 = vsyncpa [#allocation3], 0  ;;  %s4126_s0 = inlined_call_operand.vmem [shape: bf16[2,10,10,128], index: 0, kind: input, shape index: {}]   ;;  %s4127_s1 = inlined_call_operand.vmem [shape: bf16[128,128], index: 1, kind: input, shape index: {}]   ;;  %s4128_s2 = inlined_call_operand.vmem [shape: f32[1,128], index: 2, kind: input, shape index: {}]   ;;  %s4129_s3 = inlined_call_operand.hbm [shape: bf16[3,384,128], index: 3, kind: input, shape index: {}]   ;;  %s4130_s4 = inlined_call_operand.vmem [shape: f32[1,128], index: 4, kind: input, shape index: {}]   ;;  %s4131_s5 = inlined_call_operand.vmem [shape: bf16[128,128], index: 5, kind: input, shape index: {}]   ;;  %s4132_s6 = inlined_call_operand.vmem [shape: f32[1,128], index: 6, kind: input, shape index: {}]   ;;  %s4133_s7 = inlined_call_operand.vmem [shape: bf16[128,128], index: 7, kind: input, shape index: {}]   ;;  %s4134_s8 = inlined_call_operand.vmem [shape: f32[1,128], index: 8, kind: input, shape index: {}]   ;;  %s4135_s9 = inlined_call_operand.hbm [shape: f32[2,8,8,128], index: 9, kind: output, shape index: {}]  }
   0x1   :  { %15 = vsyncpa [#allocation4], 0 }
   0x2   :  { %17 = vsyncpa [#allocation4 + $0x1], 0  ;;  %s3585_s30 = smov 0   ;;  %s3587_s10 = smov 0  }
   0x3   :  { %s3589_s11 = smov 0   ;;  %s3591_s12 = smov 0  }
   0x4   :  { %s3593_s13 = smov 0   ;;  %s3595_s14 = smov 0  }
   0x5   :  { %s3597_s15 = smov 0   ;;  %s3599_s16 = smov 0  }
   0x6 LB: > { %4144 = sst [smem:[#allocation8_spill]] %s3516_s14  ;;  %s2747_s17 = sadd.s32 4294967295, %s3524_s16   ;;  %s3524_s16 = sphi %s3599_s16, %s23_s16   ;;  %s3520_s15 = sphi %s3597_s15, %s4172_s15   ;;  %s3516_s14 = sphi %s3595_s14, %s4171_s14   ;;  %s3512_s13 = sphi %s3593_s13, %s4170_s13   ;;  %s3508_s12 = sphi %s3591_s12, %s4169_s12   ;;  %s3504_s11 = sphi %s3589_s11, %s4175_s11   ;;  %s3500_s10 = sphi %s3587_s10, %s4174_s10   ;;  %s3496_s30 = sphi %s3585_s30, %s4173_s30  }
   0x7   : > { %4145 = sst [smem:[#allocation9_spill]] %s3520_s15  ;;  %s2748_s18 = sadd.s32 4294967294, %s3524_s16  }
   0x8   : > { %s32_s19 = sadd.s32 1, %s3516_s14  ;;  %s35_s20 = sadd.s32 1, %s3520_s15 }
   0x9   : > { %p33_p0 = scmp.ge.s32.totalorder %s32_s19, 2  ;;  %s238_s21 = sadd.s32 1, %s3504_s11 }
   0xa   : > { %p248_p1 = scmp.ne.s32.totalorder %s3504_s11, %s3500_s10  ;;  %p249_p2 = scmp.eq.s32.totalorder %s2747_s17, 3 }
   0xb   : > { %s4177_s19 = smov (%p33_p0, %s32_s19), 0  ;;  %s4179_s20 = smov (!%p33_p0, %s35_s20), %s3520_s15 }
   0xc   : > { %4146 = sst [smem:[#allocation10_spill]] %s4177_s19  ;;  %s234_s22 = ssub.s32 %s3516_s14, %s4177_s19 }
   0xd   : > { %p3637_p3 = por %p249_p2, %p248_p1  ;;  %p37_p4 = scmp.ge.s32.totalorder %s4179_s20, 2 }
   0xe   : > { %p254_p5 = scmp.ne.s32.totalorder %s3500_s10, %s3496_s30  ;;  %p255_p6 = scmp.eq.s32.totalorder %s2748_s18, 3 }
   0xf   : > { %s4147_s23 = scalar_select %p3637_p3, 1, 0 }
  0x10   : > { %p2749_p7 = scmp.ge.s32.totalorder %s3524_s16, 1  ;;  %s4181_s20 = smov (%p37_p4, %s4179_s20), 0 }
  0x11   : > { %4148 = sst [smem:[#allocation11_spill]] %s4181_s20  ;;  %p3646_p8 = por %p255_p6, %p254_p5 }
  0x12   : > { %p262_p9 = scmp.lt.s32.totalorder %s3524_s16, 5  ;;  %s233_s25 = ssub.s32 %s3520_s15, %s4181_s20 }
  0x13   : > { %s4149_s24 = scalar_select %p3646_p8, 1, 0 }
  0x14   : > { %s235_s26 = sor.u32 %s234_s22, %s233_s25  ;;  %p3653_p10 = pnand %p2749_p7, %p262_p9 }
  0x15   : > { %p236_p11 = scmp.eq.s32.totalorder %s235_s26, 0  ;;  %p3657_p12 = scmp.eq.s32.totalorder %s2747_s17, 0 }
  0x16   : > { %s4150_s27 = scalar_select %p3653_p10, 1, 0 }
  0x17   : > { %s4151_s28 = scalar_select %p3657_p12, 1, 0 }
  0x18   : > { %p3203_p13 = pneg %p3653_p10  ;;  %s3526_s18 = smov [#allocation2]  }
  0x19   : > { %s3664_s29 = scalar_select %p236_p11, %s3504_s11, %s238_s21  }
  0x1a   : > { %s280_s19 = sshll.u32 %s3526_s18, 4  ;;  %p3668_p0 = pnand %p3657_p12, %p3203_p13  ;;  %s281_s19 = int_to_ptr.vmem [resolvable:$true] %s280_s19 }
  0x1b   : > { %s3398_s17 = scalar_lea.hbm %s4129_s3, 9216 }
  0x1c   : > { %p3399_p1 = scmp.ne.s32.totalorder %s4129_s3, %s3398_s17  ;;  %p3400_p2 = pneg %p3668_p0 }
  0x1d   : > { %p3405_p6 = scmp.lt.u32.totalorder %s3398_s17, %s4129_s3 }
  0x1e   : > { %p3401_p4 = pnand %p3400_p2, %p3399_p1 }
  0x20   : > { %p3402_p5 = pneg %p3401_p4 }
  0x22   : > { %p3407_p7 = pnand %p3405_p6, %p3402_p5 }
  0x24   : > { %3410 = shalt.err (!%p3407_p7)
}
  0x25   : > { %s3411_s14 = scalar_lea.vmem %s281_s19, 9216  ;;  %p3419_p8 = scmp.lt.s32.totalorder %s281_s19, %s281_s19 }
  0x26   : > { %p3412_p9 = scmp.ne.s32.totalorder %s281_s19, %s3411_s14  ;;  %p3420_p3 = scmp.lt.s32.totalorder %s3411_s14, %s3411_s14 }
  0x28   : > { %p3414_p11 = pnand %p3412_p9, %p3400_p2  ;;  %p3421_p12 = por %p3420_p3, %p3419_p8 }
  0x2a   : > { %p3415_p13 = pneg %p3414_p11 }
  0x2c   : > { %p3422_p10 = pnand %p3421_p12, %p3415_p13 }
  0x2e   : > { %3425 = shalt.err (!%p3422_p10)
}
  0x2f   : > { %s3527_s15 = smov 64   ;;  %s3528_s20 = smov 4  }
  0x30   : > { %3206 = dma.hbm_to_vmem [thread:$0]  (!%p3668_p0), %s4129_s3, 9216, %s281_s19, [#allocation3], %s3527_s15, %s3527_s15, %s3528_s20  }
  0x31   : > { %p4153_p1 = scmp.ne.s32.totalorder %s4150_s27, 0 }
  0x32   : > { %p4154_p4 = scmp.ne.s32.totalorder (!%p4153_p1), %s4151_s28, 0 }
  0x33   : > { %319 = sbr.rel (%p4153_p1) target bundleno = 905 (0x389), region = 56 }
  0x3a   : > { %3487 = dma.done.wait (%p4154_p4), [#allocation3], 9216  }
  0x3b   : > { %3489 = vsyncadd (%p4154_p4), [#allocation3], 4294958080  ;;  %p355_p3 = scmp.lt.s32.totalorder %s3512_s13, 1  ;;  %v3529_v0 = vmov 1966171168   ;;  %v403_v2 = vlaneseq  ;;  %v3286_v3 = vld [vmem:[%s4127_s1] sm:$0xff]  }
  0x3c   : > { %v401_v1 = vunpack.c.l.s4 %v3529_v0  ;;  %v3287_v4 = vld [vmem:[%s4127_s1 + $0x8] sm:$0xff]   ;;  %3040 = vmatprep.subr.bf16.mxu0 %v3286_v3  ;;  %s2893_s20 = sshll.u32 %s3508_s12, 5  ;;  %v3288_v7 = vld [vmem:[%s4127_s1 + $0x10] sm:$0xff]   ;;  %v3289_v9 = vld [vmem:[%s4127_s1 + $0x18] sm:$0xff]   ;;  %p1275_p8 = scmp.lt.s32.totalorder %s3508_s12, 1 }
  0x3d   : > { %s356_s14 = scalar_select %p355_p3, %s3512_s13, 1  ;;  %v3702_v6 = vshrl.u32 %v403_v2, 7  ;;  %3041 = vmatpush3.bf16.msra.mxu0 %v3286_v3  ;;  %v3290_v24 = vld [vmem:[%s4127_s1 + $0x20] sm:$0xff]   ;;  %v3291_v30 = vld [vmem:[%s4127_s1 + $0x28] sm:$0xff]   ;;  %v3292_v51 = vld [vmem:[%s4127_s1 + $0x30] sm:$0xff]  }
  0x3e   : > { %v402_v5 = vunpack.c.0.s8 %v401_v1  ;;  %3042 = vmatprep.subr.bf16.mxu0 %v3287_v4  ;;  %v3294_v35 = vld [vmem:[#allocation2 + $0x100] sm:$0xff]   ;;  %v3293_v3 = vld [vmem:[%s4127_s1 + $0x38] sm:$0xff]   ;;  %s1276_s26 = scalar_select %p1275_p8, 1, 0 }
  0x3f   : > { %s3196_s22 = smul.u32 80, %s356_s14  ;;  %2906 = vmatprep.subr.bf16.mxu1 %v3294_v35  ;;  %vm1255_vm0 = vcmp.ge.s32.totalorder %v3702_v6, 1  ;;  %p1261_p10 = scmp.gt.s32.totalorder %s3508_s12, 0 }
  0x40   : > { %v3714_v8 = vsub.s32 %v402_v5, %v3702_v6  ;;  %vm1299_vm8 = vmpackc.low %vm1255_vm0, %vm1255_vm0  ;;  %s2887_s25 = sshll.u32 %s3508_s12, 2  ;;  %p4167_p0 = scmp.ne.s32.totalorder %s4147_s23, 0 }
  0x41   : > { %s359_s15 = scalar_lea.vmem %s4126_s0, %s3196_s22  ;;  %3043 = vmatpush3.bf16.msra.mxu0 %v3287_v4 }
  0x42   : > { %s3711_s14 = scalar_lea.vmem %s359_s15, %s2893_s20  ;;  %3044 = vmatprep.subr.bf16.mxu0 %v3288_v7  ;;  %s3532_s15 = smov [#allocation5]  }
  0x43   : > { %v2759_v10 = vld.sshfl [vmem:[%s3711_s14] sm:$0x33 pattern:$0x75316420]  ;;  %s1262_s22 = scalar_select %p1261_p10, 1, 0 }
  0x44   : > { %v3390_v11 = vld.sshfl [vmem:[%s3711_s14 + $0x8] sm:$0x33 pattern:$0x75316420]  ;;  %v399_v13 = vcombine.high %v2759_v10, %v2759_v10  ;;  %v406_v14 = vrot.slane %v2759_v10, %v3714_v8  ;;  %s3430_s20 = sshll.u32 %s3532_s15, 4  ;;  %s3431_s20 = int_to_ptr.vmem [resolvable:$false] %s3430_s20 }
  0x45   : > { %v2760_v12 = vld.sshfl [vmem:[%s3711_s14 + $0x4] sm:$0x1 pattern:$0x75316420]  ;;  %3045 = vmatpush3.bf16.msra.mxu0 %v3288_v7  ;;  %v437_v21 = vcombine.high %v3390_v11, %v3390_v11  ;;  %v444_v22 = vrot.slane %v3390_v11, %v3714_v8 }
  0x46   : > { %v3391_v15 = vld.sshfl [vmem:[%s3711_s14 + $0xc] sm:$0x1 pattern:$0x75316420]  ;;  %v429_v16 = vrot.slane %v2760_v12, %v3714_v8  ;;  %v413_v20 = vrot.slane %v399_v13, %v3714_v8  ;;  %3046 = vmatprep.subr.bf16.mxu0 %v3289_v9 }
  0x47   : > { %v3392_v17 = vld.sshfl [vmem:[%s3711_s14 + $0x10] sm:$0x33 pattern:$0x75316420]  ;;  %v467_v25 = vrot.slane %v3391_v15, %v3714_v8  ;;  %v451_v26 = vrot.slane %v437_v21, %v3714_v8  ;;  %v452_v27 = vcombine.high %v444_v22, %v444_v22 }
  0x48   : > { %v3393_v18 = vld.sshfl [vmem:[%s3711_s14 + $0x14] sm:$0x1 pattern:$0x75316420]  ;;  %v643_v28 = vcombine.low %v406_v14, %v413_v20  ;;  %v2764_v29 = vcombine.high %v406_v14, %v413_v20  ;;  %v645_v31 = vcombine.low %v429_v16, %v444_v22  ;;  %v475_v32 = vcombine.high %v3392_v17, %v3392_v17 }
  0x49   : > { %v3394_v19 = vld.sshfl [vmem:[%s3711_s14 + $0x18] sm:$0x33 pattern:$0x75316420]  ;;  %v482_v33 = vrot.slane %v3392_v17, %v3714_v8  ;;  %v505_v34 = vrot.slane %v3393_v18, %v3714_v8  ;;  %3047 = vmatpush3.bf16.msra.mxu0 %v3289_v9  ;;  %v453_v36 = vcombine.high %v451_v26, %v451_v26  ;;  %v646_v37 = vcombine.low %v451_v26, %v452_v27 }
  0x4a   : > { %v3395_v23 = vld.sshfl [vmem:[%s3711_s14 + $0x1c] sm:$0x1 pattern:$0x75316420]  ;;  %v653_v38 = vrot.slane %v643_v28, %v3714_v8  ;;  %v660_v39 = vrot.slane %v2764_v29, %v3714_v8  ;;  %3048 = vmatprep.subr.bf16.mxu0 %v3290_v24  ;;  %v667_v40 = vrot.slane %v645_v31, %v3714_v8  ;;  %v489_v41 = vrot.slane %v475_v32, %v3714_v8 }
  0x4b   : > { %v520_v42 = vrot.slane %v3394_v19, %v3714_v8  ;;  %v3396_v43 = vld.sshfl [vmem:[%s3711_s14 + $0x20] sm:$0x33 pattern:$0x75316420]  ;;  %v513_v44 = vcombine.high %v3394_v19, %v3394_v19  ;;  %v674_v46 = vrot.slane %v646_v37, %v3714_v8  ;;  %v692_v48 = vcombine.low %v453_v36, %v467_v25 }
  0x4c   : > { %v3397_v45 = vld.sshfl [vmem:[%s3711_s14 + $0x24] sm:$0x1 pattern:$0x75316420]  ;;  %v675_v47 = vcombine.low %v653_v38, %v660_v39  ;;  %v543_v49 = vrot.slane %v3395_v23, %v3714_v8  ;;  %v693_v52 = vcombine.low %v482_v33, %v489_v41  ;;  %v2765_v53 = vcombine.high %v482_v33, %v489_v41 }
  0x4d   : > { %v2761_v50 = vld.sshfl [vmem:[%s3711_s14 + $0x28] sm:$0x33 pattern:$0x75316420]  ;;  %v695_v54 = vcombine.low %v505_v34, %v520_v42  ;;  %v527_v55 = vrot.slane %v513_v44, %v3714_v8  ;;  %3049 = vmatpush3.bf16.msra.mxu0 %v3290_v24  ;;  %v676_v56 = vcombine.low %v667_v40, %v674_v46  ;;  %v702_v58 = vrot.slane %v692_v48, %v3714_v8  ;;  %v3295_v44 = vld [vmem:[#allocation2 + $0xc0] sm:$0xff]  }
  0x4e   : > { %v683_v57 = vrot.slane %v675_v47, %v3714_v8  ;;  %v528_v59 = vcombine.high %v520_v42, %v520_v42  ;;  %3050 = vmatprep.subr.bf16.mxu0 %v3291_v30  ;;  %v709_v60 = vrot.slane %v693_v52, %v3714_v8  ;;  %v716_v61 = vrot.slane %v2765_v53, %v3714_v8  ;;  %v2762_v0 = vld.sshfl [vmem:[%s3711_s14 + $0x2c] sm:$0x1 pattern:$0x75316420]  ;;  %v3304_v52 = vld [vmem:[#allocation2 + $0xd8] sm:$0xff]  }
  0x4f   : > { %v723_v62 = vrot.slane %v695_v54, %v3714_v8  ;;  %v529_v63 = vcombine.high %v527_v55, %v527_v55  ;;  %v690_v1 = vrot.slane %v676_v56, %v3714_v8  ;;  %v589_v9 = vcombine.high %v2761_v50, %v2761_v50  ;;  %2907 = vmatpush3.bf16.msra.mxu1 %v3295_v44  ;;  %v3297_v46 = vld [vmem:[#allocation2 + $0x108] sm:$0xff]   ;;  %v3305_v53 = vld [vmem:[#allocation2 + $0x158] sm:$0xff]   ;;  %v3306_v54 = vld [vmem:[#allocation2 + $0x120] sm:$0xff]  }
  0x50   : > { %v741_v2 = vcombine.low %v527_v55, %v528_v59  ;;  %v724_v4 = vcombine.low %v702_v58, %v709_v60  ;;  %v551_v11 = vcombine.high %v3396_v43, %v3396_v43  ;;  %v558_v12 = vrot.slane %v3396_v43, %v3714_v8  ;;  %v3298_v47 = vld [vmem:[#allocation2 + $0xc8] sm:$0xff]   ;;  %2908 = vmatprep.subr.bf16.mxu1 %v3297_v46  ;;  %v3307_v56 = vld [vmem:[#allocation2 + $0xe0] sm:$0xff]  }
  0x51   : > { %v725_v5 = vcombine.low %v716_v61, %v723_v62  ;;  %v742_v7 = vcombine.low %v529_v63, %v543_v49  ;;  %3051 = vmatpush3.bf16.msra.mxu0 %v3291_v30  ;;  %v691_v10 = vcombine.low %v683_v57, %v690_v1  ;;  %v581_v15 = vrot.slane %v3397_v45, %v3714_v8  ;;  %v3296_v45 = vld [vmem:[#allocation2 + $0x140] sm:$0xff]   ;;  %v3299_v48 = vld [vmem:[#allocation2 + $0x148] sm:$0xff]   ;;  %v3300_v49 = vld [vmem:[#allocation2 + $0x110] sm:$0xff]  }
  0x52   : > { %v751_v13 = vrot.slane %v741_v2, %v3714_v8  ;;  %3052 = vmatprep.subr.bf16.mxu0 %v3292_v51  ;;  %v565_v16 = vrot.slane %v551_v11, %v3714_v8  ;;  %v596_v17 = vrot.slane %v2761_v50, %v3714_v8  ;;  %v603_v18 = vrot.slane %v589_v9, %v3714_v8  ;;  %v3301_v50 = vld [vmem:[#allocation2 + $0xd0] sm:$0xff]   ;;  %v3308_v58 = vld [vmem:[#allocation2 + $0x160] sm:$0xff]   ;;  %v3309_v59 = vld [vmem:[#allocation2 + $0x128] sm:$0xff]  }
  0x53   : > { %v758_v14 = vrot.slane %v742_v7, %v3714_v8  ;;  %3056 = vmatprep.mubr.bf16.mxu0 %v691_v10  ;;  %v619_v19 = vrot.slane %v2762_v0, %v3714_v8  ;;  %v732_v20 = vrot.slane %v724_v4, %v3714_v8  ;;  %v739_v21 = vrot.slane %v725_v5, %v3714_v8  ;;  %v3310_v60 = vld [vmem:[#allocation2 + $0xe8] sm:$0xff]   ;;  %v3312_v0 = vld [vmem:[#allocation2 + $0x130] sm:$0xff]   ;;  %v3315_v5 = vld [vmem:[#allocation2 + $0x138] sm:$0xff]  }
  0x54   : > { %v743_v23 = vcombine.low %v558_v12, %v565_v16  ;;  %v2766_v24 = vcombine.high %v558_v12, %v565_v16  ;;  %v604_v25 = vcombine.high %v596_v17, %v596_v17  ;;  %v605_v26 = vcombine.high %v603_v18, %v603_v18  ;;  %2909 = vmatpush3.bf16.msra.mxu1 %v3298_v47  ;;  %v3311_v61 = vld [vmem:[#allocation2 + $0x168] sm:$0xff]   ;;  %v3313_v2 = vld [vmem:[#allocation2 + $0xf0] sm:$0xff]   ;;  %v3316_v7 = vld [vmem:[#allocation2 + $0xf8] sm:$0xff]  }
  0x55   : > { %v773_v22 = vcombine.low %v751_v13, %v758_v14  ;;  %3053 = vmatpush3.bf16.msra.mxu0 %v3292_v51  ;;  %v790_v27 = vcombine.low %v581_v15, %v596_v17  ;;  %v740_v32 = vcombine.low %v732_v20, %v739_v21  ;;  %2910 = vmatprep.subr.bf16.mxu1 %v3300_v49  ;;  %v3303_v51 = vld [vmem:[#allocation2 + $0x118] sm:$0xff]   ;;  %v1254_v55 = vadd.s32 8, %v3702_v6  ;;  %v3314_v4 = vld [vmem:[#allocation2 + $0x170] sm:$0xff]   ;;  %v3318_v10 = vld [vmem:[#allocation2 + $0x40] sm:$0xff]  }
  0x56   : > { %3054 = vmatprep.subr.bf16.mxu0 %v3293_v3  ;;  %v765_v28 = vrot.slane %v743_v23, %v3714_v8  ;;  %v772_v29 = vrot.slane %v2766_v24, %v3714_v8  ;;  %v791_v30 = vcombine.low %v603_v18, %v604_v25  ;;  %v792_v31 = vcombine.low %v605_v26, %v619_v19  ;;  %v3317_v9 = vld [vmem:[#allocation2 + $0x178] sm:$0xff]   ;;  %v3796_v11 = vld [vmem:[#allocation2 + $0x80] sm:$0xff]  }
  0x57   : > { %v799_v33 = vrot.slane %v790_v27, %v3714_v8  ;;  %v781_v35 = vrot.slane %v773_v22, %v3714_v8  ;;  %v1277_v57 = vstv %s1276_s26  ;;  %vm1258_vm2 = vcmp.le.s32.totalorder %v1254_v55, 8  ;;  %v3817_v18 = vld [vmem:[%s4128_s2] ss:$0 sm:$0xff]  ;;  %s2888_s26 = sshll.u32 %s3512_s13, 3 }
  0x58   : > { %v774_v34 = vcombine.low %v765_v28, %v772_v29  ;;  %v806_v36 = vrot.slane %v791_v30, %v3714_v8  ;;  %v813_v37 = vrot.slane %v792_v31, %v3714_v8  ;;  %2911 = vmatpush3.bf16.msra.mxu1 %v3301_v50  ;;  %vm1278_vm1 = vcmp.eq.s32.totalorder %v1277_v57, 1  ;;  %vm1300_vm11 = vmpackc.low %vm1258_vm2, %vm1258_vm2 }
  0x59   : > { %3055 = vmatpush3.bf16.msra.mxu0 %v3293_v3  ;;  %2912 = vmatprep.subr.bf16.mxu1 %v3303_v51  ;;  %vm1283_vm3 = vmand %vm1255_vm0, %vm1278_vm1  ;;  %v3530_v62 = vmov 0   ;;  %v1263_v12 = vstv %s1262_s22  ;;  %v3531_v13 = vmov 1983009808   ;;  %s2654_s22 = sadd.s32 %s2888_s26, %s2887_s25  ;;  %s3432_s25 = scalar_lea.vmem %s3431_s20, 1024 }
  0x5a   : > { %v788_v38 = vrot.slane %v774_v34, %v3714_v8  ;;  %v814_v39 = vcombine.low %v799_v33, %v806_v36  ;;  %v828_v40 = vrot.slane %v813_v37, %v3714_v8  ;;  %3064 = vmatprep.subr.bf16.mxu0 %v3296_v45  ;;  %vm1284_vm4 = vmand %vm1258_vm2, %vm1278_vm1  ;;  %v965_v14 = vunpack.c.l.s4 %v3531_v13  ;;  %s2889_s27 = sshll.u32 %s2654_s22, 7 }
  0x5b   : > { %vm1301_vm5 = vmpackc.low %vm1283_vm3, %vm1283_vm3  ;;  %vm1264_vm7 = vcmp.eq.s32.totalorder %v1263_v12, 1  ;;  %v1305_v25 = vsel %vm1299_vm8, 65537, %v3530_v62  ;;  %v1306_v26 = vsel %vm1300_vm11, 65537, %v3530_v62  ;;  %vm2442_vm1 = vsmask.f32 3328 }
  0x5c   : > { %3057 = vmatmul.mubr.bf16.vlgmr.msra.gmra.mrb[0].mxu0 %v740_v32  ;;  %v789_v41 = vcombine.low %v781_v35, %v788_v38  ;;  %v821_v42 = vrot.slane %v814_v39, %v3714_v8  ;;  %v3302_v8 = vld [vmem:[#allocation2 + $0x150] sm:$0xff]   ;;  %2913 = vmatpush3.bf16.msra.mxu1 %v3304_v52  ;;  %vm1302_vm6 = vmpackc.low %vm1284_vm4, %vm1284_vm4  ;;  %v3790_v63 = vsel %vm1301_vm5, 65537, %v3530_v62  ;;  %v966_v16 = vunpack.c.0.s8 %v965_v14 }
  0x5d   : > { %3065 = vmatpush3.bf16.msra.mxu0 %v3296_v45  ;;  %2914 = vmatprep.subr.bf16.mxu1 %v3306_v54  ;;  %v3792_v1 = vsel %vm1302_vm6, 65537, %v3530_v62  ;;  %vm3805_vm9 = vmand %vm1255_vm0, %vm1264_vm7  ;;  %v2776_v36 = vcombine.low %v1305_v25, %v1306_v26 }
  0x5e   : > { %3060 = vmatprep.mubr.bf16.mxu0 %v789_v41  ;;  %v829_v43 = vcombine.low %v821_v42, %v828_v40  ;;  %3066 = vmatprep.subr.bf16.mxu0 %v3299_v48  ;;  %v2777_v3 = vcombine.low %v3790_v63, %v3792_v1  ;;  %vm3810_vm10 = vmand %vm1258_vm2, %vm1264_vm7  ;;  %v3829_v21 = vsub.s32 %v966_v16, %v3702_v6  ;;  %vm2443_vm2 = vsmask.f32 7440 }
  0x5f   : > { %vm1297_vm12 = vmpackc.low %vm3805_vm9, %vm3805_vm9  ;;  %vm3841_vm14 = vcmp.ne.s16.totalorder %v2776_v36, 0 }
  0x60   : > { %2915 = vmatpush3.bf16.msra.mxu1 %v3307_v56  ;;  %vm1298_vm13 = vmpackc.low %vm3810_vm10, %vm3810_vm10  ;;  %v1303_v30 = vsel %vm1297_vm12, 65537, %v3530_v62  ;;  %vm3882_vm0 = vcmp.ne.s16.totalorder %v2777_v3, 0 }
  0x61   : > { %3067 = vmatpush3.bf16.msra.mxu0 %v3299_v48  ;;  %2916 = vmatprep.subr.bf16.mxu1 %v3309_v59  ;;  %v1304_v31 = vsel %vm1298_vm13, 65537, %v3530_v62  ;;  %vm4016_vm3 = vmor %vm2442_vm1, %vm2443_vm2 }
  0x62   : > { %3068 = vmatprep.subr.bf16.mxu0 %v3302_v8  ;;  %v2775_v40 = vcombine.low %v1303_v30, %v1304_v31 }
  0x64   : > { %3061 = vmatmul.mubr.bf16.gmra.mrb[4].mxu0 %v829_v43  ;;  %2917 = vmatpush3.bf16.msra.mxu1 %v3310_v60  ;;  %vm3847_vm15 = vcmp.ne.s16.totalorder %v2775_v40, 0 }
  0x65   : > { %3069 = vmatpush3.bf16.msra.mxu0 %v3302_v8  ;;  %2918 = vmatprep.subr.bf16.mxu1 %v3312_v0 }
  0x66   : > { %3070 = vmatprep.subr.bf16.mxu0 %v3305_v53 }
  0x68   : > { %2919 = vmatpush3.bf16.msra.mxu1 %v3313_v2 }
  0x69   : > { %3071 = vmatpush3.bf16.msra.mxu0 %v3305_v53  ;;  %2920 = vmatprep.subr.bf16.mxu1 %v3315_v5 }
  0x6a   : > { %3072 = vmatprep.subr.bf16.mxu0 %v3308_v58 }
  0x6c   : > { %2921 = vmatpush3.bf16.msra.mxu1 %v3316_v7 }
  0x6d   : > { %3073 = vmatpush3.bf16.msra.mxu0 %v3308_v58  ;;  %2944 = vmatprep.subr.bf16.mxu1 %v3318_v10 }
  0x6e   : > { %3074 = vmatprep.subr.bf16.mxu0 %v3311_v61 }
  0x71   : > { %3075 = vmatpush3.bf16.msra.mxu0 %v3311_v61 }
  0x72   : > { %3076 = vmatprep.subr.bf16.mxu0 %v3314_v4 }
  0x75   : > { %3077 = vmatpush3.bf16.msra.mxu0 %v3314_v4 }
  0x76   : > { %3078 = vmatprep.subr.bf16.mxu0 %v3317_v9 }
  0x79   : > { %3079 = vmatpush3.bf16.msra.mxu0 %v3317_v9 }
  0x7a   : > { %3084 = vmatprep.subr.bf16.mxu0 %v3796_v11 }
 0x12f   : > { %v3058_v19 = vpop.f32.mrb[0].mxu0 }
 0x130   : > { %v925_v20 = vadd.f32 %v3058_v19, %v3817_v18  ;;  %v916_v22 = vpop.f32.mrb[1].mxu0 }
 0x131   : > { %v917_v23 = vadd.f32 %v3817_v18, %v916_v22  ;;  %v3059_v24 = vpop.f32.mrb[2].mxu0 }
 0x132   : > { %v949_v27 = vmax.f32 %v925_v20, 0.0  ;;  %v928_v28 = vadd.f32 %v3059_v24, %v3817_v18  ;;  %v919_v29 = vpop.f32.mrb[3].mxu0 }
 0x133   : > { %v947_v32 = vmax.f32 %v917_v23, 0.0  ;;  %v920_v33 = vadd.f32 %v3817_v18, %v919_v29 }
 0x134   : > { %v997_v34 = vcombine.high %v949_v27, %v949_v27  ;;  %v1004_v35 = vrot.slane %v949_v27, %v3829_v21  ;;  %v950_v6 = vmax.f32 %v928_v28, 0.0 }
 0x135   : > { %v963_v37 = vcombine.high %v947_v32, %v947_v32  ;;  %v970_v38 = vrot.slane %v947_v32, %v3829_v21  ;;  %v948_v39 = vmax.f32 %v920_v33, 0.0 }
 0x136   : > { %v1011_v41 = vrot.slane %v997_v34, %v3829_v21  ;;  %v1012_v42 = vcombine.high %v1004_v35, %v1004_v35  ;;  %v1014_v43 = vcombine.high %v950_v6, %v950_v6  ;;  %v1021_v44 = vrot.slane %v950_v6, %v3829_v21 }
 0x137   : > { %v977_v45 = vrot.slane %v963_v37, %v3829_v21  ;;  %v978_v46 = vcombine.high %v970_v38, %v970_v38  ;;  %v980_v47 = vcombine.high %v948_v39, %v948_v39  ;;  %v987_v48 = vrot.slane %v948_v39, %v3829_v21  ;;  %v3062_v49 = vpop.f32.mrb[4].mxu0 }
 0x138   : > { %v1013_v50 = vcombine.high %v1011_v41, %v1011_v41  ;;  %v1028_v8 = vrot.slane %v1014_v43, %v3829_v21  ;;  %v1029_v51 = vcombine.high %v1021_v44, %v1021_v44  ;;  %v932_v53 = vpop.f32.mrb[5].mxu0  ;;  %v1137_v59 = vrot.slane %v1012_v42, %v3829_v21 }
 0x139   : > { %v979_v54 = vcombine.high %v977_v45, %v977_v45  ;;  %v1090_v55 = vcombine.low %v970_v38, %v978_v46  ;;  %v994_v56 = vrot.slane %v980_v47, %v3829_v21  ;;  %v995_v57 = vcombine.high %v987_v48, %v987_v48  ;;  %v3063_v58 = vpop.f32.mrb[6].mxu0 }
 0x13a   : > { %v1138_v60 = vcombine.low %v1011_v41, %v1013_v50  ;;  %v1139_v61 = vcombine.low %v1021_v44, %v1029_v51  ;;  %v935_v0 = vpop.f32.mrb[7].mxu0  ;;  %v1161_v4 = vrot.slane %v1028_v8, %v3829_v21  ;;  %v941_v12 = vadd.f32 %v3062_v49, %v3817_v18 }
 0x13b   : > { %v1091_v2 = vcombine.low %v977_v45, %v979_v54  ;;  %v996_v5 = vcombine.high %v994_v56, %v994_v56  ;;  %v1114_v7 = vcombine.low %v995_v57, %v994_v56  ;;  %v933_v13 = vadd.f32 %v3817_v18, %v932_v53 }
 0x13c   : > { %v1146_v9 = vrot.slane %v1138_v60, %v3829_v21  ;;  %v1153_v10 = vrot.slane %v1139_v61, %v3829_v21  ;;  %v1098_v14 = vrot.slane %v1090_v55, %v3829_v21  ;;  %v1113_v16 = vrot.slane %v987_v48, %v3829_v21 }
 0x13d   : > { %v1105_v15 = vrot.slane %v1091_v2, %v3829_v21  ;;  %v1115_v17 = vcombine.low %v996_v5, %v1004_v35  ;;  %v953_v20 = vmax.f32 %v941_v12, 0.0  ;;  %v951_v22 = vmax.f32 %v933_v13, 0.0 }
 0x13e   : > { %v1154_v19 = vcombine.low %v1146_v9, %v1153_v10  ;;  %v944_v23 = vadd.f32 %v3063_v58, %v3817_v18  ;;  %v1122_v25 = vrot.slane %v1114_v7, %v3829_v21  ;;  %v936_v27 = vadd.f32 %v3817_v18, %v935_v0 }
 0x13f   : > { %v1106_v24 = vcombine.low %v1098_v14, %v1105_v15  ;;  %v1129_v26 = vrot.slane %v1115_v17, %v3829_v21  ;;  %v1065_v29 = vcombine.high %v953_v20, %v953_v20  ;;  %v3864_v30 = vrot.slane %v953_v20, %v3829_v21 }
 0x140   : > { %v1248_v28 = vpack.c.bf16 %v1161_v4, %v1154_v19  ;;  %v1031_v31 = vcombine.high %v951_v22, %v951_v22  ;;  %v1038_v34 = vrot.slane %v951_v22, %v3829_v21  ;;  %v954_v35 = vmax.f32 %v944_v23, 0.0 }
 0x141   : > { %v1130_v32 = vcombine.low %v1122_v25, %v1129_v26  ;;  %v1246_v33 = vpack.c.bf16 %v1113_v16, %v1106_v24  ;;  %v1079_v36 = vrot.slane %v1065_v29, %v3829_v21  ;;  %v1080_v18 = vcombine.high %v3864_v30, %v3864_v30 }
 0x142   : > { %v3869_v6 = vsel %vm3841_vm14, %v1248_v28, 0  ;;  %v1030_v37 = vcombine.high %v1028_v8, %v1028_v8  ;;  %v1045_v40 = vrot.slane %v1031_v31, %v3829_v21  ;;  %v1046_v41 = vcombine.high %v1038_v34, %v1038_v34 }
 0x143   : > { %v1247_v38 = vpack.c.bf16 %v1137_v59, %v1130_v32  ;;  %v3876_v39 = vsel %vm3847_vm15, %v1246_v33, 0  ;;  %v1210_v43 = vcombine.low %v1080_v18, %v1079_v36  ;;  %v1081_v45 = vcombine.high %v1079_v36, %v1079_v36 }
 0x144   : > { %v1162_v44 = vcombine.low %v1030_v37, %v1038_v34  ;;  %v1088_v46 = vrot.slane %v954_v35, %v3829_v21  ;;  %v1047_v47 = vcombine.high %v1045_v40, %v1045_v40  ;;  %v1163_v48 = vcombine.low %v1046_v41, %v1045_v40 }
 0x145   : > { %v952_v49 = vmax.f32 %v936_v27, 0.0  ;;  %v3889_v50 = vsel %vm3841_vm14, %v1247_v38, 0  ;;  %v1218_v8 = vrot.slane %v1210_v43, %v3829_v21  ;;  %v1377_v59 = vrot.slane %v3869_v6, 1  ;;  %v3319_v38 = vld [vmem:[#allocation2] sm:$0xff]  }
 0x146   : > { %v1170_v63 = vrot.slane %v1162_v44, %v3829_v21  ;;  %v1089_v1 = vcombine.high %v1088_v46, %v1088_v46  ;;  %v1211_v3 = vcombine.low %v1081_v45, %v1088_v46  ;;  %v1177_v51 = vrot.slane %v1163_v48, %v3829_v21  ;;  %v3322_v48 = vld [vmem:[#allocation2 + $0x8] sm:$0xff]  }
 0x147   : > { %v1185_v53 = vrot.slane %v1047_v47, %v3829_v21  ;;  %v1048_v54 = vcombine.high %v952_v49, %v952_v49  ;;  %v1055_v55 = vrot.slane %v952_v49, %v3829_v21  ;;  %v1376_v58 = vrot.slane %v3889_v50, 1 }
 0x148   : > { %v1225_v56 = vrot.slane %v1211_v3, %v3829_v21  ;;  %v1233_v57 = vrot.slane %v1089_v1, %v3829_v21  ;;  %v1178_v60 = vcombine.low %v1170_v63, %v1177_v51  ;;  %v1335_v0 = vshrl.u32 %v3889_v50, 16  ;;  %v3324_v3 = vld [vmem:[#allocation2 + $0x50] sm:$0xff]  }
 0x149   : > { %v1062_v61 = vrot.slane %v1048_v54, %v3829_v21  ;;  %v1063_v62 = vcombine.high %v1055_v55, %v1055_v55  ;;  %v2780_v4 = vcombine.low %v1376_v58, %v1377_v59  ;;  %v1337_v5 = vshll.u32 %v3889_v50, 16 }
 0x14a   : > { %v1226_v2 = vcombine.low %v1218_v8, %v1225_v56  ;;  %v1342_v7 = vshrl.u32 %v3869_v6, 16  ;;  %v1249_v9 = vpack.c.bf16 %v1185_v53, %v1178_v60  ;;  %v1344_v13 = vshll.u32 %v3869_v6, 16  ;;  %v3323_v56 = vld [vmem:[#allocation2 + $0x88] sm:$0xff]   ;;  %v3325_v60 = vld [vmem:[#allocation2 + $0x10] sm:$0xff]  }
 0x14b   : > { %v1064_v10 = vcombine.high %v1062_v61, %v1062_v61  ;;  %v1186_v12 = vcombine.low %v1055_v55, %v1063_v62  ;;  %3080 = vmatprep.mubr.bf16.mxu0 %v2780_v4  ;;  %v1339_v15 = vrot.slane %v1337_v5, 1  ;;  %v2778_v16 = vcombine.low %v3889_v50, %v3869_v6  ;;  %v3327_v62 = vld [vmem:[#allocation2 + $0x58] sm:$0xff]   ;;  %v3326_v4 = vld [vmem:[#allocation2 + $0x90] sm:$0xff]  }
 0x14c   : > { %v1251_v14 = vpack.c.bf16 %v1233_v57, %v1226_v2  ;;  %v1375_v17 = vrot.slane %v3876_v39, 1  ;;  %v3910_v19 = vsel %vm3841_vm14, %v1249_v9, 0  ;;  %v1346_v23 = vrot.slane %v1344_v13, 1  ;;  %v3330_v9 = vld [vmem:[#allocation2 + $0x60] sm:$0xff]  }
 0x14d   : > { %v1187_v20 = vcombine.low %v1062_v61, %v1064_v10  ;;  %v1194_v22 = vrot.slane %v1186_v12, %v3829_v21  ;;  %v3917_v25 = vor.u32 %v1339_v15, %v1335_v0  ;;  %v1378_v26 = vrot.slane %v3910_v19, 1  ;;  %v3329_v10 = vld [vmem:[#allocation2 + $0x98] sm:$0xff]   ;;  %v3333_v12 = vld [vmem:[#allocation2 + $0x68] sm:$0xff]   ;;  %v3332_v13 = vld [vmem:[#allocation2 + $0xa0] sm:$0xff]  }
 0x14e   : > { %v3915_v24 = vsel %vm3882_vm0, %v1251_v14, 0  ;;  %v2810_v27 = vcombine.low %v1375_v17, %v1376_v58  ;;  %v1209_v28 = vrot.slane %v3864_v30, %v3829_v21  ;;  %v1347_v31 = vor.u32 %v1346_v23, %v1342_v7  ;;  %v3321_v30 = vld [vmem:[#allocation2 + $0x48] sm:$0xff]   ;;  %v3328_v7 = vld [vmem:[#allocation2 + $0x18] sm:$0xff]   ;;  %v3336_v15 = vld [vmem:[#allocation2 + $0x70] sm:$0xff]  }
 0x14f   : > { %v1201_v29 = vrot.slane %v1187_v20, %v3829_v21  ;;  %v1351_v32 = vshll.u32 %v3910_v19, 16  ;;  %v1349_v33 = vshrl.u32 %v3910_v19, 16  ;;  %v1330_v34 = vshll.u32 %v3876_v39, 16  ;;  %v3334_v14 = vld [vmem:[#allocation2 + $0x28] sm:$0xff]   ;;  %v3337_v17 = vld [vmem:[#allocation2 + $0x30] sm:$0xff]   ;;  %v3342_v23 = vld [vmem:[#allocation2 + $0x1c0] sm:$0xff]  }
 0x150   : > { %v2808_v35 = vcombine.low %v3876_v39, %v3889_v50  ;;  %v3928_v36 = vcombine.low %v1377_v59, %v1378_v26  ;;  %v2779_v37 = vcombine.low %v3917_v25, %v1347_v31  ;;  %v3933_v21 = vcombine.low %v3869_v6, %v3910_v19  ;;  %v3338_v20 = vld [vmem:[#allocation2 + $0xb0] sm:$0xff]   ;;  %v3352_v50 = vld [vmem:[#allocation2 + $0x198] sm:$0xff]  }
 0x151   : > { %v1202_v18 = vcombine.low %v1194_v22, %v1201_v29  ;;  %v1353_v40 = vrot.slane %v1351_v32, 1  ;;  %v1332_v41 = vrot.slane %v1330_v34, 1  ;;  %v1365_v42 = vshll.u32 %v3915_v24, 16  ;;  %v3340_v22 = vld [vmem:[#allocation2 + $0x38] sm:$0xff]   ;;  %v3346_v29 = vld [vmem:[#allocation2 + $0x188] sm:$0xff]  }
 0x152   : > { %1681 = vmatprep.mubr.bf16.mxu1 %v2779_v37  ;;  %v1328_v45 = vshrl.u32 %v3876_v39, 16  ;;  %v1380_v46 = vrot.slane %v3915_v24, 1  ;;  %v1363_v8 = vshrl.u32 %v3915_v24, 16  ;;  %v3347_v32 = vld [vmem:[#allocation2 + $0x208] sm:$0xff]   ;;  %v3351_v34 = vld [vmem:[#allocation2 + $0x1d8] sm:$0xff]   ;;  %v3350_v39 = vld [vmem:[#allocation2 + $0x210] sm:$0xff]  }
 0x153   : > { %v1250_v43 = vpack.c.bf16 %v1209_v28, %v1202_v18  ;;  %v1354_v44 = vor.u32 %v1353_v40, %v1349_v33  ;;  %1682 = vmatmul.mubr.bf16.vlgmr.msra.gmra.mrb[0].mxu1 %v2778_v16  ;;  %v1367_v53 = vrot.slane %v1365_v42, 1  ;;  %v3335_v16 = vld [vmem:[#allocation2 + $0xa8] sm:$0xff]   ;;  %v3344_v28 = vld [vmem:[#allocation2 + $0x200] sm:$0xff]   ;;  %v3349_v33 = vld [vmem:[#allocation2 + $0x190] sm:$0xff]  }
 0x154   : > { %2945 = vmatpush3.bf16.msra.mxu1 %v3319_v38  ;;  %v1333_v6 = vor.u32 %v1332_v41, %v1328_v45  ;;  %v3353_v18 = vld [vmem:[#allocation2 + $0x218] sm:$0xff]   ;;  %v3355_v37 = vld [vmem:[#allocation2 + $0x1a0] sm:$0xff]   ;;  %v3357_v38 = vld [vmem:[#allocation2 + $0x1e8] sm:$0xff]  }
 0x155   : > { %v3940_v47 = vsel %vm3841_vm14, %v1250_v43, 0  ;;  %v3942_v49 = vcombine.low %v1347_v31, %v1354_v44  ;;  %2946 = vmatprep.subr.bf16.mxu1 %v3321_v30  ;;  %v3957_v0 = vor.u32 %v1367_v53, %v1363_v8  ;;  %v3348_v31 = vld [vmem:[#allocation2 + $0x1d0] sm:$0xff]   ;;  %v3358_v40 = vld [vmem:[#allocation2 + $0x1a8] sm:$0xff]   ;;  %v3363_v43 = vld [vmem:[#allocation2 + $0x1f8] sm:$0xff]  }
 0x156   : > { %v1379_v63 = vrot.slane %v3940_v47, 1  ;;  %v1358_v1 = vshll.u32 %v3940_v47, 16  ;;  %v2781_v51 = vcombine.low %v3910_v19, %v3940_v47  ;;  %v2809_v52 = vcombine.low %v1333_v6, %v3917_v25  ;;  %v3339_v19 = vld [vmem:[#allocation2 + $0x78] sm:$0xff]   ;;  %v3360_v30 = vld [vmem:[#allocation2 + $0x1f0] sm:$0xff]   ;;  %v3359_v41 = vld [vmem:[#allocation2 + $0x228] sm:$0xff]  }
 0x157   : > { %v2838_v54 = vcombine.low %v3940_v47, %v3915_v24  ;;  %v1356_v57 = vshrl.u32 %v3940_v47, 16  ;;  %v3341_v25 = vld [vmem:[#allocation2 + $0xb8] sm:$0xff]   ;;  %v3361_v42 = vld [vmem:[#allocation2 + $0x1b0] sm:$0xff]   ;;  %v3367_v6 = vld [vmem:[%s4131_s5 + $0x8] sm:$0xff]  }
 0x158   : > { %v2783_v55 = vcombine.low %v1378_v26, %v1379_v63  ;;  %v1360_v58 = vrot.slane %v1358_v1, 1  ;;  %v3953_v59 = vcombine.low %v1379_v63, %v1380_v46  ;;  %2947 = vmatpush3.bf16.msra.mxu1 %v3322_v48  ;;  %v3343_v26 = vld [vmem:[#allocation2 + $0x180] sm:$0xff]   ;;  %v3364_v45 = vld [vmem:[#allocation2 + $0x1b8] sm:$0xff]   ;;  %v3372_v8 = vld [vmem:[%s4131_s5 + $0x30] sm:$0xff]  }
 0x159   : > { %2948 = vmatprep.subr.bf16.mxu1 %v3324_v3  ;;  %v3365_v46 = vld [vmem:[#allocation2 + $0x238] sm:$0xff]   ;;  %v3366_v48 = vld [vmem:[%s4131_s5] sm:$0xff]  }
 0x15a   : > { %3081 = vmatmul.mubr.bf16.vlgmr.msra.gmra.mrb[8].mxu0 %v2783_v55  ;;  %v3955_v61 = vor.u32 %v1360_v58, %v1356_v57  ;;  %v3369_v24 = vld [vmem:[%s4131_s5 + $0x18] sm:$0xff]   ;;  %v3370_v47 = vld [vmem:[%s4131_s5 + $0x20] sm:$0xff]  }
 0x15b   : > { %3085 = vmatpush3.bf16.msra.mxu0 %v3796_v11  ;;  %3100 = vmatprep.mubr.bf16.mxu0 %v2810_v27  ;;  %v3331_v11 = vld [vmem:[#allocation2 + $0x20] sm:$0xff]   ;;  %v3345_v27 = vld [vmem:[#allocation2 + $0x1c8] sm:$0xff]   ;;  %v3373_v63 = vld [vmem:[%s4131_s5 + $0x38] sm:$0xff]  }
 0x15c   : > { %3086 = vmatprep.subr.bf16.mxu0 %v3323_v56  ;;  %v2782_v2 = vcombine.low %v1354_v44, %v3955_v61  ;;  %v2839_v5 = vcombine.low %v3955_v61, %v3957_v0  ;;  %2949 = vmatpush3.bf16.msra.mxu1 %v3325_v60  ;;  %v3362_v44 = vld [vmem:[#allocation2 + $0x230] sm:$0xff]   ;;  %v4006_v1 = vld [vmem:[%s4133_s7] sm:$0xff]  }
 0x15d   : > { %2950 = vmatprep.subr.bf16.mxu1 %v3327_v62 }
 0x15e   : > { %1689 = vmatprep.mubr.bf16.mxu1 %v2782_v2 }
 0x15f   : > { %3087 = vmatpush3.bf16.msra.mxu0 %v3323_v56  ;;  %1690 = vmatmul.mubr.bf16.gmra.mrb[4].mxu1 %v2781_v51 }
 0x160   : > { %1935 = vmatprep.mubr.bf16.mxu1 %v2809_v52  ;;  %3088 = vmatprep.subr.bf16.mxu0 %v3326_v4 }
 0x161   : > { %2951 = vmatpush3.bf16.msra.mxu1 %v3328_v7 }
 0x162   : > { %2952 = vmatprep.subr.bf16.mxu1 %v3330_v9 }
 0x163   : > { %3089 = vmatpush3.bf16.msra.mxu0 %v3326_v4 }
 0x164   : > { %3090 = vmatprep.subr.bf16.mxu0 %v3329_v10 }
 0x165   : > { %2953 = vmatpush3.bf16.msra.mxu1 %v3331_v11 }
 0x166   : > { %2954 = vmatprep.subr.bf16.mxu1 %v3333_v12 }
 0x167   : > { %3091 = vmatpush3.bf16.msra.mxu0 %v3329_v10 }
 0x168   : > { %3092 = vmatprep.subr.bf16.mxu0 %v3332_v13 }
 0x169   : > { %2955 = vmatpush3.bf16.msra.mxu1 %v3334_v14 }
 0x16a   : > { %2956 = vmatprep.subr.bf16.mxu1 %v3336_v15 }
 0x16b   : > { %3093 = vmatpush3.bf16.msra.mxu0 %v3332_v13 }
 0x16c   : > { %3094 = vmatprep.subr.bf16.mxu0 %v3335_v16 }
 0x16d   : > { %2957 = vmatpush3.bf16.msra.mxu1 %v3337_v17 }
 0x16e   : > { %2958 = vmatprep.subr.bf16.mxu1 %v3339_v19 }
 0x16f   : > { %3095 = vmatpush3.bf16.msra.mxu0 %v3335_v16 }
 0x170   : > { %3096 = vmatprep.subr.bf16.mxu0 %v3338_v20 }
 0x171   : > { %2959 = vmatpush3.bf16.msra.mxu1 %v3340_v22 }
 0x172   : > { %2982 = vmatprep.subr.bf16.mxu1 %v3342_v23  ;;  %v3382_v23 = vld [vmem:[%s3711_s14 + $0x8] sm:$0xf] }
 0x173   : > { %3097 = vmatpush3.bf16.msra.mxu0 %v3338_v20 }
 0x174   : > { %3098 = vmatprep.subr.bf16.mxu0 %v3341_v25  ;;  %1936 = vmatmul.mubr.bf16.vlgmr.msra.gmra.mrb[8].mxu1 %v2808_v35  ;;  %v3354_v35 = vld [vmem:[#allocation2 + $0x1e0] sm:$0xff]  }
 0x175   : > { %1943 = vmatprep.mubr.bf16.mxu1 %v3942_v49  ;;  %2983 = vmatpush3.bf16.msra.mxu1 %v3343_v26  ;;  %v2449_v26 = vshll.u32 %v3382_v23, 16 }
 0x176   : > { %2984 = vmatprep.subr.bf16.mxu1 %v3345_v27  ;;  %v3383_v27 = vld [vmem:[%s3711_s14 + $0x10] sm:$0xf] }
 0x177   : > { %3099 = vmatpush3.bf16.msra.mxu0 %v3341_v25  ;;  %v2446_v25 = vshrl.u32 %v3382_v23, 16  ;;  %v3387_v23 = vld [vmem:[%s3711_s14 + $0x20] sm:$0xf] }
 0x178   : > { %3104 = vmatprep.subr.bf16.mxu0 %v3344_v28 }
 0x179   : > { %2985 = vmatpush3.bf16.msra.mxu1 %v3346_v29  ;;  %v2463_v29 = vshll.u32 %v3383_v27, 16 }
 0x17a   : > { %3101 = vmatmul.mubr.bf16.vlgmr.msra.gmra.mrb[8].mxu0 %v3928_v36  ;;  %2986 = vmatprep.subr.bf16.mxu1 %v3348_v31 }
 0x17b   : > { %3105 = vmatpush3.bf16.msra.mxu0 %v3344_v28  ;;  %3120 = vmatprep.mubr.bf16.mxu0 %v3928_v36  ;;  %v3356_v36 = vld [vmem:[#allocation2 + $0x220] sm:$0xff]   ;;  %v2460_v28 = vshrl.u32 %v3383_v27, 16 }
 0x17c   : > { %3106 = vmatprep.subr.bf16.mxu0 %v3347_v32  ;;  %1944 = vmatmul.mubr.bf16.gmra.mrb[12].mxu1 %v3933_v21 }
 0x17d   : > { %2987 = vmatpush3.bf16.msra.mxu1 %v3349_v33  ;;  %2235 = vmatprep.mubr.bf16.mxu1 %v3942_v49  ;;  %v3371_v49 = vld [vmem:[%s4131_s5 + $0x28] sm:$0xff]  }
 0x17e   : > { %2988 = vmatprep.subr.bf16.mxu1 %v3351_v34 }
 0x17f   : > { %3107 = vmatpush3.bf16.msra.mxu0 %v3347_v32 }
 0x180   : > { %3108 = vmatprep.subr.bf16.mxu0 %v3350_v39 }
 0x181   : > { %2989 = vmatpush3.bf16.msra.mxu1 %v3352_v50  ;;  %v2448_v50 = vrot.slane %v2446_v25, 4  ;;  %v2488_v25 = vshrl.u32 %v3387_v23, 16 }
 0x182   : > { %2990 = vmatprep.subr.bf16.mxu1 %v3354_v35  ;;  %v2451_v35 = vrot.slane %v2449_v26, 5  ;;  %v3378_v26 = vld [vmem:[%s4133_s7 + $0x20] sm:$0xff]  }
 0x183   : > { %3109 = vmatpush3.bf16.msra.mxu0 %v3350_v39 }
 0x184   : > { %3110 = vmatprep.subr.bf16.mxu0 %v3353_v18 }
 0x185   : > { %2991 = vmatpush3.bf16.msra.mxu1 %v3355_v37  ;;  %v2465_v37 = vrot.slane %v2463_v29, 5  ;;  %v2490_v29 = vrot.slane %v2488_v25, 4 }
 0x186   : > { %2992 = vmatprep.subr.bf16.mxu1 %v3357_v38 }
 0x187   : > { %3111 = vmatpush3.bf16.msra.mxu0 %v3353_v18  ;;  %v2462_v18 = vrot.slane %v2460_v28, 4 }
 0x188   : > { %3112 = vmatprep.subr.bf16.mxu0 %v3356_v36 }
 0x189   : > { %2993 = vmatpush3.bf16.msra.mxu1 %v3358_v40 }
 0x18a   : > { %2994 = vmatprep.subr.bf16.mxu1 %v3360_v30  ;;  %v2865_v30 = vld [vmem:[%s4130_s4] ss:$0 sm:$0xff] }
 0x18b   : > { %3113 = vmatpush3.bf16.msra.mxu0 %v3356_v36 }
 0x18c   : > { %3114 = vmatprep.subr.bf16.mxu0 %v3359_v41 }
 0x18d   : > { %2995 = vmatpush3.bf16.msra.mxu1 %v3361_v42 }
 0x18e   : > { %2996 = vmatprep.subr.bf16.mxu1 %v3363_v43 }
 0x18f   : > { %3115 = vmatpush3.bf16.msra.mxu0 %v3359_v41 }
 0x190   : > { %3116 = vmatprep.subr.bf16.mxu0 %v3362_v44 }
 0x191   : > { %2997 = vmatpush3.bf16.msra.mxu1 %v3364_v45 }
 0x192   : > { %3124 = vmatprep.subr.bf16.mxu1 %v3366_v48 }
 0x193   : > { %3117 = vmatpush3.bf16.msra.mxu0 %v3362_v44 }
 0x194   : > { %3118 = vmatprep.subr.bf16.mxu0 %v3365_v46  ;;  %2236 = vmatmul.mubr.bf16.vlgmr.msra.gmra.mrb[16].mxu1 %v3933_v21  ;;  %v3368_v21 = vld [vmem:[%s4131_s5 + $0x10] sm:$0xff]  }
 0x195   : > { %2243 = vmatprep.mubr.bf16.mxu1 %v2839_v5  ;;  %3125 = vmatpush3.bf16.msra.mxu1 %v3366_v48  ;;  %v3384_v48 = vld [vmem:[%s3711_s14 + $0xc] sm:$0x1] }
 0x196   : > { %3126 = vmatprep.subr.bf16.mxu1 %v3367_v6 }
 0x197   : > { %3119 = vmatpush3.bf16.msra.mxu0 %v3365_v46  ;;  %v2452_v46 = vor.u32 %v2451_v35, %v2448_v50  ;;  %v3389_v35 = vld [vmem:[%s3711_s14 + $0x24] sm:$0x1] }
 0x199   : > { %3127 = vmatpush3.bf16.msra.mxu1 %v3367_v6  ;;  %v2455_v6 = vshll.u32 %v3384_v48, 16 }
 0x19a   : > { %3121 = vmatmul.mubr.bf16.vlgmr.msra.gmra.mrb[8].mxu0 %v3953_v59  ;;  %3128 = vmatprep.subr.bf16.mxu1 %v3368_v21 }
 0x19c   : > { %2244 = vmatmul.mubr.bf16.gmra.mrb[20].mxu1 %v2838_v54 }
 0x19d   : > { %3129 = vmatpush3.bf16.msra.mxu1 %v3368_v21  ;;  %v2466_v21 = vor.u32 %v2465_v37, %v2462_v18  ;;  %v2497_v18 = vshll.u32 %v3389_v35, 16  ;;  %v3380_v37 = vld [vmem:[%s4133_s7 + $0x30] sm:$0xff]  }
 0x19e   : > { %3130 = vmatprep.subr.bf16.mxu1 %v3369_v24 }
 0x1a1   : > { %3131 = vmatpush3.bf16.msra.mxu1 %v3369_v24  ;;  %v3385_v24 = vld [vmem:[%s3711_s14 + $0x14] sm:$0x1] }
 0x1a2   : > { %3132 = vmatprep.subr.bf16.mxu1 %v3370_v47 }
 0x1a5   : > { %3133 = vmatpush3.bf16.msra.mxu1 %v3370_v47  ;;  %v2469_v47 = vshll.u32 %v3385_v24, 16 }
 0x1a6   : > { %3134 = vmatprep.subr.bf16.mxu1 %v3371_v49 }
 0x1a9   : > { %3135 = vmatpush3.bf16.msra.mxu1 %v3371_v49 }
 0x1aa   : > { %3136 = vmatprep.subr.bf16.mxu1 %v3372_v8 }
 0x1ad   : > { %3137 = vmatpush3.bf16.msra.mxu1 %v3372_v8 }
 0x1ae   : > { %3138 = vmatprep.subr.bf16.mxu1 %v3373_v63 }
 0x1b1   : > { %3139 = vmatpush3.bf16.msra.mxu1 %v3373_v63 }
 0x1b2   : > { %3144 = vmatprep.subr.bf16.mxu1 %v4006_v1 }
 0x226   : > { %v2922_v3 = vpop.f32.mrb[0].mxu1 }
 0x227   : > { %v2923_v51 = vpop.f32.mrb[1].mxu1 }
 0x228   : > { %v2924_v53 = vadd.f32 %v2923_v51, %v2922_v3  ;;  %v2925_v52 = vpop.f32.mrb[2].mxu1 }
 0x229   : > { %v2926_v54 = vpop.f32.mrb[3].mxu1 }
 0x22a   : > { %v2927_v55 = vadd.f32 %v2926_v54, %v2925_v52 }
 0x232   : > { %v2928_v56 = vpop.f32.mrb[4].mxu1 }
 0x233   : > { %v2929_v57 = vpop.f32.mrb[5].mxu1 }
 0x234   : > { %v2930_v58 = vadd.f32 %v2929_v57, %v2928_v56  ;;  %v2931_v59 = vpop.f32.mrb[6].mxu1  ;;  %v2457_v56 = vrot.slane %v2455_v6, 5  ;;  %v2467_v57 = vrot.slane %v2466_v21, 4 }
 0x235   : > { %v2932_v60 = vpop.f32.mrb[7].mxu1 }
 0x236   : > { %v2933_v61 = vadd.f32 %v2932_v60, %v2931_v59 }
 0x247   : > { %v2960_v62 = vpop.f32.mrb[8].mxu1 }
 0x248   : > { %v2961_v0 = vpop.f32.mrb[9].mxu1 }
 0x249   : > { %v2962_v2 = vadd.f32 %v2961_v0, %v2960_v62  ;;  %v2963_v4 = vpop.f32.mrb[10].mxu1 }
 0x24a   : > { %v2964_v5 = vpop.f32.mrb[11].mxu1 }
 0x24b   : > { %v3167_v7 = vadd.f32 %v2962_v2, %v2924_v53  ;;  %v2965_v9 = vadd.f32 %v2964_v5, %v2963_v4 }
 0x24d   : > { %v3173_v10 = vadd.f32 %v2965_v9, %v2927_v55  ;;  %v2453_v55 = vrot.slane %v2452_v46, 4  ;;  %v2875_v46 = vld [vmem:[%s4134_s8] ss:$0 sm:$0xff] }
 0x24f   : > { %v2966_v11 = vpop.f32.mrb[12].mxu1  ;;  %v2458_v9 = vsel %vm4016_vm3, %v2453_v55, %v2457_v56 }
 0x250   : > { %v2967_v12 = vpop.f32.mrb[13].mxu1 }
 0x251   : > { %v2968_v13 = vadd.f32 %v2967_v12, %v2966_v11  ;;  %v2969_v14 = vpop.f32.mrb[14].mxu1 }
 0x252   : > { %v2970_v15 = vpop.f32.mrb[15].mxu1 }
 0x253   : > { %v3164_v16 = vadd.f32 %v2968_v13, %v2930_v58  ;;  %v2971_v17 = vadd.f32 %v2970_v15, %v2969_v14  ;;  %v2471_v58 = vrot.slane %v2469_v47, 5  ;;  %v3375_v15 = vld [vmem:[%s4133_s7 + $0x8] sm:$0xff]  }
 0x255   : > { %v3170_v19 = vadd.f32 %v2971_v17, %v2933_v61  ;;  %v3377_v17 = vld [vmem:[%s4133_s7 + $0x18] sm:$0xff]  }
 0x267   : > { %v2998_v20 = vpop.f32.mrb[16].mxu1 }
 0x268   : > { %v2999_v22 = vpop.f32.mrb[17].mxu1 }
 0x269   : > { %v3000_v31 = vadd.f32 %v2999_v22, %v2998_v20  ;;  %v3001_v32 = vpop.f32.mrb[18].mxu1 }
 0x26a   : > { %v3002_v33 = vpop.f32.mrb[19].mxu1 }
 0x26b   : > { %v3003_v34 = vadd.f32 %v3002_v33, %v3001_v32  ;;  %v3168_v39 = vadd.f32 %v3167_v7, %v3000_v31  ;;  %v3379_v32 = vld [vmem:[%s4133_s7 + $0x28] sm:$0xff]  }
 0x26d   : > { %v3122_v38 = vpop.f32.mrb[8].mxu0  ;;  %v3174_v36 = vadd.f32 %v3173_v10, %v3003_v34  ;;  %v2472_v10 = vsel %vm4016_vm3, %v2467_v57, %v2471_v58  ;;  %v3388_v34 = vld [vmem:[%s3711_s14 + $0x1c] sm:$0x1] }
 0x26e   : > { %v2286_v40 = vpop.f32.mrb[9].mxu0  ;;  %v2876_v13 = vcombine.low %v2458_v9, %v2472_v10 }
 0x26f   : > { %v3169_v41 = vadd.f32 %v3168_v39, %v2286_v40  ;;  %v3123_v42 = vpop.f32.mrb[10].mxu0  ;;  %v3004_v43 = vpop.f32.mrb[20].mxu1  ;;  %v2483_v39 = vshll.u32 %v3388_v34, 16 }
 0x270   : > { %v2289_v44 = vpop.f32.mrb[11].mxu0  ;;  %v3005_v45 = vpop.f32.mrb[21].mxu1 }
 0x271   : > { %v2312_v49 = vadd.f32 %v3169_v41, %v2865_v30  ;;  %v3175_v8 = vadd.f32 %v3174_v36, %v2289_v44  ;;  %v3006_v63 = vadd.f32 %v3005_v45, %v3004_v43  ;;  %v3007_v3 = vpop.f32.mrb[22].mxu1  ;;  %v2485_v36 = vrot.slane %v2483_v39, 5  ;;  %v3381_v41 = vld [vmem:[%s4133_s7 + $0x38] sm:$0xff]   ;;  %v2866_v45 = vld [vmem:[%s4132_s6] ss:$0 sm:$0xff] }
 0x272   : > { %v3008_v51 = vpop.f32.mrb[23].mxu1  ;;  %v3182_v48 = vadd.f32 %v2875_v46, %v2866_v45 }
 0x273   : > { %v2313_v53 = vadd.f32 %v3175_v8, %v2865_v30  ;;  %v3165_v52 = vadd.f32 %v3164_v16, %v3006_v63  ;;  %v3009_v54 = vadd.f32 %v3008_v51, %v3007_v3  ;;  %v2316_v59 = vmax.f32 %v2312_v49, 0.0  ;;  %v3376_v16 = vld [vmem:[%s4133_s7 + $0x10] sm:$0xff]  }
 0x275   : > { %v2317_v60 = vmax.f32 %v2313_v53, 0.0  ;;  %v3166_v61 = vadd.f32 %v3165_v52, %v3122_v38  ;;  %v3171_v62 = vadd.f32 %v3170_v19, %v3009_v54  ;;  %v3386_v19 = vld [vmem:[%s3711_s14 + $0x18] sm:$0xf]  ;;  %s352_s14 = sand.u32 1, %s3500_s10  }
 0x276   : > { %v2474_v20 = vshrl.u32 %v3386_v19, 16  ;;  %v2477_v22 = vshll.u32 %v3386_v19, 16  ;;  %s2754_s21 = sshll.u32 %s352_s14, 5  ;;  %s4074_s28 = scalar_lea.sflag [#allocation4], %s352_s14 }
 0x277   : > { %v2314_v2 = vadd.f32 %v3166_v61, %v2865_v30  ;;  %v3172_v4 = vadd.f32 %v3171_v62, %v3123_v42  ;;  %v2320_v5 = vpack.c.bf16 %v2317_v60, %v2316_v59  ;;  %s354_s17 = scalar_lea.vmem [#allocation5], %s2754_s21  ;;  %s4070_s21 = scalar_lea.hbm %s4135_s9, %s2889_s27 }
 0x278   : > { %v2476_v27 = vrot.slane %v2474_v20, 4  ;;  %v2479_v28 = vrot.slane %v2477_v22, 5  ;;  %s2657_s19 = sshll.u32 %s354_s17, 4  ;;  %s4065_s19 = int_to_ptr.vmem [resolvable:$true] %s2657_s19 }
 0x279   : > { %v2315_v7 = vadd.f32 %v3172_v4, %v2865_v30  ;;  %3140 = vmatprep.mubr.bf16.mxu1 %v2320_v5  ;;  %v2318_v11 = vmax.f32 %v2314_v2, 0.0  ;;  %v2499_v30 = vrot.slane %v2497_v18, 5  ;;  %s3426_s18 = scalar_lea.vmem %s4065_s19, 512  ;;  %p3433_p6 = scmp.lt.s32.totalorder %s4065_s19, %s3431_s20 }
 0x27a   : > { %v2480_v33 = vor.u32 %v2479_v28, %v2476_v27  ;;  %p3427_p12 = scmp.ne.s32.totalorder %s4065_s19, %s3426_s18  ;;  %p3434_p7 = scmp.lt.s32.totalorder %s3432_s25, %s3426_s18 }
 0x27b   : > { %v2319_v12 = vmax.f32 %v2315_v7, 0.0 }
 0x27c   : > { %v2481_v38 = vrot.slane %v2480_v33, 4  ;;  %p3428_p2 = pnand %p3427_p12, %p4167_p0  ;;  %p3435_p9 = por %p3434_p7, %p3433_p6 }
 0x27d   : > { %v2321_v14 = vpack.c.bf16 %v2319_v12, %v2318_v11 }
 0x27e   : > { %v2486_v42 = vsel %vm4016_vm3, %v2481_v38, %v2485_v36  ;;  %p3429_p5 = pneg %p3428_p2 }
 0x27f   : > { %3141 = vmatmul.mubr.bf16.vlgmr.msra.gmra.mrb[24].mxu1 %v2321_v14 }
 0x280   : > { %3145 = vmatpush3.bf16.msra.mxu1 %v4006_v1  ;;  %3160 = vmatprep.mubr.bf16.mxu1 %v2876_v13  ;;  %v2491_v1 = vshll.u32 %v3387_v23, 16  ;;  %p3436_p11 = pnand %p3435_p9, %p3429_p5 }
 0x281   : > { %3146 = vmatprep.subr.bf16.mxu1 %v3375_v15 }
 0x282   : > { %v2493_v31 = vrot.slane %v2491_v1, 5 }
 0x284   : > { %3147 = vmatpush3.bf16.msra.mxu1 %v3375_v15  ;;  %v2494_v50 = vor.u32 %v2493_v31, %v2490_v29 }
 0x285   : > { %3148 = vmatprep.subr.bf16.mxu1 %v3376_v16 }
 0x286   : > { %v2495_v40 = vrot.slane %v2494_v50, 4 }
 0x288   : > { %3149 = vmatpush3.bf16.msra.mxu1 %v3376_v16  ;;  %v2500_v43 = vsel %vm4016_vm3, %v2495_v40, %v2499_v30 }
 0x289   : > { %3150 = vmatprep.subr.bf16.mxu1 %v3377_v17  ;;  %v2877_v44 = vcombine.low %v2486_v42, %v2500_v43 }
 0x28c   : > { %3151 = vmatpush3.bf16.msra.mxu1 %v3377_v17 }
 0x28d   : > { %3152 = vmatprep.subr.bf16.mxu1 %v3378_v26 }
 0x290   : > { %3153 = vmatpush3.bf16.msra.mxu1 %v3378_v26 }
 0x291   : > { %3154 = vmatprep.subr.bf16.mxu1 %v3379_v32 }
 0x294   : > { %3155 = vmatpush3.bf16.msra.mxu1 %v3379_v32 }
 0x295   : > { %3156 = vmatprep.subr.bf16.mxu1 %v3380_v37 }
 0x298   : > { %3157 = vmatpush3.bf16.msra.mxu1 %v3380_v37 }
 0x299   : > { %3158 = vmatprep.subr.bf16.mxu1 %v3381_v41 }
 0x29c   : > { %3159 = vmatpush3.bf16.msra.mxu1 %v3381_v41 }
 0x29f   : > { %3161 = vmatmul.mubr.bf16.vlgmr.msra.gmra.mrb[24].mxu1 %v2877_v44 }
 0x372   : > { %v3162_v6 = vpop.f32.mrb[24].mxu1 }
 0x373   : > { %v3176_v21 = vadd.f32 %v3162_v6, %v2866_v45  ;;  %v2614_v24 = vpop.f32.mrb[25].mxu1 }
 0x374   : > { %v3178_v47 = vadd.f32 %v2866_v45, %v2614_v24  ;;  %v3163_v49 = vpop.f32.mrb[26].mxu1 }
 0x375   : > { %v3177_v8 = vadd.f32 %v3176_v21, %v2875_v46  ;;  %v3181_v63 = vadd.f32 %v3182_v48, %v3163_v49  ;;  %v2617_v3 = vpop.f32.mrb[27].mxu1 }
 0x376   : > { %v3179_v51 = vadd.f32 %v3178_v47, %v2875_v46  ;;  %v3183_v53 = vadd.f32 %v3182_v48, %v2617_v3 }
 0x377   : > { %v2635_v52 = vmax.f32 %v3177_v8, 0.0  ;;  %v2636_v54 = vmax.f32 %v3181_v63, 0.0 }
 0x378   : > { %v2633_v55 = vmax.f32 %v3179_v51, 0.0  ;;  %v2634_v56 = vmax.f32 %v3183_v53, 0.0 }
 0x379   : > { %2639 = vst [vmem:[%s354_s17 + $0x10] sm:$0xff] %v2635_v52  ;;  %2640 = vst [vmem:[%s354_s17 + $0x18] sm:$0xff] %v2636_v54 }
 0x37a   : > { %2637 = vst [vmem:[%s354_s17] sm:$0xff] %v2633_v55  ;;  %2638 = vst [vmem:[%s354_s17 + $0x8] sm:$0xff] %v2634_v56 }
 0x37b   : > { %3439 = shalt.err (!%p3436_p11)
}
 0x37c   : > { %s3440_s14 = scalar_lea.hbm %s4070_s21, 512  ;;  %s3444_s17 = scalar_lea.hbm %s4135_s9, 2048 }
 0x37d   : > { %p3441_p13 = scmp.ne.s32.totalorder %s4070_s21, %s3440_s14  ;;  %p3445_p3 = scmp.lt.u32.totalorder %s4070_s21, %s4135_s9 }
 0x37e   : > { %p3446_p8 = scmp.lt.u32.totalorder %s3444_s17, %s3440_s14  ;;  %p3448_p12 = scmp.lt.u32.totalorder %s3440_s14, %s4070_s21 }
 0x37f   : > { %p3442_p1 = pnand %p3441_p13, %p4167_p0 }
 0x380   : > { %p3447_p10 = por %p3446_p8, %p3445_p3 }
 0x381   : > { %p3443_p4 = pneg %p3442_p1 }
 0x382   : > { %p3449_p2 = por %p3448_p12, %p3447_p10 }
 0x384   : > { %p3450_p5 = pnand %p3449_p2, %p3443_p4 }
 0x386   : > { %3453 = shalt.err (!%p3450_p5)
}
 0x387   : > { %s3533_s13 = smov 128   ;;  %s3534_s18 = smov 8  }
 0x388   : > { %3201 = dma.vmem_to_hbm [thread:$0]  (%p4167_p0), %s4065_s19, 512, %s4070_s21, %s4074_s28, %s3533_s13, %s3533_s13, %s3534_s18  }
 0x389 PF: > { %p3213_p6 = scmp.ge.s32.totalorder %s3524_s16, 2  ;;  %s2672_s15 = sand.u32 1, %s3496_s30  }
 0x38a   : > { %p4168_p7 = scmp.ne.s32.totalorder %s4149_s24, 0  ;;  %s2673_s20 = scalar_lea.sflag [#allocation4], %s2672_s15 }
 0x38c   : > { %p3208_p9 = pnand %p3213_p6, %p4168_p7 }
 0x38e   : > { %3491 = dma.done.wait (!%p3208_p9), %s2673_s20, 512  }
 0x38f   : > { %3493 = vsyncadd (!%p3208_p9), %s2673_s20, 4294966784  ;;  %s23_s16 = sadd.s32 1, %s3524_s16   ;;  %s4169_s12 = sld [smem:[#allocation8_spill]] }
 0x390   : > { %p20_p11 = scmp.ge.s32.totalorder %s23_s16, 6   ;;  %s4170_s13 = sld [smem:[#allocation9_spill]] }
 0x391   : > { %s4171_s14 = sld [smem:[#allocation10_spill]]  ;;  %s4172_s15 = sld [smem:[#allocation11_spill]] }
 0x392   : > { %s4173_s30 = smov %s3500_s10  ;;  %s4174_s10 = smov %s3504_s11 }
 0x393   : > { %s4175_s11 = smov %s3664_s29  ;;  %22 = sbr.rel (!%p20_p11) target bundleno = 6 (0x6), region = 99 }
 0x39a   :  { %2678 = vsyncpa [#allocation3], 1 }
 0x39b   :  { %2680 = vsyncpa [#allocation3 + $0x1], 1 }
 0x39c   :  { %2681 = vsyncpa [#allocation4], 1 }
 0x39d   :  { %2683 = vsyncpa [#allocation4 + $0x1], 1 }

// kernel: tpu_custom_call.1
= control target key start
LH: loop header
LB: loop body
LE: loop exit
PB: predicated region body
PF: predicated region fallthrough
CT: control target
= control target key end

     0   :  { %14 = vsyncpa [#allocation3], 0  ;;  %s4126_s0 = inlined_call_operand.vmem [shape: bf16[2,10,10,128], index: 0, kind: input, shape index: {}]   ;;  %s4127_s1 = inlined_call_operand.vmem [shape: bf16[128,128], index: 1, kind: input, shape index: {}]   ;;  %s4128_s2 = inlined_call_operand.vmem [shape: f32[1,128], index: 2, kind: input, shape index: {}]   ;;  %s4129_s3 = inlined_call_operand.hbm [shape: bf16[3,384,128], index: 3, kind: input, shape index: {}]   ;;  %s4130_s4 = inlined_call_operand.vmem [shape: f32[1,128], index: 4, kind: input, shape index: {}]   ;;  %s4131_s5 = inlined_call_operand.vmem [shape: bf16[128,128], index: 5, kind: input, shape index: {}]   ;;  %s4132_s6 = inlined_call_operand.vmem [shape: f32[1,128], index: 6, kind: input, shape index: {}]   ;;  %s4133_s7 = inlined_call_operand.vmem [shape: bf16[128,128], index: 7, kind: input, shape index: {}]   ;;  %s4134_s8 = inlined_call_operand.vmem [shape: f32[1,128], index: 8, kind: input, shape index: {}]   ;;  %s4135_s9 = inlined_call_operand.hbm [shape: f32[2,8,8,128], index: 9, kind: output, shape index: {}]  }
   0x1   :  { %15 = vsyncpa [#allocation4], 0 }
   0x2   :  { %17 = vsyncpa [#allocation4 + $0x1], 0  ;;  %s3585_s30 = smov 0   ;;  %s3587_s10 = smov 0  }
   0x3   :  { %s3589_s11 = smov 0   ;;  %s3591_s12 = smov 0  }
   0x4   :  { %s3593_s13 = smov 0   ;;  %s3595_s14 = smov 0  }
   0x5   :  { %s3597_s15 = smov 0   ;;  %s3599_s16 = smov 0  }
   0x6 LB: > { %4144 = sst [smem:[#allocation8_spill]] %s3516_s14  ;;  %s2747_s17 = sadd.s32 4294967295, %s3524_s16   ;;  %s3524_s16 = sphi %s3599_s16, %s23_s16   ;;  %s3520_s15 = sphi %s3597_s15, %s4172_s15   ;;  %s3516_s14 = sphi %s3595_s14, %s4171_s14   ;;  %s3512_s13 = sphi %s3593_s13, %s4170_s13   ;;  %s3508_s12 = sphi %s3591_s12, %s4169_s12   ;;  %s3504_s11 = sphi %s3589_s11, %s4175_s11   ;;  %s3500_s10 = sphi %s3587_s10, %s4174_s10   ;;  %s3496_s30 = sphi %s3585_s30, %s4173_s30  }
   0x7   : > { %4145 = sst [smem:[#allocation9_spill]] %s3520_s15  ;;  %s2748_s18 = sadd.s32 4294967294, %s3524_s16  }
   0x8   : > { %s32_s19 = sadd.s32 1, %s3516_s14  ;;  %s35_s20 = sadd.s32 1, %s3520_s15 }
   0x9   : > { %p33_p0 = scmp.ge.s32.totalorder %s32_s19, 2  ;;  %s238_s21 = sadd.s32 1, %s3504_s11 }
   0xa   : > { %p248_p1 = scmp.ne.s32.totalorder %s3504_s11, %s3500_s10  ;;  %p249_p2 = scmp.eq.s32.totalorder %s2747_s17, 3 }
   0xb   : > { %s4177_s19 = smov (%p33_p0, %s32_s19), 0  ;;  %s4179_s20 = smov (!%p33_p0, %s35_s20), %s3520_s15 }
   0xc   : > { %4146 = sst [smem:[#allocation10_spill]] %s4177_s19  ;;  %s234_s22 = ssub.s32 %s3516_s14, %s4177_s19 }
   0xd   : > { %p3637_p3 = por %p249_p2, %p248_p1  ;;  %p37_p4 = scmp.ge.s32.totalorder %s4179_s20, 2 }
   0xe   : > { %p254_p5 = scmp.ne.s32.totalorder %s3500_s10, %s3496_s30  ;;  %p255_p6 = scmp.eq.s32.totalorder %s2748_s18, 3 }
   0xf   : > { %s4147_s23 = scalar_select %p3637_p3, 1, 0 }
  0x10   : > { %p2749_p7 = scmp.ge.s32.totalorder %s3524_s16, 1  ;;  %s4181_s20 = smov (%p37_p4, %s4179_s20), 0 }
  0x11   : > { %4148 = sst [smem:[#allocation11_spill]] %s4181_s20  ;;  %p3646_p8 = por %p255_p6, %p254_p5 }
  0x12   : > { %p262_p9 = scmp.lt.s32.totalorder %s3524_s16, 5  ;;  %s233_s25 = ssub.s32 %s3520_s15, %s4181_s20 }
  0x13   : > { %s4149_s24 = scalar_select %p3646_p8, 1, 0 }
  0x14   : > { %s235_s26 = sor.u32 %s234_s22, %s233_s25  ;;  %p3653_p10 = pnand %p2749_p7, %p262_p9 }
  0x15   : > { %p236_p11 = scmp.eq.s32.totalorder %s235_s26, 0  ;;  %p3657_p12 = scmp.eq.s32.totalorder %s2747_s17, 0 }
  0x16   : > { %s4150_s27 = scalar_select %p3653_p10, 1, 0 }
  0x17   : > { %s4151_s28 = scalar_select %p3657_p12, 1, 0 }
  0x18   : > { %p3203_p13 = pneg %p3653_p10  ;;  %s3526_s18 = smov [#allocation2]  }
  0x19   : > { %s3664_s29 = scalar_select %p236_p11, %s3504_s11, %s238_s21  }
  0x1a   : > { %s280_s19 = sshll.u32 %s3526_s18, 4  ;;  %p3668_p0 = pnand %p3657_p12, %p3203_p13  ;;  %s281_s19 = int_to_ptr.vmem [resolvable:$true] %s280_s19 }
  0x1b   : > { %s3398_s17 = scalar_lea.hbm %s4129_s3, 9216 }
  0x1c   : > { %p3399_p1 = scmp.ne.s32.totalorder %s4129_s3, %s3398_s17  ;;  %p3400_p2 = pneg %p3668_p0 }
  0x1d   : > { %p3405_p6 = scmp.lt.u32.totalorder %s3398_s17, %s4129_s3 }
  0x1e   : > { %p3401_p4 = pnand %p3400_p2, %p3399_p1 }
  0x20   : > { %p3402_p5 = pneg %p3401_p4 }
  0x22   : > { %p3407_p7 = pnand %p3405_p6, %p3402_p5 }
  0x24   : > { %3410 = shalt.err (!%p3407_p7)
}
  0x25   : > { %s3411_s14 = scalar_lea.vmem %s281_s19, 9216  ;;  %p3419_p8 = scmp.lt.s32.totalorder %s281_s19, %s281_s19 }
  0x26   : > { %p3412_p9 = scmp.ne.s32.totalorder %s281_s19, %s3411_s14  ;;  %p3420_p3 = scmp.lt.s32.totalorder %s3411_s14, %s3411_s14 }
  0x28   : > { %p3414_p11 = pnand %p3412_p9, %p3400_p2  ;;  %p3421_p12 = por %p3420_p3, %p3419_p8 }
  0x2a   : > { %p3415_p13 = pneg %p3414_p11 }
  0x2c   : > { %p3422_p10 = pnand %p3421_p12, %p3415_p13 }
  0x2e   : > { %3425 = shalt.err (!%p3422_p10)
}
  0x2f   : > { %s3527_s15 = smov 64   ;;  %s3528_s20 = smov 4  }
  0x30   : > { %3206 = dma.hbm_to_vmem [thread:$0]  (!%p3668_p0), %s4129_s3, 9216, %s281_s19, [#allocation3], %s3527_s15, %s3527_s15, %s3528_s20  }
  0x31   : > { %p4153_p1 = scmp.ne.s32.totalorder %s4150_s27, 0 }
  0x32   : > { %p4154_p4 = scmp.ne.s32.totalorder (!%p4153_p1), %s4151_s28, 0 }
  0x33   : > { %319 = sbr.rel (%p4153_p1) target bundleno = 905 (0x389), region = 56 }
  0x3a   : > { %3487 = dma.done.wait (%p4154_p4), [#allocation3], 9216  }
  0x3b   : > { %3489 = vsyncadd (%p4154_p4), [#allocation3], 4294958080  ;;  %p355_p3 = scmp.lt.s32.totalorder %s3512_s13, 1  ;;  %v3529_v0 = vmov 1966171168   ;;  %v403_v2 = vlaneseq  ;;  %v3286_v3 = vld [vmem:[%s4127_s1] sm:$0xff]  }
  0x3c   : > { %v401_v1 = vunpack.c.l.s4 %v3529_v0  ;;  %v3287_v4 = vld [vmem:[%s4127_s1 + $0x8] sm:$0xff]   ;;  %3040 = vmatprep.subr.bf16.mxu0 %v3286_v3  ;;  %s2893_s20 = sshll.u32 %s3508_s12, 5  ;;  %v3288_v7 = vld [vmem:[%s4127_s1 + $0x10] sm:$0xff]   ;;  %v3289_v9 = vld [vmem:[%s4127_s1 + $0x18] sm:$0xff]   ;;  %p1275_p8 = scmp.lt.s32.totalorder %s3508_s12, 1 }
  0x3d   : > { %s356_s14 = scalar_select %p355_p3, %s3512_s13, 1  ;;  %v3702_v6 = vshrl.u32 %v403_v2, 7  ;;  %3041 = vmatpush3.bf16.msra.mxu0 %v3286_v3  ;;  %v3290_v24 = vld [vmem:[%s4127_s1 + $0x20] sm:$0xff]   ;;  %v3291_v30 = vld [vmem:[%s4127_s1 + $0x28] sm:$0xff]   ;;  %v3292_v51 = vld [vmem:[%s4127_s1 + $0x30] sm:$0xff]  }
  0x3e   : > { %v402_v5 = vunpack.c.0.s8 %v401_v1  ;;  %3042 = vmatprep.subr.bf16.mxu0 %v3287_v4  ;;  %v3294_v35 = vld [vmem:[#allocation2 + $0x100] sm:$0xff]   ;;  %v3293_v3 = vld [vmem:[%s4127_s1 + $0x38] sm:$0xff]   ;;  %s1276_s26 = scalar_select %p1275_p8, 1, 0 }
  0x3f   : > { %s3196_s22 = smul.u32 80, %s356_s14  ;;  %2906 = vmatprep.subr.bf16.mxu1 %v3294_v35  ;;  %vm1255_vm0 = vcmp.ge.s32.totalorder %v3702_v6, 1  ;;  %p1261_p10 = scmp.gt.s32.totalorder %s3508_s12, 0 }
  0x40   : > { %v3714_v8 = vsub.s32 %v402_v5, %v3702_v6  ;;  %vm1299_vm8 = vmpackc.low %vm1255_vm0, %vm1255_vm0  ;;  %s2887_s25 = sshll.u32 %s3508_s12, 2  ;;  %p4167_p0 = scmp.ne.s32.totalorder %s4147_s23, 0 }
  0x41   : > { %s359_s15 = scalar_lea.vmem %s4126_s0, %s3196_s22  ;;  %3043 = vmatpush3.bf16.msra.mxu0 %v3287_v4 }
  0x42   : > { %s3711_s14 = scalar_lea.vmem %s359_s15, %s2893_s20  ;;  %3044 = vmatprep.subr.bf16.mxu0 %v3288_v7  ;;  %s3532_s15 = smov [#allocation5]  }
  0x43   : > { %v2759_v10 = vld.sshfl [vmem:[%s3711_s14] sm:$0x33 pattern:$0x75316420]  ;;  %s1262_s22 = scalar_select %p1261_p10, 1, 0 }
  0x44   : > { %v3390_v11 = vld.sshfl [vmem:[%s3711_s14 + $0x8] sm:$0x33 pattern:$0x75316420]  ;;  %v399_v13 = vcombine.high %v2759_v10, %v2759_v10  ;;  %v406_v14 = vrot.slane %v2759_v10, %v3714_v8  ;;  %s3430_s20 = sshll.u32 %s3532_s15, 4  ;;  %s3431_s20 = int_to_ptr.vmem [resolvable:$false] %s3430_s20 }
  0x45   : > { %v2760_v12 = vld.sshfl [vmem:[%s3711_s14 + $0x4] sm:$0x1 pattern:$0x75316420]  ;;  %3045 = vmatpush3.bf16.msra.mxu0 %v3288_v7  ;;  %v437_v21 = vcombine.high %v3390_v11, %v3390_v11  ;;  %v444_v22 = vrot.slane %v3390_v11, %v3714_v8 }
  0x46   : > { %v3391_v15 = vld.sshfl [vmem:[%s3711_s14 + $0xc] sm:$0x1 pattern:$0x75316420]  ;;  %v429_v16 = vrot.slane %v2760_v12, %v3714_v8  ;;  %v413_v20 = vrot.slane %v399_v13, %v3714_v8  ;;  %3046 = vmatprep.subr.bf16.mxu0 %v3289_v9 }
  0x47   : > { %v3392_v17 = vld.sshfl [vmem:[%s3711_s14 + $0x10] sm:$0x33 pattern:$0x75316420]  ;;  %v467_v25 = vrot.slane %v3391_v15, %v3714_v8  ;;  %v451_v26 = vrot.slane %v437_v21, %v3714_v8  ;;  %v452_v27 = vcombine.high %v444_v22, %v444_v22 }
  0x48   : > { %v3393_v18 = vld.sshfl [vmem:[%s3711_s14 + $0x14] sm:$0x1 pattern:$0x75316420]  ;;  %v643_v28 = vcombine.low %v406_v14, %v413_v20  ;;  %v2764_v29 = vcombine.high %v406_v14, %v413_v20  ;;  %v645_v31 = vcombine.low %v429_v16, %v444_v22  ;;  %v475_v32 = vcombine.high %v3392_v17, %v3392_v17 }
  0x49   : > { %v3394_v19 = vld.sshfl [vmem:[%s3711_s14 + $0x18] sm:$0x33 pattern:$0x75316420]  ;;  %v482_v33 = vrot.slane %v3392_v17, %v3714_v8  ;;  %v505_v34 = vrot.slane %v3393_v18, %v3714_v8  ;;  %3047 = vmatpush3.bf16.msra.mxu0 %v3289_v9  ;;  %v453_v36 = vcombine.high %v451_v26, %v451_v26  ;;  %v646_v37 = vcombine.low %v451_v26, %v452_v27 }
  0x4a   : > { %v3395_v23 = vld.sshfl [vmem:[%s3711_s14 + $0x1c] sm:$0x1 pattern:$0x75316420]  ;;  %v653_v38 = vrot.slane %v643_v28, %v3714_v8  ;;  %v660_v39 = vrot.slane %v2764_v29, %v3714_v8  ;;  %3048 = vmatprep.subr.bf16.mxu0 %v3290_v24  ;;  %v667_v40 = vrot.slane %v645_v31, %v3714_v8  ;;  %v489_v41 = vrot.slane %v475_v32, %v3714_v8 }
  0x4b   : > { %v520_v42 = vrot.slane %v3394_v19, %v3714_v8  ;;  %v3396_v43 = vld.sshfl [vmem:[%s3711_s14 + $0x20] sm:$0x33 pattern:$0x75316420]  ;;  %v513_v44 = vcombine.high %v3394_v19, %v3394_v19  ;;  %v674_v46 = vrot.slane %v646_v37, %v3714_v8  ;;  %v692_v48 = vcombine.low %v453_v36, %v467_v25 }
  0x4c   : > { %v3397_v45 = vld.sshfl [vmem:[%s3711_s14 + $0x24] sm:$0x1 pattern:$0x75316420]  ;;  %v675_v47 = vcombine.low %v653_v38, %v660_v39  ;;  %v543_v49 = vrot.slane %v3395_v23, %v3714_v8  ;;  %v693_v52 = vcombine.low %v482_v33, %v489_v41  ;;  %v2765_v53 = vcombine.high %v482_v33, %v489_v41 }
  0x4d   : > { %v2761_v50 = vld.sshfl [vmem:[%s3711_s14 + $0x28] sm:$0x33 pattern:$0x75316420]  ;;  %v695_v54 = vcombine.low %v505_v34, %v520_v42  ;;  %v527_v55 = vrot.slane %v513_v44, %v3714_v8  ;;  %3049 = vmatpush3.bf16.msra.mxu0 %v3290_v24  ;;  %v676_v56 = vcombine.low %v667_v40, %v674_v46  ;;  %v702_v58 = vrot.slane %v692_v48, %v3714_v8  ;;  %v3295_v44 = vld [vmem:[#allocation2 + $0xc0] sm:$0xff]  }
  0x4e   : > { %v683_v57 = vrot.slane %v675_v47, %v3714_v8  ;;  %v528_v59 = vcombine.high %v520_v42, %v520_v42  ;;  %3050 = vmatprep.subr.bf16.mxu0 %v3291_v30  ;;  %v709_v60 = vrot.slane %v693_v52, %v3714_v8  ;;  %v716_v61 = vrot.slane %v2765_v53, %v3714_v8  ;;  %v2762_v0 = vld.sshfl [vmem:[%s3711_s14 + $0x2c] sm:$0x1 pattern:$0x75316420]  ;;  %v3304_v52 = vld [vmem:[#allocation2 + $0xd8] sm:$0xff]  }
  0x4f   : > { %v723_v62 = vrot.slane %v695_v54, %v3714_v8  ;;  %v529_v63 = vcombine.high %v527_v55, %v527_v55  ;;  %v690_v1 = vrot.slane %v676_v56, %v3714_v8  ;;  %v589_v9 = vcombine.high %v2761_v50, %v2761_v50  ;;  %2907 = vmatpush3.bf16.msra.mxu1 %v3295_v44  ;;  %v3297_v46 = vld [vmem:[#allocation2 + $0x108] sm:$0xff]   ;;  %v3305_v53 = vld [vmem:[#allocation2 + $0x158] sm:$0xff]   ;;  %v3306_v54 = vld [vmem:[#allocation2 + $0x120] sm:$0xff]  }
  0x50   : > { %v741_v2 = vcombine.low %v527_v55, %v528_v59  ;;  %v724_v4 = vcombine.low %v702_v58, %v709_v60  ;;  %v551_v11 = vcombine.high %v3396_v43, %v3396_v43  ;;  %v558_v12 = vrot.slane %v3396_v43, %v3714_v8  ;;  %v3298_v47 = vld [vmem:[#allocation2 + $0xc8] sm:$0xff]   ;;  %2908 = vmatprep.subr.bf16.mxu1 %v3297_v46  ;;  %v3307_v56 = vld [vmem:[#allocation2 + $0xe0] sm:$0xff]  }
  0x51   : > { %v725_v5 = vcombine.low %v716_v61, %v723_v62  ;;  %v742_v7 = vcombine.low %v529_v63, %v543_v49  ;;  %3051 = vmatpush3.bf16.msra.mxu0 %v3291_v30  ;;  %v691_v10 = vcombine.low %v683_v57, %v690_v1  ;;  %v581_v15 = vrot.slane %v3397_v45, %v3714_v8  ;;  %v3296_v45 = vld [vmem:[#allocation2 + $0x140] sm:$0xff]   ;;  %v3299_v48 = vld [vmem:[#allocation2 + $0x148] sm:$0xff]   ;;  %v3300_v49 = vld [vmem:[#allocation2 + $0x110] sm:$0xff]  }
  0x52   : > { %v751_v13 = vrot.slane %v741_v2, %v3714_v8  ;;  %3052 = vmatprep.subr.bf16.mxu0 %v3292_v51  ;;  %v565_v16 = vrot.slane %v551_v11, %v3714_v8  ;;  %v596_v17 = vrot.slane %v2761_v50, %v3714_v8  ;;  %v603_v18 = vrot.slane %v589_v9, %v3714_v8  ;;  %v3301_v50 = vld [vmem:[#allocation2 + $0xd0] sm:$0xff]   ;;  %v3308_v58 = vld [vmem:[#allocation2 + $0x160] sm:$0xff]   ;;  %v3309_v59 = vld [vmem:[#allocation2 + $0x128] sm:$0xff]  }
  0x53   : > { %v758_v14 = vrot.slane %v742_v7, %v3714_v8  ;;  %3056 = vmatprep.mubr.bf16.mxu0 %v691_v10  ;;  %v619_v19 = vrot.slane %v2762_v0, %v3714_v8  ;;  %v732_v20 = vrot.slane %v724_v4, %v3714_v8  ;;  %v739_v21 = vrot.slane %v725_v5, %v3714_v8  ;;  %v3310_v60 = vld [vmem:[#allocation2 + $0xe8] sm:$0xff]   ;;  %v3312_v0 = vld [vmem:[#allocation2 + $0x130] sm:$0xff]   ;;  %v3315_v5 = vld [vmem:[#allocation2 + $0x138] sm:$0xff]  }
  0x54   : > { %v743_v23 = vcombine.low %v558_v12, %v565_v16  ;;  %v2766_v24 = vcombine.high %v558_v12, %v565_v16  ;;  %v604_v25 = vcombine.high %v596_v17, %v596_v17  ;;  %v605_v26 = vcombine.high %v603_v18, %v603_v18  ;;  %2909 = vmatpush3.bf16.msra.mxu1 %v3298_v47  ;;  %v3311_v61 = vld [vmem:[#allocation2 + $0x168] sm:$0xff]   ;;  %v3313_v2 = vld [vmem:[#allocation2 + $0xf0] sm:$0xff]   ;;  %v3316_v7 = vld [vmem:[#allocation2 + $0xf8] sm:$0xff]  }
  0x55   : > { %v773_v22 = vcombine.low %v751_v13, %v758_v14  ;;  %3053 = vmatpush3.bf16.msra.mxu0 %v3292_v51  ;;  %v790_v27 = vcombine.low %v581_v15, %v596_v17  ;;  %v740_v32 = vcombine.low %v732_v20, %v739_v21  ;;  %2910 = vmatprep.subr.bf16.mxu1 %v3300_v49  ;;  %v3303_v51 = vld [vmem:[#allocation2 + $0x118] sm:$0xff]   ;;  %v1254_v55 = vadd.s32 8, %v3702_v6  ;;  %v3314_v4 = vld [vmem:[#allocation2 + $0x170] sm:$0xff]   ;;  %v3318_v10 = vld [vmem:[#allocation2 + $0x40] sm:$0xff]  }
  0x56   : > { %3054 = vmatprep.subr.bf16.mxu0 %v3293_v3  ;;  %v765_v28 = vrot.slane %v743_v23, %v3714_v8  ;;  %v772_v29 = vrot.slane %v2766_v24, %v3714_v8  ;;  %v791_v30 = vcombine.low %v603_v18, %v604_v25  ;;  %v792_v31 = vcombine.low %v605_v26, %v619_v19  ;;  %v3317_v9 = vld [vmem:[#allocation2 + $0x178] sm:$0xff]   ;;  %v3796_v11 = vld [vmem:[#allocation2 + $0x80] sm:$0xff]  }
  0x57   : > { %v799_v33 = vrot.slane %v790_v27, %v3714_v8  ;;  %v781_v35 = vrot.slane %v773_v22, %v3714_v8  ;;  %v1277_v57 = vstv %s1276_s26  ;;  %vm1258_vm2 = vcmp.le.s32.totalorder %v1254_v55, 8  ;;  %v3817_v18 = vld [vmem:[%s4128_s2] ss:$0 sm:$0xff]  ;;  %s2888_s26 = sshll.u32 %s3512_s13, 3 }
  0x58   : > { %v774_v34 = vcombine.low %v765_v28, %v772_v29  ;;  %v806_v36 = vrot.slane %v791_v30, %v3714_v8  ;;  %v813_v37 = vrot.slane %v792_v31, %v3714_v8  ;;  %2911 = vmatpush3.bf16.msra.mxu1 %v3301_v50  ;;  %vm1278_vm1 = vcmp.eq.s32.totalorder %v1277_v57, 1  ;;  %vm1300_vm11 = vmpackc.low %vm1258_vm2, %vm1258_vm2 }
  0x59   : > { %3055 = vmatpush3.bf16.msra.mxu0 %v3293_v3  ;;  %2912 = vmatprep.subr.bf16.mxu1 %v3303_v51  ;;  %vm1283_vm3 = vmand %vm1255_vm0, %vm1278_vm1  ;;  %v3530_v62 = vmov 0   ;;  %v1263_v12 = vstv %s1262_s22  ;;  %v3531_v13 = vmov 1983009808   ;;  %s2654_s22 = sadd.s32 %s2888_s26, %s2887_s25  ;;  %s3432_s25 = scalar_lea.vmem %s3431_s20, 1024 }
  0x5a   : > { %v788_v38 = vrot.slane %v774_v34, %v3714_v8  ;;  %v814_v39 = vcombine.low %v799_v33, %v806_v36  ;;  %v828_v40 = vrot.slane %v813_v37, %v3714_v8  ;;  %3064 = vmatprep.subr.bf16.mxu0 %v3296_v45  ;;  %vm1284_vm4 = vmand %vm1258_vm2, %vm1278_vm1  ;;  %v965_v14 = vunpack.c.l.s4 %v3531_v13  ;;  %s2889_s27 = sshll.u32 %s2654_s22, 7 }
  0x5b   : > { %vm1301_vm5 = vmpackc.low %vm1283_vm3, %vm1283_vm3  ;;  %vm1264_vm7 = vcmp.eq.s32.totalorder %v1263_v12, 1  ;;  %v1305_v25 = vsel %vm1299_vm8, 65537, %v3530_v62  ;;  %v1306_v26 = vsel %vm1300_vm11, 65537, %v3530_v62  ;;  %vm2442_vm1 = vsmask.f32 3328 }
  0x5c   : > { %3057 = vmatmul.mubr.bf16.vlgmr.msra.gmra.mrb[0].mxu0 %v740_v32  ;;  %v789_v41 = vcombine.low %v781_v35, %v788_v38  ;;  %v821_v42 = vrot.slane %v814_v39, %v3714_v8  ;;  %v3302_v8 = vld [vmem:[#allocation2 + $0x150] sm:$0xff]   ;;  %2913 = vmatpush3.bf16.msra.mxu1 %v3304_v52  ;;  %vm1302_vm6 = vmpackc.low %vm1284_vm4, %vm1284_vm4  ;;  %v3790_v63 = vsel %vm1301_vm5, 65537, %v3530_v62  ;;  %v966_v16 = vunpack.c.0.s8 %v965_v14 }
  0x5d   : > { %3065 = vmatpush3.bf16.msra.mxu0 %v3296_v45  ;;  %2914 = vmatprep.subr.bf16.mxu1 %v3306_v54  ;;  %v3792_v1 = vsel %vm1302_vm6, 65537, %v3530_v62  ;;  %vm3805_vm9 = vmand %vm1255_vm0, %vm1264_vm7  ;;  %v2776_v36 = vcombine.low %v1305_v25, %v1306_v26 }
  0x5e   : > { %3060 = vmatprep.mubr.bf16.mxu0 %v789_v41  ;;  %v829_v43 = vcombine.low %v821_v42, %v828_v40  ;;  %3066 = vmatprep.subr.bf16.mxu0 %v3299_v48  ;;  %v2777_v3 = vcombine.low %v3790_v63, %v3792_v1  ;;  %vm3810_vm10 = vmand %vm1258_vm2, %vm1264_vm7  ;;  %v3829_v21 = vsub.s32 %v966_v16, %v3702_v6  ;;  %vm2443_vm2 = vsmask.f32 7440 }
  0x5f   : > { %vm1297_vm12 = vmpackc.low %vm3805_vm9, %vm3805_vm9  ;;  %vm3841_vm14 = vcmp.ne.s16.totalorder %v2776_v36, 0 }
  0x60   : > { %2915 = vmatpush3.bf16.msra.mxu1 %v3307_v56  ;;  %vm1298_vm13 = vmpackc.low %vm3810_vm10, %vm3810_vm10  ;;  %v1303_v30 = vsel %vm1297_vm12, 65537, %v3530_v62  ;;  %vm3882_vm0 = vcmp.ne.s16.totalorder %v2777_v3, 0 }
  0x61   : > { %3067 = vmatpush3.bf16.msra.mxu0 %v3299_v48  ;;  %2916 = vmatprep.subr.bf16.mxu1 %v3309_v59  ;;  %v1304_v31 = vsel %vm1298_vm13, 65537, %v3530_v62  ;;  %vm4016_vm3 = vmor %vm2442_vm1, %vm2443_vm2 }
  0x62   : > { %3068 = vmatprep.subr.bf16.mxu0 %v3302_v8  ;;  %v2775_v40 = vcombine.low %v1303_v30, %v1304_v31 }
  0x64   : > { %3061 = vmatmul.mubr.bf16.gmra.mrb[4].mxu0 %v829_v43  ;;  %2917 = vmatpush3.bf16.msra.mxu1 %v3310_v60  ;;  %vm3847_vm15 = vcmp.ne.s16.totalorder %v2775_v40, 0 }
  0x65   : > { %3069 = vmatpush3.bf16.msra.mxu0 %v3302_v8  ;;  %2918 = vmatprep.subr.bf16.mxu1 %v3312_v0 }
  0x66   : > { %3070 = vmatprep.subr.bf16.mxu0 %v3305_v53 }
  0x68   : > { %2919 = vmatpush3.bf16.msra.mxu1 %v3313_v2 }
  0x69   : > { %3071 = vmatpush3.bf16.msra.mxu0 %v3305_v53  ;;  %2920 = vmatprep.subr.bf16.mxu1 %v3315_v5 }
  0x6a   : > { %3072 = vmatprep.subr.bf16.mxu0 %v3308_v58 }
  0x6c   : > { %2921 = vmatpush3.bf16.msra.mxu1 %v3316_v7 }
  0x6d   : > { %3073 = vmatpush3.bf16.msra.mxu0 %v3308_v58  ;;  %2944 = vmatprep.subr.bf16.mxu1 %v3318_v10 }
  0x6e   : > { %3074 = vmatprep.subr.bf16.mxu0 %v3311_v61 }
  0x71   : > { %3075 = vmatpush3.bf16.msra.mxu0 %v3311_v61 }
  0x72   : > { %3076 = vmatprep.subr.bf16.mxu0 %v3314_v4 }
  0x75   : > { %3077 = vmatpush3.bf16.msra.mxu0 %v3314_v4 }
  0x76   : > { %3078 = vmatprep.subr.bf16.mxu0 %v3317_v9 }
  0x79   : > { %3079 = vmatpush3.bf16.msra.mxu0 %v3317_v9 }
  0x7a   : > { %3084 = vmatprep.subr.bf16.mxu0 %v3796_v11 }
 0x12f   : > { %v3058_v19 = vpop.f32.mrb[0].mxu0 }
 0x130   : > { %v925_v20 = vadd.f32 %v3058_v19, %v3817_v18  ;;  %v916_v22 = vpop.f32.mrb[1].mxu0 }
 0x131   : > { %v917_v23 = vadd.f32 %v3817_v18, %v916_v22  ;;  %v3059_v24 = vpop.f32.mrb[2].mxu0 }
 0x132   : > { %v949_v27 = vmax.f32 %v925_v20, 0.0  ;;  %v928_v28 = vadd.f32 %v3059_v24, %v3817_v18  ;;  %v919_v29 = vpop.f32.mrb[3].mxu0 }
 0x133   : > { %v947_v32 = vmax.f32 %v917_v23, 0.0  ;;  %v920_v33 = vadd.f32 %v3817_v18, %v919_v29 }
 0x134   : > { %v997_v34 = vcombine.high %v949_v27, %v949_v27  ;;  %v1004_v35 = vrot.slane %v949_v27, %v3829_v21  ;;  %v950_v6 = vmax.f32 %v928_v28, 0.0 }
 0x135   : > { %v963_v37 = vcombine.high %v947_v32, %v947_v32  ;;  %v970_v38 = vrot.slane %v947_v32, %v3829_v21  ;;  %v948_v39 = vmax.f32 %v920_v33, 0.0 }
 0x136   : > { %v1011_v41 = vrot.slane %v997_v34, %v3829_v21  ;;  %v1012_v42 = vcombine.high %v1004_v35, %v1004_v35  ;;  %v1014_v43 = vcombine.high %v950_v6, %v950_v6  ;;  %v1021_v44 = vrot.slane %v950_v6, %v3829_v21 }
 0x137   : > { %v977_v45 = vrot.slane %v963_v37, %v3829_v21  ;;  %v978_v46 = vcombine.high %v970_v38, %v970_v38  ;;  %v980_v47 = vcombine.high %v948_v39, %v948_v39  ;;  %v987_v48 = vrot.slane %v948_v39, %v3829_v21  ;;  %v3062_v49 = vpop.f32.mrb[4].mxu0 }
 0x138   : > { %v1013_v50 = vcombine.high %v1011_v41, %v1011_v41  ;;  %v1028_v8 = vrot.slane %v1014_v43, %v3829_v21  ;;  %v1029_v51 = vcombine.high %v1021_v44, %v1021_v44  ;;  %v932_v53 = vpop.f32.mrb[5].mxu0  ;;  %v1137_v59 = vrot.slane %v1012_v42, %v3829_v21 }
 0x139   : > { %v979_v54 = vcombine.high %v977_v45, %v977_v45  ;;  %v1090_v55 = vcombine.low %v970_v38, %v978_v46  ;;  %v994_v56 = vrot.slane %v980_v47, %v3829_v21  ;;  %v995_v57 = vcombine.high %v987_v48, %v987_v48  ;;  %v3063_v58 = vpop.f32.mrb[6].mxu0 }
 0x13a   : > { %v1138_v60 = vcombine.low %v1011_v41, %v1013_v50  ;;  %v1139_v61 = vcombine.low %v1021_v44, %v1029_v51  ;;  %v935_v0 = vpop.f32.mrb[7].mxu0  ;;  %v1161_v4 = vrot.slane %v1028_v8, %v3829_v21  ;;  %v941_v12 = vadd.f32 %v3062_v49, %v3817_v18 }
 0x13b   : > { %v1091_v2 = vcombine.low %v977_v45, %v979_v54  ;;  %v996_v5 = vcombine.high %v994_v56, %v994_v56  ;;  %v1114_v7 = vcombine.low %v995_v57, %v994_v56  ;;  %v933_v13 = vadd.f32 %v3817_v18, %v932_v53 }
 0x13c   : > { %v1146_v9 = vrot.slane %v1138_v60, %v3829_v21  ;;  %v1153_v10 = vrot.slane %v1139_v61, %v3829_v21  ;;  %v1098_v14 = vrot.slane %v1090_v55, %v3829_v21  ;;  %v1113_v16 = vrot.slane %v987_v48, %v3829_v21 }
 0x13d   : > { %v1105_v15 = vrot.slane %v1091_v2, %v3829_v21  ;;  %v1115_v17 = vcombine.low %v996_v5, %v1004_v35  ;;  %v953_v20 = vmax.f32 %v941_v12, 0.0  ;;  %v951_v22 = vmax.f32 %v933_v13, 0.0 }
 0x13e   : > { %v1154_v19 = vcombine.low %v1146_v9, %v1153_v10  ;;  %v944_v23 = vadd.f32 %v3063_v58, %v3817_v18  ;;  %v1122_v25 = vrot.slane %v1114_v7, %v3829_v21  ;;  %v936_v27 = vadd.f32 %v3817_v18, %v935_v0 }
 0x13f   : > { %v1106_v24 = vcombine.low %v1098_v14, %v1105_v15  ;;  %v1129_v26 = vrot.slane %v1115_v17, %v3829_v21  ;;  %v1065_v29 = vcombine.high %v953_v20, %v953_v20  ;;  %v3864_v30 = vrot.slane %v953_v20, %v3829_v21 }
 0x140   : > { %v1248_v28 = vpack.c.bf16 %v1161_v4, %v1154_v19  ;;  %v1031_v31 = vcombine.high %v951_v22, %v951_v22  ;;  %v1038_v34 = vrot.slane %v951_v22, %v3829_v21  ;;  %v954_v35 = vmax.f32 %v944_v23, 0.0 }
 0x141   : > { %v1130_v32 = vcombine.low %v1122_v25, %v1129_v26  ;;  %v1246_v33 = vpack.c.bf16 %v1113_v16, %v1106_v24  ;;  %v1079_v36 = vrot.slane %v1065_v29, %v3829_v21  ;;  %v1080_v18 = vcombine.high %v3864_v30, %v3864_v30 }
 0x142   : > { %v3869_v6 = vsel %vm3841_vm14, %v1248_v28, 0  ;;  %v1030_v37 = vcombine.high %v1028_v8, %v1028_v8  ;;  %v1045_v40 = vrot.slane %v1031_v31, %v3829_v21  ;;  %v1046_v41 = vcombine.high %v1038_v34, %v1038_v34 }
 0x143   : > { %v1247_v38 = vpack.c.bf16 %v1137_v59, %v1130_v32  ;;  %v3876_v39 = vsel %vm3847_vm15, %v1246_v33, 0  ;;  %v1210_v43 = vcombine.low %v1080_v18, %v1079_v36  ;;  %v1081_v45 = vcombine.high %v1079_v36, %v1079_v36 }
 0x144   : > { %v1162_v44 = vcombine.low %v1030_v37, %v1038_v34  ;;  %v1088_v46 = vrot.slane %v954_v35, %v3829_v21  ;;  %v1047_v47 = vcombine.high %v1045_v40, %v1045_v40  ;;  %v1163_v48 = vcombine.low %v1046_v41, %v1045_v40 }
 0x145   : > { %v952_v49 = vmax.f32 %v936_v27, 0.0  ;;  %v3889_v50 = vsel %vm3841_vm14, %v1247_v38, 0  ;;  %v1218_v8 = vrot.slane %v1210_v43, %v3829_v21  ;;  %v1377_v59 = vrot.slane %v3869_v6, 1  ;;  %v3319_v38 = vld [vmem:[#allocation2] sm:$0xff]  }
 0x146   : > { %v1170_v63 = vrot.slane %v1162_v44, %v3829_v21  ;;  %v1089_v1 = vcombine.high %v1088_v46, %v1088_v46  ;;  %v1211_v3 = vcombine.low %v1081_v45, %v1088_v46  ;;  %v1177_v51 = vrot.slane %v1163_v48, %v3829_v21  ;;  %v3322_v48 = vld [vmem:[#allocation2 + $0x8] sm:$0xff]  }
 0x147   : > { %v1185_v53 = vrot.slane %v1047_v47, %v3829_v21  ;;  %v1048_v54 = vcombine.high %v952_v49, %v952_v49  ;;  %v1055_v55 = vrot.slane %v952_v49, %v3829_v21  ;;  %v1376_v58 = vrot.slane %v3889_v50, 1 }
 0x148   : > { %v1225_v56 = vrot.slane %v1211_v3, %v3829_v21  ;;  %v1233_v57 = vrot.slane %v1089_v1, %v3829_v21  ;;  %v1178_v60 = vcombine.low %v1170_v63, %v1177_v51  ;;  %v1335_v0 = vshrl.u32 %v3889_v50, 16  ;;  %v3324_v3 = vld [vmem:[#allocation2 + $0x50] sm:$0xff]  }
 0x149   : > { %v1062_v61 = vrot.slane %v1048_v54, %v3829_v21  ;;  %v1063_v62 = vcombine.high %v1055_v55, %v1055_v55  ;;  %v2780_v4 = vcombine.low %v1376_v58, %v1377_v59  ;;  %v1337_v5 = vshll.u32 %v3889_v50, 16 }
 0x14a   : > { %v1226_v2 = vcombine.low %v1218_v8, %v1225_v56  ;;  %v1342_v7 = vshrl.u32 %v3869_v6, 16  ;;  %v1249_v9 = vpack.c.bf16 %v1185_v53, %v1178_v60  ;;  %v1344_v13 = vshll.u32 %v3869_v6, 16  ;;  %v3323_v56 = vld [vmem:[#allocation2 + $0x88] sm:$0xff]   ;;  %v3325_v60 = vld [vmem:[#allocation2 + $0x10] sm:$0xff]  }
 0x14b   : > { %v1064_v10 = vcombine.high %v1062_v61, %v1062_v61  ;;  %v1186_v12 = vcombine.low %v1055_v55, %v1063_v62  ;;  %3080 = vmatprep.mubr.bf16.mxu0 %v2780_v4  ;;  %v1339_v15 = vrot.slane %v1337_v5, 1  ;;  %v2778_v16 = vcombine.low %v3889_v50, %v3869_v6  ;;  %v3327_v62 = vld [vmem:[#allocation2 + $0x58] sm:$0xff]   ;;  %v3326_v4 = vld [vmem:[#allocation2 + $0x90] sm:$0xff]  }
 0x14c   : > { %v1251_v14 = vpack.c.bf16 %v1233_v57, %v1226_v2  ;;  %v1375_v17 = vrot.slane %v3876_v39, 1  ;;  %v3910_v19 = vsel %vm3841_vm14, %v1249_v9, 0  ;;  %v1346_v23 = vrot.slane %v1344_v13, 1  ;;  %v3330_v9 = vld [vmem:[#allocation2 + $0x60] sm:$0xff]  }
 0x14d   : > { %v1187_v20 = vcombine.low %v1062_v61, %v1064_v10  ;;  %v1194_v22 = vrot.slane %v1186_v12, %v3829_v21  ;;  %v3917_v25 = vor.u32 %v1339_v15, %v1335_v0  ;;  %v1378_v26 = vrot.slane %v3910_v19, 1  ;;  %v3329_v10 = vld [vmem:[#allocation2 + $0x98] sm:$0xff]   ;;  %v3333_v12 = vld [vmem:[#allocation2 + $0x68] sm:$0xff]   ;;  %v3332_v13 = vld [vmem:[#allocation2 + $0xa0] sm:$0xff]  }
 0x14e   : > { %v3915_v24 = vsel %vm3882_vm0, %v1251_v14, 0  ;;  %v2810_v27 = vcombine.low %v1375_v17, %v1376_v58  ;;  %v1209_v28 = vrot.slane %v3864_v30, %v3829_v21  ;;  %v1347_v31 = vor.u32 %v1346_v23, %v1342_v7  ;;  %v3321_v30 = vld [vmem:[#allocation2 + $0x48] sm:$0xff]   ;;  %v3328_v7 = vld [vmem:[#allocation2 + $0x18] sm:$0xff]   ;;  %v3336_v15 = vld [vmem:[#allocation2 + $0x70] sm:$0xff]  }
 0x14f   : > { %v1201_v29 = vrot.slane %v1187_v20, %v3829_v21  ;;  %v1351_v32 = vshll.u32 %v3910_v19, 16  ;;  %v1349_v33 = vshrl.u32 %v3910_v19, 16  ;;  %v1330_v34 = vshll.u32 %v3876_v39, 16  ;;  %v3334_v14 = vld [vmem:[#allocation2 + $0x28] sm:$0xff]   ;;  %v3337_v17 = vld [vmem:[#allocation2 + $0x30] sm:$0xff]   ;;  %v3342_v23 = vld [vmem:[#allocation2 + $0x1c0] sm:$0xff]  }
 0x150   : > { %v2808_v35 = vcombine.low %v3876_v39, %v3889_v50  ;;  %v3928_v36 = vcombine.low %v1377_v59, %v1378_v26  ;;  %v2779_v37 = vcombine.low %v3917_v25, %v1347_v31  ;;  %v3933_v21 = vcombine.low %v3869_v6, %v3910_v19  ;;  %v3338_v20 = vld [vmem:[#allocation2 + $0xb0] sm:$0xff]   ;;  %v3352_v50 = vld [vmem:[#allocation2 + $0x198] sm:$0xff]  }
 0x151   : > { %v1202_v18 = vcombine.low %v1194_v22, %v1201_v29  ;;  %v1353_v40 = vrot.slane %v1351_v32, 1  ;;  %v1332_v41 = vrot.slane %v1330_v34, 1  ;;  %v1365_v42 = vshll.u32 %v3915_v24, 16  ;;  %v3340_v22 = vld [vmem:[#allocation2 + $0x38] sm:$0xff]   ;;  %v3346_v29 = vld [vmem:[#allocation2 + $0x188] sm:$0xff]  }
 0x152   : > { %1681 = vmatprep.mubr.bf16.mxu1 %v2779_v37  ;;  %v1328_v45 = vshrl.u32 %v3876_v39, 16  ;;  %v1380_v46 = vrot.slane %v3915_v24, 1  ;;  %v1363_v8 = vshrl.u32 %v3915_v24, 16  ;;  %v3347_v32 = vld [vmem:[#allocation2 + $0x208] sm:$0xff]   ;;  %v3351_v34 = vld [vmem:[#allocation2 + $0x1d8] sm:$0xff]   ;;  %v3350_v39 = vld [vmem:[#allocation2 + $0x210] sm:$0xff]  }
 0x153   : > { %v1250_v43 = vpack.c.bf16 %v1209_v28, %v1202_v18  ;;  %v1354_v44 = vor.u32 %v1353_v40, %v1349_v33  ;;  %1682 = vmatmul.mubr.bf16.vlgmr.msra.gmra.mrb[0].mxu1 %v2778_v16  ;;  %v1367_v53 = vrot.slane %v1365_v42, 1  ;;  %v3335_v16 = vld [vmem:[#allocation2 + $0xa8] sm:$0xff]   ;;  %v3344_v28 = vld [vmem:[#allocation2 + $0x200] sm:$0xff]   ;;  %v3349_v33 = vld [vmem:[#allocation2 + $0x190] sm:$0xff]  }
 0x154   : > { %2945 = vmatpush3.bf16.msra.mxu1 %v3319_v38  ;;  %v1333_v6 = vor.u32 %v1332_v41, %v1328_v45  ;;  %v3353_v18 = vld [vmem:[#allocation2 + $0x218] sm:$0xff]   ;;  %v3355_v37 = vld [vmem:[#allocation2 + $0x1a0] sm:$0xff]   ;;  %v3357_v38 = vld [vmem:[#allocation2 + $0x1e8] sm:$0xff]  }
 0x155   : > { %v3940_v47 = vsel %vm3841_vm14, %v1250_v43, 0  ;;  %v3942_v49 = vcombine.low %v1347_v31, %v1354_v44  ;;  %2946 = vmatprep.subr.bf16.mxu1 %v3321_v30  ;;  %v3957_v0 = vor.u32 %v1367_v53, %v1363_v8  ;;  %v3348_v31 = vld [vmem:[#allocation2 + $0x1d0] sm:$0xff]   ;;  %v3358_v40 = vld [vmem:[#allocation2 + $0x1a8] sm:$0xff]   ;;  %v3363_v43 = vld [vmem:[#allocation2 + $0x1f8] sm:$0xff]  }
 0x156   : > { %v1379_v63 = vrot.slane %v3940_v47, 1  ;;  %v1358_v1 = vshll.u32 %v3940_v47, 16  ;;  %v2781_v51 = vcombine.low %v3910_v19, %v3940_v47  ;;  %v2809_v52 = vcombine.low %v1333_v6, %v3917_v25  ;;  %v3339_v19 = vld [vmem:[#allocation2 + $0x78] sm:$0xff]   ;;  %v3360_v30 = vld [vmem:[#allocation2 + $0x1f0] sm:$0xff]   ;;  %v3359_v41 = vld [vmem:[#allocation2 + $0x228] sm:$0xff]  }
 0x157   : > { %v2838_v54 = vcombine.low %v3940_v47, %v3915_v24  ;;  %v1356_v57 = vshrl.u32 %v3940_v47, 16  ;;  %v3341_v25 = vld [vmem:[#allocation2 + $0xb8] sm:$0xff]   ;;  %v3361_v42 = vld [vmem:[#allocation2 + $0x1b0] sm:$0xff]   ;;  %v3367_v6 = vld [vmem:[%s4131_s5 + $0x8] sm:$0xff]  }
 0x158   : > { %v2783_v55 = vcombine.low %v1378_v26, %v1379_v63  ;;  %v1360_v58 = vrot.slane %v1358_v1, 1  ;;  %v3953_v59 = vcombine.low %v1379_v63, %v1380_v46  ;;  %2947 = vmatpush3.bf16.msra.mxu1 %v3322_v48  ;;  %v3343_v26 = vld [vmem:[#allocation2 + $0x180] sm:$0xff]   ;;  %v3364_v45 = vld [vmem:[#allocation2 + $0x1b8] sm:$0xff]   ;;  %v3372_v8 = vld [vmem:[%s4131_s5 + $0x30] sm:$0xff]  }
 0x159   : > { %2948 = vmatprep.subr.bf16.mxu1 %v3324_v3  ;;  %v3365_v46 = vld [vmem:[#allocation2 + $0x238] sm:$0xff]   ;;  %v3366_v48 = vld [vmem:[%s4131_s5] sm:$0xff]  }
 0x15a   : > { %3081 = vmatmul.mubr.bf16.vlgmr.msra.gmra.mrb[8].mxu0 %v2783_v55  ;;  %v3955_v61 = vor.u32 %v1360_v58, %v1356_v57  ;;  %v3369_v24 = vld [vmem:[%s4131_s5 + $0x18] sm:$0xff]   ;;  %v3370_v47 = vld [vmem:[%s4131_s5 + $0x20] sm:$0xff]  }
 0x15b   : > { %3085 = vmatpush3.bf16.msra.mxu0 %v3796_v11  ;;  %3100 = vmatprep.mubr.bf16.mxu0 %v2810_v27  ;;  %v3331_v11 = vld [vmem:[#allocation2 + $0x20] sm:$0xff]   ;;  %v3345_v27 = vld [vmem:[#allocation2 + $0x1c8] sm:$0xff]   ;;  %v3373_v63 = vld [vmem:[%s4131_s5 + $0x38] sm:$0xff]  }
 0x15c   : > { %3086 = vmatprep.subr.bf16.mxu0 %v3323_v56  ;;  %v2782_v2 = vcombine.low %v1354_v44, %v3955_v61  ;;  %v2839_v5 = vcombine.low %v3955_v61, %v3957_v0  ;;  %2949 = vmatpush3.bf16.msra.mxu1 %v3325_v60  ;;  %v3362_v44 = vld [vmem:[#allocation2 + $0x230] sm:$0xff]   ;;  %v4006_v1 = vld [vmem:[%s4133_s7] sm:$0xff]  }
 0x15d   : > { %2950 = vmatprep.subr.bf16.mxu1 %v3327_v62 }
 0x15e   : > { %1689 = vmatprep.mubr.bf16.mxu1 %v2782_v2 }
 0x15f   : > { %3087 = vmatpush3.bf16.msra.mxu0 %v3323_v56  ;;  %1690 = vmatmul.mubr.bf16.gmra.mrb[4].mxu1 %v2781_v51 }
 0x160   : > { %1935 = vmatprep.mubr.bf16.mxu1 %v2809_v52  ;;  %3088 = vmatprep.subr.bf16.mxu0 %v3326_v4 }
 0x161   : > { %2951 = vmatpush3.bf16.msra.mxu1 %v3328_v7 }
 0x162   : > { %2952 = vmatprep.subr.bf16.mxu1 %v3330_v9 }
 0x163   : > { %3089 = vmatpush3.bf16.msra.mxu0 %v3326_v4 }
 0x164   : > { %3090 = vmatprep.subr.bf16.mxu0 %v3329_v10 }
 0x165   : > { %2953 = vmatpush3.bf16.msra.mxu1 %v3331_v11 }
 0x166   : > { %2954 = vmatprep.subr.bf16.mxu1 %v3333_v12 }
 0x167   : > { %3091 = vmatpush3.bf16.msra.mxu0 %v3329_v10 }
 0x168   : > { %3092 = vmatprep.subr.bf16.mxu0 %v3332_v13 }
 0x169   : > { %2955 = vmatpush3.bf16.msra.mxu1 %v3334_v14 }
 0x16a   : > { %2956 = vmatprep.subr.bf16.mxu1 %v3336_v15 }
 0x16b   : > { %3093 = vmatpush3.bf16.msra.mxu0 %v3332_v13 }
 0x16c   : > { %3094 = vmatprep.subr.bf16.mxu0 %v3335_v16 }
 0x16d   : > { %2957 = vmatpush3.bf16.msra.mxu1 %v3337_v17 }
 0x16e   : > { %2958 = vmatprep.subr.bf16.mxu1 %v3339_v19 }
 0x16f   : > { %3095 = vmatpush3.bf16.msra.mxu0 %v3335_v16 }
 0x170   : > { %3096 = vmatprep.subr.bf16.mxu0 %v3338_v20 }
 0x171   : > { %2959 = vmatpush3.bf16.msra.mxu1 %v3340_v22 }
 0x172   : > { %2982 = vmatprep.subr.bf16.mxu1 %v3342_v23  ;;  %v3382_v23 = vld [vmem:[%s3711_s14 + $0x8] sm:$0xf] }
 0x173   : > { %3097 = vmatpush3.bf16.msra.mxu0 %v3338_v20 }
 0x174   : > { %3098 = vmatprep.subr.bf16.mxu0 %v3341_v25  ;;  %1936 = vmatmul.mubr.bf16.vlgmr.msra.gmra.mrb[8].mxu1 %v2808_v35  ;;  %v3354_v35 = vld [vmem:[#allocation2 + $0x1e0] sm:$0xff]  }
 0x175   : > { %1943 = vmatprep.mubr.bf16.mxu1 %v3942_v49  ;;  %2983 = vmatpush3.bf16.msra.mxu1 %v3343_v26  ;;  %v2449_v26 = vshll.u32 %v3382_v23, 16 }
 0x176   : > { %2984 = vmatprep.subr.bf16.mxu1 %v3345_v27  ;;  %v3383_v27 = vld [vmem:[%s3711_s14 + $0x10] sm:$0xf] }
 0x177   : > { %3099 = vmatpush3.bf16.msra.mxu0 %v3341_v25  ;;  %v2446_v25 = vshrl.u32 %v3382_v23, 16  ;;  %v3387_v23 = vld [vmem:[%s3711_s14 + $0x20] sm:$0xf] }
 0x178   : > { %3104 = vmatprep.subr.bf16.mxu0 %v3344_v28 }
 0x179   : > { %2985 = vmatpush3.bf16.msra.mxu1 %v3346_v29  ;;  %v2463_v29 = vshll.u32 %v3383_v27, 16 }
 0x17a   : > { %3101 = vmatmul.mubr.bf16.vlgmr.msra.gmra.mrb[8].mxu0 %v3928_v36  ;;  %2986 = vmatprep.subr.bf16.mxu1 %v3348_v31 }
 0x17b   : > { %3105 = vmatpush3.bf16.msra.mxu0 %v3344_v28  ;;  %3120 = vmatprep.mubr.bf16.mxu0 %v3928_v36  ;;  %v3356_v36 = vld [vmem:[#allocation2 + $0x220] sm:$0xff]   ;;  %v2460_v28 = vshrl.u32 %v3383_v27, 16 }
 0x17c   : > { %3106 = vmatprep.subr.bf16.mxu0 %v3347_v32  ;;  %1944 = vmatmul.mubr.bf16.gmra.mrb[12].mxu1 %v3933_v21 }
 0x17d   : > { %2987 = vmatpush3.bf16.msra.mxu1 %v3349_v33  ;;  %2235 = vmatprep.mubr.bf16.mxu1 %v3942_v49  ;;  %v3371_v49 = vld [vmem:[%s4131_s5 + $0x28] sm:$0xff]  }
 0x17e   : > { %2988 = vmatprep.subr.bf16.mxu1 %v3351_v34 }
 0x17f   : > { %3107 = vmatpush3.bf16.msra.mxu0 %v3347_v32 }
 0x180   : > { %3108 = vmatprep.subr.bf16.mxu0 %v3350_v39 }
 0x181   : > { %2989 = vmatpush3.bf16.msra.mxu1 %v3352_v50  ;;  %v2448_v50 = vrot.slane %v2446_v25, 4  ;;  %v2488_v25 = vshrl.u32 %v3387_v23, 16 }
 0x182   : > { %2990 = vmatprep.subr.bf16.mxu1 %v3354_v35  ;;  %v2451_v35 = vrot.slane %v2449_v26, 5  ;;  %v3378_v26 = vld [vmem:[%s4133_s7 + $0x20] sm:$0xff]  }
 0x183   : > { %3109 = vmatpush3.bf16.msra.mxu0 %v3350_v39 }
 0x184   : > { %3110 = vmatprep.subr.bf16.mxu0 %v3353_v18 }
 0x185   : > { %2991 = vmatpush3.bf16.msra.mxu1 %v3355_v37  ;;  %v2465_v37 = vrot.slane %v2463_v29, 5  ;;  %v2490_v29 = vrot.slane %v2488_v25, 4 }
 0x186   : > { %2992 = vmatprep.subr.bf16.mxu1 %v3357_v38 }
 0x187   : > { %3111 = vmatpush3.bf16.msra.mxu0 %v3353_v18  ;;  %v2462_v18 = vrot.slane %v2460_v28, 4 }
 0x188   : > { %3112 = vmatprep.subr.bf16.mxu0 %v3356_v36 }
 0x189   : > { %2993 = vmatpush3.bf16.msra.mxu1 %v3358_v40 }
 0x18a   : > { %2994 = vmatprep.subr.bf16.mxu1 %v3360_v30  ;;  %v2865_v30 = vld [vmem:[%s4130_s4] ss:$0 sm:$0xff] }
 0x18b   : > { %3113 = vmatpush3.bf16.msra.mxu0 %v3356_v36 }
 0x18c   : > { %3114 = vmatprep.subr.bf16.mxu0 %v3359_v41 }
 0x18d   : > { %2995 = vmatpush3.bf16.msra.mxu1 %v3361_v42 }
 0x18e   : > { %2996 = vmatprep.subr.bf16.mxu1 %v3363_v43 }
 0x18f   : > { %3115 = vmatpush3.bf16.msra.mxu0 %v3359_v41 }
 0x190   : > { %3116 = vmatprep.subr.bf16.mxu0 %v3362_v44 }
 0x191   : > { %2997 = vmatpush3.bf16.msra.mxu1 %v3364_v45 }
 0x192   : > { %3124 = vmatprep.subr.bf16.mxu1 %v3366_v48 }
 0x193   : > { %3117 = vmatpush3.bf16.msra.mxu0 %v3362_v44 }
 0x194   : > { %3118 = vmatprep.subr.bf16.mxu0 %v3365_v46  ;;  %2236 = vmatmul.mubr.bf16.vlgmr.msra.gmra.mrb[16].mxu1 %v3933_v21  ;;  %v3368_v21 = vld [vmem:[%s4131_s5 + $0x10] sm:$0xff]  }
 0x195   : > { %2243 = vmatprep.mubr.bf16.mxu1 %v2839_v5  ;;  %3125 = vmatpush3.bf16.msra.mxu1 %v3366_v48  ;;  %v3384_v48 = vld [vmem:[%s3711_s14 + $0xc] sm:$0x1] }
 0x196   : > { %3126 = vmatprep.subr.bf16.mxu1 %v3367_v6 }
 0x197   : > { %3119 = vmatpush3.bf16.msra.mxu0 %v3365_v46  ;;  %v2452_v46 = vor.u32 %v2451_v35, %v2448_v50  ;;  %v3389_v35 = vld [vmem:[%s3711_s14 + $0x24] sm:$0x1] }
 0x199   : > { %3127 = vmatpush3.bf16.msra.mxu1 %v3367_v6  ;;  %v2455_v6 = vshll.u32 %v3384_v48, 16 }
 0x19a   : > { %3121 = vmatmul.mubr.bf16.vlgmr.msra.gmra.mrb[8].mxu0 %v3953_v59  ;;  %3128 = vmatprep.subr.bf16.mxu1 %v3368_v21 }
 0x19c   : > { %2244 = vmatmul.mubr.bf16.gmra.mrb[20].mxu1 %v2838_v54 }
 0x19d   : > { %3129 = vmatpush3.bf16.msra.mxu1 %v3368_v21  ;;  %v2466_v21 = vor.u32 %v2465_v37, %v2462_v18  ;;  %v2497_v18 = vshll.u32 %v3389_v35, 16  ;;  %v3380_v37 = vld [vmem:[%s4133_s7 + $0x30] sm:$0xff]  }
 0x19e   : > { %3130 = vmatprep.subr.bf16.mxu1 %v3369_v24 }
 0x1a1   : > { %3131 = vmatpush3.bf16.msra.mxu1 %v3369_v24  ;;  %v3385_v24 = vld [vmem:[%s3711_s14 + $0x14] sm:$0x1] }
 0x1a2   : > { %3132 = vmatprep.subr.bf16.mxu1 %v3370_v47 }
 0x1a5   : > { %3133 = vmatpush3.bf16.msra.mxu1 %v3370_v47  ;;  %v2469_v47 = vshll.u32 %v3385_v24, 16 }
 0x1a6   : > { %3134 = vmatprep.subr.bf16.mxu1 %v3371_v49 }
 0x1a9   : > { %3135 = vmatpush3.bf16.msra.mxu1 %v3371_v49 }
 0x1aa   : > { %3136 = vmatprep.subr.bf16.mxu1 %v3372_v8 }
 0x1ad   : > { %3137 = vmatpush3.bf16.msra.mxu1 %v3372_v8 }
 0x1ae   : > { %3138 = vmatprep.subr.bf16.mxu1 %v3373_v63 }
 0x1b1   : > { %3139 = vmatpush3.bf16.msra.mxu1 %v3373_v63 }
 0x1b2   : > { %3144 = vmatprep.subr.bf16.mxu1 %v4006_v1 }
 0x226   : > { %v2922_v3 = vpop.f32.mrb[0].mxu1 }
 0x227   : > { %v2923_v51 = vpop.f32.mrb[1].mxu1 }
 0x228   : > { %v2924_v53 = vadd.f32 %v2923_v51, %v2922_v3  ;;  %v2925_v52 = vpop.f32.mrb[2].mxu1 }
 0x229   : > { %v2926_v54 = vpop.f32.mrb[3].mxu1 }
 0x22a   : > { %v2927_v55 = vadd.f32 %v2926_v54, %v2925_v52 }
 0x232   : > { %v2928_v56 = vpop.f32.mrb[4].mxu1 }
 0x233   : > { %v2929_v57 = vpop.f32.mrb[5].mxu1 }
 0x234   : > { %v2930_v58 = vadd.f32 %v2929_v57, %v2928_v56  ;;  %v2931_v59 = vpop.f32.mrb[6].mxu1  ;;  %v2457_v56 = vrot.slane %v2455_v6, 5  ;;  %v2467_v57 = vrot.slane %v2466_v21, 4 }
 0x235   : > { %v2932_v60 = vpop.f32.mrb[7].mxu1 }
 0x236   : > { %v2933_v61 = vadd.f32 %v2932_v60, %v2931_v59 }
 0x247   : > { %v2960_v62 = vpop.f32.mrb[8].mxu1 }
 0x248   : > { %v2961_v0 = vpop.f32.mrb[9].mxu1 }
 0x249   : > { %v2962_v2 = vadd.f32 %v2961_v0, %v2960_v62  ;;  %v2963_v4 = vpop.f32.mrb[10].mxu1 }
 0x24a   : > { %v2964_v5 = vpop.f32.mrb[11].mxu1 }
 0x24b   : > { %v3167_v7 = vadd.f32 %v2962_v2, %v2924_v53  ;;  %v2965_v9 = vadd.f32 %v2964_v5, %v2963_v4 }
 0x24d   : > { %v3173_v10 = vadd.f32 %v2965_v9, %v2927_v55  ;;  %v2453_v55 = vrot.slane %v2452_v46, 4  ;;  %v2875_v46 = vld [vmem:[%s4134_s8] ss:$0 sm:$0xff] }
 0x24f   : > { %v2966_v11 = vpop.f32.mrb[12].mxu1  ;;  %v2458_v9 = vsel %vm4016_vm3, %v2453_v55, %v2457_v56 }
 0x250   : > { %v2967_v12 = vpop.f32.mrb[13].mxu1 }
 0x251   : > { %v2968_v13 = vadd.f32 %v2967_v12, %v2966_v11  ;;  %v2969_v14 = vpop.f32.mrb[14].mxu1 }
 0x252   : > { %v2970_v15 = vpop.f32.mrb[15].mxu1 }
 0x253   : > { %v3164_v16 = vadd.f32 %v2968_v13, %v2930_v58  ;;  %v2971_v17 = vadd.f32 %v2970_v15, %v2969_v14  ;;  %v2471_v58 = vrot.slane %v2469_v47, 5  ;;  %v3375_v15 = vld [vmem:[%s4133_s7 + $0x8] sm:$0xff]  }
 0x255   : > { %v3170_v19 = vadd.f32 %v2971_v17, %v2933_v61  ;;  %v3377_v17 = vld [vmem:[%s4133_s7 + $0x18] sm:$0xff]  }
 0x267   : > { %v2998_v20 = vpop.f32.mrb[16].mxu1 }
 0x268   : > { %v2999_v22 = vpop.f32.mrb[17].mxu1 }
 0x269   : > { %v3000_v31 = vadd.f32 %v2999_v22, %v2998_v20  ;;  %v3001_v32 = vpop.f32.mrb[18].mxu1 }
 0x26a   : > { %v3002_v33 = vpop.f32.mrb[19].mxu1 }
 0x26b   : > { %v3003_v34 = vadd.f32 %v3002_v33, %v3001_v32  ;;  %v3168_v39 = vadd.f32 %v3167_v7, %v3000_v31  ;;  %v3379_v32 = vld [vmem:[%s4133_s7 + $0x28] sm:$0xff]  }
 0x26d   : > { %v3122_v38 = vpop.f32.mrb[8].mxu0  ;;  %v3174_v36 = vadd.f32 %v3173_v10, %v3003_v34  ;;  %v2472_v10 = vsel %vm4016_vm3, %v2467_v57, %v2471_v58  ;;  %v3388_v34 = vld [vmem:[%s3711_s14 + $0x1c] sm:$0x1] }
 0x26e   : > { %v2286_v40 = vpop.f32.mrb[9].mxu0  ;;  %v2876_v13 = vcombine.low %v2458_v9, %v2472_v10 }
 0x26f   : > { %v3169_v41 = vadd.f32 %v3168_v39, %v2286_v40  ;;  %v3123_v42 = vpop.f32.mrb[10].mxu0  ;;  %v3004_v43 = vpop.f32.mrb[20].mxu1  ;;  %v2483_v39 = vshll.u32 %v3388_v34, 16 }
 0x270   : > { %v2289_v44 = vpop.f32.mrb[11].mxu0  ;;  %v3005_v45 = vpop.f32.mrb[21].mxu1 }
 0x271   : > { %v2312_v49 = vadd.f32 %v3169_v41, %v2865_v30  ;;  %v3175_v8 = vadd.f32 %v3174_v36, %v2289_v44  ;;  %v3006_v63 = vadd.f32 %v3005_v45, %v3004_v43  ;;  %v3007_v3 = vpop.f32.mrb[22].mxu1  ;;  %v2485_v36 = vrot.slane %v2483_v39, 5  ;;  %v3381_v41 = vld [vmem:[%s4133_s7 + $0x38] sm:$0xff]   ;;  %v2866_v45 = vld [vmem:[%s4132_s6] ss:$0 sm:$0xff] }
 0x272   : > { %v3008_v51 = vpop.f32.mrb[23].mxu1  ;;  %v3182_v48 = vadd.f32 %v2875_v46, %v2866_v45 }
 0x273   : > { %v2313_v53 = vadd.f32 %v3175_v8, %v2865_v30  ;;  %v3165_v52 = vadd.f32 %v3164_v16, %v3006_v63  ;;  %v3009_v54 = vadd.f32 %v3008_v51, %v3007_v3  ;;  %v2316_v59 = vmax.f32 %v2312_v49, 0.0  ;;  %v3376_v16 = vld [vmem:[%s4133_s7 + $0x10] sm:$0xff]  }
 0x275   : > { %v2317_v60 = vmax.f32 %v2313_v53, 0.0  ;;  %v3166_v61 = vadd.f32 %v3165_v52, %v3122_v38  ;;  %v3171_v62 = vadd.f32 %v3170_v19, %v3009_v54  ;;  %v3386_v19 = vld [vmem:[%s3711_s14 + $0x18] sm:$0xf]  ;;  %s352_s14 = sand.u32 1, %s3500_s10  }
 0x276   : > { %v2474_v20 = vshrl.u32 %v3386_v19, 16  ;;  %v2477_v22 = vshll.u32 %v3386_v19, 16  ;;  %s2754_s21 = sshll.u32 %s352_s14, 5  ;;  %s4074_s28 = scalar_lea.sflag [#allocation4], %s352_s14 }
 0x277   : > { %v2314_v2 = vadd.f32 %v3166_v61, %v2865_v30  ;;  %v3172_v4 = vadd.f32 %v3171_v62, %v3123_v42  ;;  %v2320_v5 = vpack.c.bf16 %v2317_v60, %v2316_v59  ;;  %s354_s17 = scalar_lea.vmem [#allocation5], %s2754_s21  ;;  %s4070_s21 = scalar_lea.hbm %s4135_s9, %s2889_s27 }
 0x278   : > { %v2476_v27 = vrot.slane %v2474_v20, 4  ;;  %v2479_v28 = vrot.slane %v2477_v22, 5  ;;  %s2657_s19 = sshll.u32 %s354_s17, 4  ;;  %s4065_s19 = int_to_ptr.vmem [resolvable:$true] %s2657_s19 }
 0x279   : > { %v2315_v7 = vadd.f32 %v3172_v4, %v2865_v30  ;;  %3140 = vmatprep.mubr.bf16.mxu1 %v2320_v5  ;;  %v2318_v11 = vmax.f32 %v2314_v2, 0.0  ;;  %v2499_v30 = vrot.slane %v2497_v18, 5  ;;  %s3426_s18 = scalar_lea.vmem %s4065_s19, 512  ;;  %p3433_p6 = scmp.lt.s32.totalorder %s4065_s19, %s3431_s20 }
 0x27a   : > { %v2480_v33 = vor.u32 %v2479_v28, %v2476_v27  ;;  %p3427_p12 = scmp.ne.s32.totalorder %s4065_s19, %s3426_s18  ;;  %p3434_p7 = scmp.lt.s32.totalorder %s3432_s25, %s3426_s18 }
 0x27b   : > { %v2319_v12 = vmax.f32 %v2315_v7, 0.0 }
 0x27c   : > { %v2481_v38 = vrot.slane %v2480_v33, 4  ;;  %p3428_p2 = pnand %p3427_p12, %p4167_p0  ;;  %p3435_p9 = por %p3434_p7, %p3433_p6 }
 0x27d   : > { %v2321_v14 = vpack.c.bf16 %v2319_v12, %v2318_v11 }
 0x27e   : > { %v2486_v42 = vsel %vm4016_vm3, %v2481_v38, %v2485_v36  ;;  %p3429_p5 = pneg %p3428_p2 }
 0x27f   : > { %3141 = vmatmul.mubr.bf16.vlgmr.msra.gmra.mrb[24].mxu1 %v2321_v14 }
 0x280   : > { %3145 = vmatpush3.bf16.msra.mxu1 %v4006_v1  ;;  %3160 = vmatprep.mubr.bf16.mxu1 %v2876_v13  ;;  %v2491_v1 = vshll.u32 %v3387_v23, 16  ;;  %p3436_p11 = pnand %p3435_p9, %p3429_p5 }
 0x281   : > { %3146 = vmatprep.subr.bf16.mxu1 %v3375_v15 }
 0x282   : > { %v2493_v31 = vrot.slane %v2491_v1, 5 }
 0x284   : > { %3147 = vmatpush3.bf16.msra.mxu1 %v3375_v15  ;;  %v2494_v50 = vor.u32 %v2493_v31, %v2490_v29 }
 0x285   : > { %3148 = vmatprep.subr.bf16.mxu1 %v3376_v16 }
 0x286   : > { %v2495_v40 = vrot.slane %v2494_v50, 4 }
 0x288   : > { %3149 = vmatpush3.bf16.msra.mxu1 %v3376_v16  ;;  %v2500_v43 = vsel %vm4016_vm3, %v2495_v40, %v2499_v30 }
 0x289   : > { %3150 = vmatprep.subr.bf16.mxu1 %v3377_v17  ;;  %v2877_v44 = vcombine.low %v2486_v42, %v2500_v43 }
 0x28c   : > { %3151 = vmatpush3.bf16.msra.mxu1 %v3377_v17 }
 0x28d   : > { %3152 = vmatprep.subr.bf16.mxu1 %v3378_v26 }
 0x290   : > { %3153 = vmatpush3.bf16.msra.mxu1 %v3378_v26 }
 0x291   : > { %3154 = vmatprep.subr.bf16.mxu1 %v3379_v32 }
 0x294   : > { %3155 = vmatpush3.bf16.msra.mxu1 %v3379_v32 }
 0x295   : > { %3156 = vmatprep.subr.bf16.mxu1 %v3380_v37 }
 0x298   : > { %3157 = vmatpush3.bf16.msra.mxu1 %v3380_v37 }
 0x299   : > { %3158 = vmatprep.subr.bf16.mxu1 %v3381_v41 }
 0x29c   : > { %3159 = vmatpush3.bf16.msra.mxu1 %v3381_v41 }
 0x29f   : > { %3161 = vmatmul.mubr.bf16.vlgmr.msra.gmra.mrb[24].mxu1 %v2877_v44 }
 0x372   : > { %v3162_v6 = vpop.f32.mrb[24].mxu1 }
 0x373   : > { %v3176_v21 = vadd.f32 %v3162_v6, %v2866_v45  ;;  %v2614_v24 = vpop.f32.mrb[25].mxu1 }
 0x374   : > { %v3178_v47 = vadd.f32 %v2866_v45, %v2614_v24  ;;  %v3163_v49 = vpop.f32.mrb[26].mxu1 }
 0x375   : > { %v3177_v8 = vadd.f32 %v3176_v21, %v2875_v46  ;;  %v3181_v63 = vadd.f32 %v3182_v48, %v3163_v49  ;;  %v2617_v3 = vpop.f32.mrb[27].mxu1 }
 0x376   : > { %v3179_v51 = vadd.f32 %v3178_v47, %v2875_v46  ;;  %v3183_v53 = vadd.f32 %v3182_v48, %v2617_v3 }
 0x377   : > { %v2635_v52 = vmax.f32 %v3177_v8, 0.0  ;;  %v2636_v54 = vmax.f32 %v3181_v63, 0.0 }
 0x378   : > { %v2633_v55 = vmax.f32 %v3179_v51, 0.0  ;;  %v2634_v56 = vmax.f32 %v3183_v53, 0.0 }
 0x379   : > { %2639 = vst [vmem:[%s354_s17 + $0x10] sm:$0xff] %v2635_v52  ;;  %2640 = vst [vmem:[%s354_s17 + $0x18] sm:$0xff] %v2636_v54 }
 0x37a   : > { %2637 = vst [vmem:[%s354_s17] sm:$0xff] %v2633_v55  ;;  %2638 = vst [vmem:[%s354_s17 + $0x8] sm:$0xff] %v2634_v56 }
 0x37b   : > { %3439 = shalt.err (!%p3436_p11)
}
 0x37c   : > { %s3440_s14 = scalar_lea.hbm %s4070_s21, 512  ;;  %s3444_s17 = scalar_lea.hbm %s4135_s9, 2048 }
 0x37d   : > { %p3441_p13 = scmp.ne.s32.totalorder %s4070_s21, %s3440_s14  ;;  %p3445_p3 = scmp.lt.u32.totalorder %s4070_s21, %s4135_s9 }
 0x37e   : > { %p3446_p8 = scmp.lt.u32.totalorder %s3444_s17, %s3440_s14  ;;  %p3448_p12 = scmp.lt.u32.totalorder %s3440_s14, %s4070_s21 }
 0x37f   : > { %p3442_p1 = pnand %p3441_p13, %p4167_p0 }
 0x380   : > { %p3447_p10 = por %p3446_p8, %p3445_p3 }
 0x381   : > { %p3443_p4 = pneg %p3442_p1 }
 0x382   : > { %p3449_p2 = por %p3448_p12, %p3447_p10 }
 0x384   : > { %p3450_p5 = pnand %p3449_p2, %p3443_p4 }
 0x386   : > { %3453 = shalt.err (!%p3450_p5)
}
 0x387   : > { %s3533_s13 = smov 128   ;;  %s3534_s18 = smov 8  }
 0x388   : > { %3201 = dma.vmem_to_hbm [thread:$0]  (%p4167_p0), %s4065_s19, 512, %s4070_s21, %s4074_s28, %s3533_s13, %s3533_s13, %s3534_s18  }
 0x389 PF: > { %p3213_p6 = scmp.ge.s32.totalorder %s3524_s16, 2  ;;  %s2672_s15 = sand.u32 1, %s3496_s30  }
 0x38a   : > { %p4168_p7 = scmp.ne.s32.totalorder %s4149_s24, 0  ;;  %s2673_s20 = scalar_lea.sflag [#allocation4], %s2672_s15 }
 0x38c   : > { %p3208_p9 = pnand %p3213_p6, %p4168_p7 }
 0x38e   : > { %3491 = dma.done.wait (!%p3208_p9), %s2673_s20, 512  }
 0x38f   : > { %3493 = vsyncadd (!%p3208_p9), %s2673_s20, 4294966784  ;;  %s23_s16 = sadd.s32 1, %s3524_s16   ;;  %s4169_s12 = sld [smem:[#allocation8_spill]] }
 0x390   : > { %p20_p11 = scmp.ge.s32.totalorder %s23_s16, 6   ;;  %s4170_s13 = sld [smem:[#allocation9_spill]] }
 0x391   : > { %s4171_s14 = sld [smem:[#allocation10_spill]]  ;;  %s4172_s15 = sld [smem:[#allocation11_spill]] }
 0x392   : > { %s4173_s30 = smov %s3500_s10  ;;  %s4174_s10 = smov %s3504_s11 }
 0x393   : > { %s4175_s11 = smov %s3664_s29  ;;  %22 = sbr.rel (!%p20_p11) target bundleno = 6 (0x6), region = 99 }
 0x39a   :  { %2678 = vsyncpa [#allocation3], 1 }
 0x39b   :  { %2680 = vsyncpa [#allocation3 + $0x1], 1 }
 0x39c   :  { %2681 = vsyncpa [#allocation4], 1 }
 0x39d   :  { %2683 = vsyncpa [#allocation4 + $0x1], 1 }

</bundles_post_ra>
